<compile_context>
chip_gen: v5e
topology: v5e:2x2
jax: 0.10.0
libtpu: 0.0.40
codegen_flags: <defaults>
</compile_context>

<pallas_src>
import functools

import jax
import jax.numpy as jnp
import numpy as np
from jax import lax
from jax.experimental import pallas as pl
from jax.experimental.pallas import tpu as pltpu


# ----------------------------------------------------------------------------
# Phase (sub-pixel) decomposition of "nearest-2x upsample then 3x3 conv".
#
# For output row 2i+a, the 3x3 taps dy land on pre-upsample rows {i-1, i} (a=0)
# or {i, i+1} (a=1).  With xpad = zero-pad(x, 1), row offsets are (i + a + p),
# p in {0,1}, and the dy taps combine according to _PHASE_TAPS[a, p, dy]
# (identically for columns).  So
#   O[2i+a, 2j+b] = sum_{p,q} Wphase[a,b,p,q] . xpad[i+a+p, j+b+q]     (+ bias)
# ----------------------------------------------------------------------------
_PHASE_TAPS = np.array(
    [[[1.0, 0.0, 0.0], [0.0, 1.0, 1.0]],   # a = 0: p=0 <- dy=0, p=1 <- dy in {1,2}
     [[1.0, 1.0, 0.0], [0.0, 0.0, 1.0]]],  # a = 1: p=0 <- dy in {0,1}, p=1 <- dy=2
    dtype=np.float32)                      # shape (a, p, dy)


def make_phase_weights(w_hwio):
    """(3,3,Cin,Cout) HWIO -> (2,2,4*Cin,Cout) bf16 phase-combined weights."""
    cin, cout = w_hwio.shape[2], w_hwio.shape[3]
    r = jnp.asarray(_PHASE_TAPS)
    wp = jnp.einsum("apy,bqx,yxio->abpqio", r, r, w_hwio)   # (2,2,2,2,Cin,Cout)
    # Flatten (p, q, Cin) row-major -> matches the kernel's window concat order.
    return wp.reshape(2, 2, 4 * cin, cout).astype(jnp.bfloat16)


# ----------------------------------------------------------------------------
# Kernels
# ----------------------------------------------------------------------------
def dense_relu_kernel(x_ref, w_ref, b_ref, o_ref):
    # x: (B, nz) bf16, w: (nz, TN) bf16, b: (1, TN) f32, o: (B, TN) bf16
    y = jnp.dot(x_ref[...], w_ref[...], preferred_element_type=jnp.float32)
    y = jnp.maximum(y + b_ref[...], 0.0)
    o_ref[...] = y.astype(o_ref.dtype)


def upconv3x3_kernel(x_ref, wp_ref, b_ref, o_ref, *, H, W, slope):
    # x_ref : (1, H+2, W+2, Cin) bf16  -- pre-upsample input, zero-padded by 1
    # wp_ref: (2, 2, 4*Cin, Cout) bf16 -- phase-combined weights
    # b_ref : (1, Cout) f32
    # o_ref : (1, H, 2, W, 2*Cout)     -- (i, a, j, (b, c)); wrapper reshape is free
    cin = x_ref.shape[3]
    cout = b_ref.shape[1]

    xp = x_ref[0]          # (H+2, W+2, Cin) in VMEM
    bias = b_ref[...]      # (1, Cout) f32

    for a in (0, 1):
        phases = []
        for b in (0, 1):
            # 2x2 "im2col": the four shifted windows, concatenated along channels.
            win = [xp[a + p:a + p + H, b + q:b + q + W, :]
                   for p in (0, 1) for q in (0, 1)]          # 4 x (H, W, Cin)
            op = jnp.concatenate(win, axis=-1)               # (H, W, 4*Cin)
            op = op.reshape(H * W, 4 * cin)
            acc = jnp.dot(op, wp_ref[a, b],
                          preferred_element_type=jnp.float32)  # (H*W, Cout) f32
            acc = acc + bias
            if slope is not None:
                acc = jnp.where(acc > 0, acc, slope * acc)
            phases.append(acc.reshape(H, W, cout).astype(o_ref.dtype))
        # Column phases packed along lanes; row phase a indexed on a major dim.
        o_ref[0, :, a, :, :] = jnp.concatenate(phases, axis=-1)  # (H, W, 2*Cout)


# ----------------------------------------------------------------------------
# Pallas wrappers
# ----------------------------------------------------------------------------
_VMEM_LIMIT = 32 * 1024 * 1024  # explicit; safe on v5e/v6e (128 MiB) and v7x (64 MiB)


def _pick_col_tile(f):
    for t in (1024, 512, 256, 128):
        if f % t == 0:
            return t
    return f


def dense_relu(x, w, b):
    B, nz = x.shape
    F = w.shape[1]
    tn = _pick_col_tile(F)
    ce = pl.CostEstimate(flops=2 * B * nz * F, transcendentals=0,
                         bytes_accessed=B * nz * 2 + nz * F * 2 + F * 4 + B * F * 2)
    return pl.pallas_call(
        dense_relu_kernel,
        out_shape=jax.ShapeDtypeStruct((B, F), jnp.bfloat16),
        grid=(F // tn,),
        in_specs=[
            pl.BlockSpec((B, nz), lambda j: (0, 0)),
            pl.BlockSpec((nz, tn), lambda j: (0, j)),
            pl.BlockSpec((1, tn), lambda j: (0, j)),
        ],
        out_specs=pl.BlockSpec((B, tn), lambda j: (0, j)),
        compiler_params=pltpu.CompilerParams(
            dimension_semantics=("parallel",),
            vmem_limit_bytes=_VMEM_LIMIT),
        cost_estimate=ce,
    )(x.astype(jnp.bfloat16), w.astype(jnp.bfloat16),
      b.reshape(1, F).astype(jnp.float32))


def upconv3x3(x_nhwc, wp, bias, slope, out_dtype):
    """Fused nearest-2x upsample + 3x3 conv (+ optional LeakyReLU)."""
    B, H, W, cin = x_nhwc.shape
    cout = wp.shape[-1]
    # Zero-pad the SMALL pre-upsample input once (the upsampled tensor is never built).
    xpad = jnp.pad(x_nhwc.astype(jnp.bfloat16), ((0, 0), (1, 1), (1, 1), (0, 0)))

    out_isize = jnp.dtype(out_dtype).itemsize
    ce = pl.CostEstimate(
        flops=32 * B * H * W * cin * cout,
        transcendentals=0,
        bytes_accessed=(B * (H + 2) * (W + 2) * cin * 2
                        + 16 * cin * cout * 2 + cout * 4
                        + B * 4 * H * W * cout * out_isize))

    kern = functools.partial(upconv3x3_kernel, H=H, W=W, slope=slope)
    out = pl.pallas_call(
        kern,
        out_shape=jax.ShapeDtypeStruct((B, H, 2, W, 2 * cout), out_dtype),
        grid=(B,),
        in_specs=[
            pl.BlockSpec((1, H + 2, W + 2, cin), lambda bb: (bb, 0, 0, 0)),
            pl.BlockSpec((2, 2, 4 * cin, cout), lambda bb: (0, 0, 0, 0)),
            pl.BlockSpec((1, cout), lambda bb: (0, 0)),
        ],
        out_specs=pl.BlockSpec((1, H, 2, W, 2 * cout),
                               lambda bb: (bb, 0, 0, 0, 0)),
        compiler_params=pltpu.CompilerParams(
            dimension_semantics=("parallel",),
            vmem_limit_bytes=_VMEM_LIMIT),
        cost_estimate=ce,
    )(xpad, wp, bias.reshape(1, cout).astype(jnp.float32))
    # Free row-major reshape: (B, H, 2, W, 2*Cout) -> (B, 2H, 2W, Cout)
    return out.reshape(B, 2 * H, 2 * W, cout)


# ----------------------------------------------------------------------------
# Decoder module
# ----------------------------------------------------------------------------
def init_decoder_params(key, nc, ndf, nz, isize):
    out_size = isize // 16
    F = ndf * 8 * out_size * out_size
    keys = jax.random.split(key, 10)

    def uni(k, shape, fan_in):
        bound = 1.0 / np.sqrt(fan_in)
        return jax.random.uniform(k, shape, jnp.float32, -bound, bound)

    params = {
        "dense_w": uni(keys[0], (nz, F), nz),   # columns ordered (c, h, w) like PyTorch view
        "dense_b": uni(keys[1], (F,), nz),
    }
    conv_channels = [(ndf * 8, ndf * 4), (ndf * 4, ndf * 2), (ndf * 2, ndf), (ndf, nc)]
    for i, (cin, cout) in enumerate(conv_channels):
        fan_in = cin * 9
        # weight stored HWIO = (3, 3, Cin, Cout); PyTorch layout is (Cout, Cin, 3, 3)
        params[f"conv{i}_w"] = uni(keys[2 + 2 * i], (3, 3, cin, cout), fan_in)
        params[f"conv{i}_b"] = uni(keys[3 + 2 * i], (cout,), fan_in)
    return params


def decoder_forward(params, z, *, nc, ndf, nz, isize):
    B = z.shape[0]
    os_ = isize // 16
    c8 = ndf * 8
    F = c8 * os_ * os_

    # Permute the dense weight columns (weight-side, free) so the dense output
    # reshapes directly to NHWC: no activation transpose after the dense layer.
    w_nhwc = params["dense_w"].reshape(nz, c8, os_, os_).transpose(0, 2, 3, 1).reshape(nz, F)
    b_nhwc = params["dense_b"].reshape(c8, os_, os_).transpose(1, 2, 0).reshape(F)

    h = dense_relu(z, w_nhwc, b_nhwc)          # (B, F) bf16
    h = h.reshape(B, os_, os_, c8)             # NHWC, free reshape

    slopes = [0.2, 0.2, 0.2, None]             # last conv: no activation
    for i in range(4):
        wp = make_phase_weights(params[f"conv{i}_w"])
        out_dtype = jnp.float32 if i == 3 else jnp.bfloat16
        h = upconv3x3(h, wp, params[f"conv{i}_b"], slopes[i], out_dtype)

    # Return NCHW to match the PyTorch module's output convention.
    return jnp.transpose(h, (0, 3, 1, 2)).astype(jnp.float32)


# ----------------------------------------------------------------------------
# Pure-JAX f32 reference (independent of the phase decomposition)
# ----------------------------------------------------------------------------
def decoder_reference(params, z, *, nc, ndf, nz, isize):
    B = z.shape[0]
    os_ = isize // 16
    h = jnp.maximum(z @ params["dense_w"] + params["dense_b"], 0.0)
    h = h.reshape(B, ndf * 8, os_, os_)
    slopes = [0.2, 0.2, 0.2, None]
    for i in range(4):
        h = jnp.repeat(jnp.repeat(h, 2, axis=2), 2, axis=3)
        w = jnp.transpose(params[f"conv{i}_w"], (3, 2, 0, 1))  # HWIO -> OIHW
        h = lax.conv_general_dilated(
            h, w, window_strides=(1, 1), padding=((1, 1), (1, 1)),
            dimension_numbers=("NCHW", "OIHW", "NCHW"))
        h = h + params[f"conv{i}_b"].reshape(1, -1, 1, 1)
        if slopes[i] is not None:
            h = jnp.where(h > 0, h, slopes[i] * h)
    return h


# ----------------------------------------------------------------------------
if __name__ == "__main__":
    # Small config: nc=4, ndf=8, nz=16, isize=16 -> out_size = 1
    nc, ndf, nz, isize = 4, 8, 16, 16
    B = 2

    key = jax.random.PRNGKey(0)
    pkey, zkey = jax.random.split(key)
    params = init_decoder_params(pkey, nc, ndf, nz, isize)
    z = jax.random.normal(zkey, (B, nz), jnp.float32)

    fwd = jax.jit(functools.partial(decoder_forward, nc=nc, ndf=ndf, nz=nz, isize=isize))
    out = jax.block_until_ready(fwd(params, z))

    ref = decoder_reference(params, z, nc=nc, ndf=ndf, nz=nz, isize=isize)
    assert out.shape == (B, nc, isize, isize), out.shape
    # Tolerance sized for bf16 activations/weights vs. the f32 reference.
    np.testing.assert_allclose(np.asarray(out), np.asarray(ref), rtol=5e-2, atol=5e-2)

    print("KERNEL_OK")
</pallas_src>

<mosaic_0001>
module attributes {stable_mosaic.version = 11 : i64} {
  func.func @dense_relu_kernel(%arg0: i32, %arg1: memref<2x16xbf16, #tpu.memory_space<vmem>>, %arg2: memref<16x64xbf16, #tpu.memory_space<vmem>>, %arg3: memref<1x64xf32, #tpu.memory_space<vmem>>, %arg4: memref<2x64xbf16, #tpu.memory_space<vmem>>) attributes {dimension_semantics = [#tpu.dimension_semantics<parallel>], iteration_bounds = array<i64: 1>, scalar_prefetch = 0 : i64, scratch_operands = 0 : i64, tpu.core_type = #tpu.core_type<tc>, window_params = [{pipeline_mode = #tpu.pipeline_mode<synchronous>, transform_indices = @transform_0, window_bounds = array<i64: 2, 16>}, {transform_indices = @transform_1, window_bounds = array<i64: 16, 64>}, {transform_indices = @transform_2, window_bounds = array<i64: 1, 64>}, {transform_indices = @transform_3, window_bounds = array<i64: 2, 64>}]} {
    %c0 = arith.constant 0 : index
    %c0_0 = arith.constant 0 : index
    %0 = vector.load %arg1[%c0, %c0_0] : memref<2x16xbf16, #tpu.memory_space<vmem>>, vector<2x16xbf16>
    %c0_1 = arith.constant 0 : index
    %c0_2 = arith.constant 0 : index
    %1 = vector.load %arg2[%c0_1, %c0_2] : memref<16x64xbf16, #tpu.memory_space<vmem>>, vector<16x64xbf16>
    %cst = arith.constant dense<0.000000e+00> : vector<2x64xf32>
    %2 = tpu.matmul %0, %1, %cst {dimension_numbers = #tpu.dot_dimension_numbers<[1], [0], [0], [1], [0, 0, 1, 1], [], []>} : vector<2x16xbf16>, vector<16x64xbf16>, vector<2x64xf32> -> vector<2x64xf32>
    %c0_3 = arith.constant 0 : index
    %c0_4 = arith.constant 0 : index
    %3 = vector.load %arg3[%c0_3, %c0_4] : memref<1x64xf32, #tpu.memory_space<vmem>>, vector<1x64xf32>
    %4 = vector.broadcast %3 : vector<1x64xf32> to vector<2x64xf32>
    %5 = arith.addf %2, %4 : vector<2x64xf32>
    %cst_5 = arith.constant 0.000000e+00 : f32
    %6 = vector.broadcast %cst_5 : f32 to vector<2x64xf32>
    %7 = arith.maximumf %5, %6 : vector<2x64xf32>
    %8 = arith.truncf %7 : vector<2x64xf32> to vector<2x64xbf16>
    %c0_6 = arith.constant 0 : index
    %c0_7 = arith.constant 0 : index
    %9 = vector.load %arg4[%c0_6, %c0_7] : memref<2x64xbf16, #tpu.memory_space<vmem>>, vector<2x64xbf16>
    tpu.vector_store %arg4[%c0_6, %c0_7], %8 {strides = array<i32>} : memref<2x64xbf16, #tpu.memory_space<vmem>>, vector<2x64xbf16>,
    return
  }
  func.func @transform_0(%arg0: i32) -> (i32, i32) {
    %c0_i32 = arith.constant 0 : i32
    %c0_i32_0 = arith.constant 0 : i32
    %c0_i32_1 = arith.constant 0 : i32
    return %c0_i32, %c0_i32_0 : i32, i32
  }
  func.func @transform_1(%arg0: i32) -> (i32, i32) {
    %c0_i32 = arith.constant 0 : i32
    %c0_i32_0 = arith.constant 0 : i32
    return %c0_i32, %arg0 : i32, i32
  }
  func.func @transform_2(%arg0: i32) -> (i32, i32) {
    %c0_i32 = arith.constant 0 : i32
    %c0_i32_0 = arith.constant 0 : i32
    return %c0_i32, %arg0 : i32, i32
  }
  func.func @transform_3(%arg0: i32) -> (i32, i32) {
    %c0_i32 = arith.constant 0 : i32
    %c0_i32_0 = arith.constant 0 : i32
    return %c0_i32, %arg0 : i32, i32
  }
}

module attributes {stable_mosaic.version = 11 : i64} {
  func.func @upconv3x3_kernel(%arg0: i32, %arg1: memref<1x3x3x64xbf16, #tpu.memory_space<vmem>>, %arg2: memref<2x2x256x32xbf16, #tpu.memory_space<vmem>>, %arg3: memref<1x32xf32, #tpu.memory_space<vmem>>, %arg4: memref<1x1x2x1x64xbf16, #tpu.memory_space<vmem>>) attributes {dimension_semantics = [#tpu.dimension_semantics<parallel>], iteration_bounds = array<i64: 2>, scalar_prefetch = 0 : i64, scratch_operands = 0 : i64, tpu.core_type = #tpu.core_type<tc>, window_params = [{transform_indices = @transform_0, window_bounds = array<i64: 1, 3, 3, 64>}, {pipeline_mode = #tpu.pipeline_mode<synchronous>, transform_indices = @transform_1, window_bounds = array<i64: 2, 2, 256, 32>}, {pipeline_mode = #tpu.pipeline_mode<synchronous>, transform_indices = @transform_2, window_bounds = array<i64: 1, 32>}, {transform_indices = @transform_3, window_bounds = array<i64: 1, 1, 2, 1, 64>}]} {
    %c0 = arith.constant 0 : index
    %c0_0 = arith.constant 0 : index
    %c0_1 = arith.constant 0 : index
    %c0_2 = arith.constant 0 : index
    %0 = vector.load %arg1[%c0, %c0_0, %c0_1, %c0_2] : memref<1x3x3x64xbf16, #tpu.memory_space<vmem>>, vector<1x3x3x64xbf16>
    %1 = vector.shape_cast %0 : vector<1x3x3x64xbf16> to vector<3x3x64xbf16>
    %c0_3 = arith.constant 0 : index
    %c0_4 = arith.constant 0 : index
    %2 = vector.load %arg3[%c0_3, %c0_4] : memref<1x32xf32, #tpu.memory_space<vmem>>, vector<1x32xf32>
    %3 = vector.extract_strided_slice %1 {offsets = [0, 0, 0], sizes = [1, 1, 64], strides = [1, 1, 1]} : vector<3x3x64xbf16> to vector<1x1x64xbf16>
    %4 = vector.extract_strided_slice %1 {offsets = [0, 1, 0], sizes = [1, 1, 64], strides = [1, 1, 1]} : vector<3x3x64xbf16> to vector<1x1x64xbf16>
    %5 = vector.extract_strided_slice %1 {offsets = [1, 0, 0], sizes = [1, 1, 64], strides = [1, 1, 1]} : vector<3x3x64xbf16> to vector<1x1x64xbf16>
    %6 = vector.extract_strided_slice %1 {offsets = [1, 1, 0], sizes = [1, 1, 64], strides = [1, 1, 1]} : vector<3x3x64xbf16> to vector<1x1x64xbf16>
    %7 = tpu.concatenate %3, %4, %5, %6 in 2 : vector<1x1x64xbf16>, vector<1x1x64xbf16>, vector<1x1x64xbf16>, vector<1x1x64xbf16> -> vector<1x1x256xbf16>
    %8 = vector.shape_cast %7 : vector<1x1x256xbf16> to vector<1x256xbf16>
    %c0_5 = arith.constant 0 : index
    %c0_6 = arith.constant 0 : index
    %c0_7 = arith.constant 0 : index
    %c0_8 = arith.constant 0 : index
    %9 = vector.load %arg2[%c0_5, %c0_6, %c0_7, %c0_8] : memref<2x2x256x32xbf16, #tpu.memory_space<vmem>>, vector<1x1x256x32xbf16>
    %10 = vector.shape_cast %9 : vector<1x1x256x32xbf16> to vector<256x32xbf16>
    %cst = arith.constant dense<0.000000e+00> : vector<1x32xf32>
    %11 = tpu.matmul %8, %10, %cst {dimension_numbers = #tpu.dot_dimension_numbers<[1], [0], [0], [1], [0, 0, 1, 1], [], []>} : vector<1x256xbf16>, vector<256x32xbf16>, vector<1x32xf32> -> vector<1x32xf32>
    %12 = arith.addf %11, %2 : vector<1x32xf32>
    %cst_9 = arith.constant 0.000000e+00 : f32
    %13 = vector.broadcast %cst_9 : f32 to vector<1x32xf32>
    %14 = arith.cmpf ogt, %12, %13 : vector<1x32xf32>
    %cst_10 = arith.constant 2.000000e-01 : f32
    %15 = vector.broadcast %cst_10 : f32 to vector<1x32xf32>
    %16 = arith.mulf %15, %12 : vector<1x32xf32>
    %17 = arith.select %14, %12, %16 : vector<1x32xi1>, vector<1x32xf32>
    %18 = vector.shape_cast %17 : vector<1x32xf32> to vector<1x1x32xf32>
    %19 = arith.truncf %18 : vector<1x1x32xf32> to vector<1x1x32xbf16>
    %20 = vector.extract_strided_slice %1 {offsets = [0, 1, 0], sizes = [1, 1, 64], strides = [1, 1, 1]} : vector<3x3x64xbf16> to vector<1x1x64xbf16>
    %21 = vector.extract_strided_slice %1 {offsets = [0, 2, 0], sizes = [1, 1, 64], strides = [1, 1, 1]} : vector<3x3x64xbf16> to vector<1x1x64xbf16>
    %22 = vector.extract_strided_slice %1 {offsets = [1, 1, 0], sizes = [1, 1, 64], strides = [1, 1, 1]} : vector<3x3x64xbf16> to vector<1x1x64xbf16>
    %23 = vector.extract_strided_slice %1 {offsets = [1, 2, 0], sizes = [1, 1, 64], strides = [1, 1, 1]} : vector<3x3x64xbf16> to vector<1x1x64xbf16>
    %24 = tpu.concatenate %20, %21, %22, %23 in 2 : vector<1x1x64xbf16>, vector<1x1x64xbf16>, vector<1x1x64xbf16>, vector<1x1x64xbf16> -> vector<1x1x256xbf16>
    %25 = vector.shape_cast %24 : vector<1x1x256xbf16> to vector<1x256xbf16>
    %c0_11 = arith.constant 0 : index
    %c1 = arith.constant 1 : index
    %c0_12 = arith.constant 0 : index
    %c0_13 = arith.constant 0 : index
    %26 = vector.load %arg2[%c0_11, %c1, %c0_12, %c0_13] : memref<2x2x256x32xbf16, #tpu.memory_space<vmem>>, vector<1x1x256x32xbf16>
    %27 = vector.shape_cast %26 : vector<1x1x256x32xbf16> to vector<256x32xbf16>
    %cst_14 = arith.constant dense<0.000000e+00> : vector<1x32xf32>
    %28 = tpu.matmul %25, %27, %cst_14 {dimension_numbers = #tpu.dot_dimension_numbers<[1], [0], [0], [1], [0, 0, 1, 1], [], []>} : vector<1x256xbf16>, vector<256x32xbf16>, vector<1x32xf32> -> vector<1x32xf32>
    %29 = arith.addf %28, %2 : vector<1x32xf32>
    %cst_15 = arith.constant 0.000000e+00 : f32
    %30 = vector.broadcast %cst_15 : f32 to vector<1x32xf32>
    %31 = arith.cmpf ogt, %29, %30 : vector<1x32xf32>
    %cst_16 = arith.constant 2.000000e-01 : f32
    %32 = vector.broadcast %cst_16 : f32 to vector<1x32xf32>
    %33 = arith.mulf %32, %29 : vector<1x32xf32>
    %34 = arith.select %31, %29, %33 : vector<1x32xi1>, vector<1x32xf32>
    %35 = vector.shape_cast %34 : vector<1x32xf32> to vector<1x1x32xf32>
    %36 = arith.truncf %35 : vector<1x1x32xf32> to vector<1x1x32xbf16>
    %37 = tpu.concatenate %19, %36 in 2 : vector<1x1x32xbf16>, vector<1x1x32xbf16> -> vector<1x1x64xbf16>
    %c0_17 = arith.constant 0 : index
    %c0_18 = arith.constant 0 : index
    %c0_19 = arith.constant 0 : index
    %c0_20 = arith.constant 0 : index
    %c0_21 = arith.constant 0 : index
    %38 = vector.load %arg4[%c0_17, %c0_18, %c0_19, %c0_20, %c0_21] : memref<1x1x2x1x64xbf16, #tpu.memory_space<vmem>>, vector<1x1x1x1x64xbf16>
    %39 = vector.shape_cast %38 : vector<1x1x1x1x64xbf16> to vector<1x1x64xbf16>
    %40 = vector.shape_cast %37 : vector<1x1x64xbf16> to vector<1x1x1x1x64xbf16>
    tpu.vector_store %arg4[%c0_17, %c0_18, %c0_19, %c0_20, %c0_21], %40 {strides = array<i32>} : memref<1x1x2x1x64xbf16, #tpu.memory_space<vmem>>, vector<1x1x1x1x64xbf16>,
    %41 = vector.extract_strided_slice %1 {offsets = [1, 0, 0], sizes = [1, 1, 64], strides = [1, 1, 1]} : vector<3x3x64xbf16> to vector<1x1x64xbf16>
    %42 = vector.extract_strided_slice %1 {offsets = [1, 1, 0], sizes = [1, 1, 64], strides = [1, 1, 1]} : vector<3x3x64xbf16> to vector<1x1x64xbf16>
    %43 = vector.extract_strided_slice %1 {offsets = [2, 0, 0], sizes = [1, 1, 64], strides = [1, 1, 1]} : vector<3x3x64xbf16> to vector<1x1x64xbf16>
    %44 = vector.extract_strided_slice %1 {offsets = [2, 1, 0], sizes = [1, 1, 64], strides = [1, 1, 1]} : vector<3x3x64xbf16> to vector<1x1x64xbf16>
    %45 = tpu.concatenate %41, %42, %43, %44 in 2 : vector<1x1x64xbf16>, vector<1x1x64xbf16>, vector<1x1x64xbf16>, vector<1x1x64xbf16> -> vector<1x1x256xbf16>
    %46 = vector.shape_cast %45 : vector<1x1x256xbf16> to vector<1x256xbf16>
    %c1_22 = arith.constant 1 : index
    %c0_23 = arith.constant 0 : index
    %c0_24 = arith.constant 0 : index
    %c0_25 = arith.constant 0 : index
    %47 = vector.load %arg2[%c1_22, %c0_23, %c0_24, %c0_25] : memref<2x2x256x32xbf16, #tpu.memory_space<vmem>>, vector<1x1x256x32xbf16>
    %48 = vector.shape_cast %47 : vector<1x1x256x32xbf16> to vector<256x32xbf16>
    %cst_26 = arith.constant dense<0.000000e+00> : vector<1x32xf32>
    %49 = tpu.matmul %46, %48, %cst_26 {dimension_numbers = #tpu.dot_dimension_numbers<[1], [0], [0], [1], [0, 0, 1, 1], [], []>} : vector<1x256xbf16>, vector<256x32xbf16>, vector<1x32xf32> -> vector<1x32xf32>
    %50 = arith.addf %49, %2 : vector<1x32xf32>
    %cst_27 = arith.constant 0.000000e+00 : f32
    %51 = vector.broadcast %cst_27 : f32 to vector<1x32xf32>
    %52 = arith.cmpf ogt, %50, %51 : vector<1x32xf32>
    %cst_28 = arith.constant 2.000000e-01 : f32
    %53 = vector.broadcast %cst_28 : f32 to vector<1x32xf32>
    %54 = arith.mulf %53, %50 : vector<1x32xf32>
    %55 = arith.select %52, %50, %54 : vector<1x32xi1>, vector<1x32xf32>
    %56 = vector.shape_cast %55 : vector<1x32xf32> to vector<1x1x32xf32>
    %57 = arith.truncf %56 : vector<1x1x32xf32> to vector<1x1x32xbf16>
    %58 = vector.extract_strided_slice %1 {offsets = [1, 1, 0], sizes = [1, 1, 64], strides = [1, 1, 1]} : vector<3x3x64xbf16> to vector<1x1x64xbf16>
    %59 = vector.extract_strided_slice %1 {offsets = [1, 2, 0], sizes = [1, 1, 64], strides = [1, 1, 1]} : vector<3x3x64xbf16> to vector<1x1x64xbf16>
    %60 = vector.extract_strided_slice %1 {offsets = [2, 1, 0], sizes = [1, 1, 64], strides = [1, 1, 1]} : vector<3x3x64xbf16> to vector<1x1x64xbf16>
    %61 = vector.extract_strided_slice %1 {offsets = [2, 2, 0], sizes = [1, 1, 64], strides = [1, 1, 1]} : vector<3x3x64xbf16> to vector<1x1x64xbf16>
    %62 = tpu.concatenate %58, %59, %60, %61 in 2 : vector<1x1x64xbf16>, vector<1x1x64xbf16>, vector<1x1x64xbf16>, vector<1x1x64xbf16> -> vector<1x1x256xbf16>
    %63 = vector.shape_cast %62 : vector<1x1x256xbf16> to vector<1x256xbf16>
    %c1_29 = arith.constant 1 : index
    %c1_30 = arith.constant 1 : index
    %c0_31 = arith.constant 0 : index
    %c0_32 = arith.constant 0 : index
    %64 = vector.load %arg2[%c1_29, %c1_30, %c0_31, %c0_32] : memref<2x2x256x32xbf16, #tpu.memory_space<vmem>>, vector<1x1x256x32xbf16>
    %65 = vector.shape_cast %64 : vector<1x1x256x32xbf16> to vector<256x32xbf16>
    %cst_33 = arith.constant dense<0.000000e+00> : vector<1x32xf32>
    %66 = tpu.matmul %63, %65, %cst_33 {dimension_numbers = #tpu.dot_dimension_numbers<[1], [0], [0], [1], [0, 0, 1, 1], [], []>} : vector<1x256xbf16>, vector<256x32xbf16>, vector<1x32xf32> -> vector<1x32xf32>
    %67 = arith.addf %66, %2 : vector<1x32xf32>
    %cst_34 = arith.constant 0.000000e+00 : f32
    %68 = vector.broadcast %cst_34 : f32 to vector<1x32xf32>
    %69 = arith.cmpf ogt, %67, %68 : vector<1x32xf32>
    %cst_35 = arith.constant 2.000000e-01 : f32
    %70 = vector.broadcast %cst_35 : f32 to vector<1x32xf32>
    %71 = arith.mulf %70, %67 : vector<1x32xf32>
    %72 = arith.select %69, %67, %71 : vector<1x32xi1>, vector<1x32xf32>
    %73 = vector.shape_cast %72 : vector<1x32xf32> to vector<1x1x32xf32>
    %74 = arith.truncf %73 : vector<1x1x32xf32> to vector<1x1x32xbf16>
    %75 = tpu.concatenate %57, %74 in 2 : vector<1x1x32xbf16>, vector<1x1x32xbf16> -> vector<1x1x64xbf16>
    %c0_36 = arith.constant 0 : index
    %c0_37 = arith.constant 0 : index
    %c1_38 = arith.constant 1 : index
    %c0_39 = arith.constant 0 : index
    %c0_40 = arith.constant 0 : index
    %76 = vector.load %arg4[%c0_36, %c0_37, %c1_38, %c0_39, %c0_40] : memref<1x1x2x1x64xbf16, #tpu.memory_space<vmem>>, vector<1x1x1x1x64xbf16>
    %77 = vector.shape_cast %76 : vector<1x1x1x1x64xbf16> to vector<1x1x64xbf16>
    %78 = vector.shape_cast %75 : vector<1x1x64xbf16> to vector<1x1x1x1x64xbf16>
    tpu.vector_store %arg4[%c0_36, %c0_37, %c1_38, %c0_39, %c0_40], %78 {strides = array<i32>} : memref<1x1x2x1x64xbf16, #tpu.memory_space<vmem>>, vector<1x1x1x1x64xbf16>,
    return
  }
  func.func @transform_0(%arg0: i32) -> (i32, i32, i32, i32) {
    %c0_i32 = arith.constant 0 : i32
    %c0_i32_0 = arith.constant 0 : i32
    %c0_i32_1 = arith.constant 0 : i32
    %c0_i32_2 = arith.constant 0 : i32
    return %arg0, %c0_i32, %c0_i32_0, %c0_i32_1 : i32, i32, i32, i32
  }
  func.func @transform_1(%arg0: i32) -> (i32, i32, i32, i32) {
    %c0_i32 = arith.constant 0 : i32
    %c0_i32_0 = arith.constant 0 : i32
    %c0_i32_1 = arith.constant 0 : i32
    %c0_i32_2 = arith.constant 0 : i32
    %c0_i32_3 = arith.constant 0 : i32
    return %c0_i32, %c0_i32_0, %c0_i32_1, %c0_i32_2 : i32, i32, i32, i32
  }
  func.func @transform_2(%arg0: i32) -> (i32, i32) {
    %c0_i32 = arith.constant 0 : i32
    %c0_i32_0 = arith.constant 0 : i32
    %c0_i32_1 = arith.constant 0 : i32
    return %c0_i32, %c0_i32_0 : i32, i32
  }
  func.func @transform_3(%arg0: i32) -> (i32, i32, i32, i32, i32) {
    %c0_i32 = arith.constant 0 : i32
    %c0_i32_0 = arith.constant 0 : i32
    %c0_i32_1 = arith.constant 0 : i32
    %c0_i32_2 = arith.constant 0 : i32
    %c0_i32_3 = arith.constant 0 : i32
    return %arg0, %c0_i32, %c0_i32_0, %c0_i32_1, %c0_i32_2 : i32, i32, i32, i32, i32
  }
}

module attributes {stable_mosaic.version = 11 : i64} {
  func.func @upconv3x3_kernel(%arg0: i32, %arg1: memref<1x4x4x32xbf16, #tpu.memory_space<vmem>>, %arg2: memref<2x2x128x16xbf16, #tpu.memory_space<vmem>>, %arg3: memref<1x16xf32, #tpu.memory_space<vmem>>, %arg4: memref<1x2x2x2x32xbf16, #tpu.memory_space<vmem>>) attributes {dimension_semantics = [#tpu.dimension_semantics<parallel>], iteration_bounds = array<i64: 2>, scalar_prefetch = 0 : i64, scratch_operands = 0 : i64, tpu.core_type = #tpu.core_type<tc>, window_params = [{transform_indices = @transform_0, window_bounds = array<i64: 1, 4, 4, 32>}, {pipeline_mode = #tpu.pipeline_mode<synchronous>, transform_indices = @transform_1, window_bounds = array<i64: 2, 2, 128, 16>}, {pipeline_mode = #tpu.pipeline_mode<synchronous>, transform_indices = @transform_2, window_bounds = array<i64: 1, 16>}, {transform_indices = @transform_3, window_bounds = array<i64: 1, 2, 2, 2, 32>}]} {
    %c0 = arith.constant 0 : index
    %c0_0 = arith.constant 0 : index
    %c0_1 = arith.constant 0 : index
    %c0_2 = arith.constant 0 : index
    %0 = vector.load %arg1[%c0, %c0_0, %c0_1, %c0_2] : memref<1x4x4x32xbf16, #tpu.memory_space<vmem>>, vector<1x4x4x32xbf16>
    %1 = vector.shape_cast %0 : vector<1x4x4x32xbf16> to vector<4x4x32xbf16>
    %c0_3 = arith.constant 0 : index
    %c0_4 = arith.constant 0 : index
    %2 = vector.load %arg3[%c0_3, %c0_4] : memref<1x16xf32, #tpu.memory_space<vmem>>, vector<1x16xf32>
    %3 = vector.extract_strided_slice %1 {offsets = [0, 0, 0], sizes = [2, 2, 32], strides = [1, 1, 1]} : vector<4x4x32xbf16> to vector<2x2x32xbf16>
    %4 = vector.extract_strided_slice %1 {offsets = [0, 1, 0], sizes = [2, 2, 32], strides = [1, 1, 1]} : vector<4x4x32xbf16> to vector<2x2x32xbf16>
    %5 = vector.extract_strided_slice %1 {offsets = [1, 0, 0], sizes = [2, 2, 32], strides = [1, 1, 1]} : vector<4x4x32xbf16> to vector<2x2x32xbf16>
    %6 = vector.extract_strided_slice %1 {offsets = [1, 1, 0], sizes = [2, 2, 32], strides = [1, 1, 1]} : vector<4x4x32xbf16> to vector<2x2x32xbf16>
    %7 = tpu.concatenate %3, %4, %5, %6 in 2 : vector<2x2x32xbf16>, vector<2x2x32xbf16>, vector<2x2x32xbf16>, vector<2x2x32xbf16> -> vector<2x2x128xbf16>
    %8 = vector.shape_cast %7 : vector<2x2x128xbf16> to vector<4x128xbf16>
    %c0_5 = arith.constant 0 : index
    %c0_6 = arith.constant 0 : index
    %c0_7 = arith.constant 0 : index
    %c0_8 = arith.constant 0 : index
    %9 = vector.load %arg2[%c0_5, %c0_6, %c0_7, %c0_8] : memref<2x2x128x16xbf16, #tpu.memory_space<vmem>>, vector<1x1x128x16xbf16>
    %10 = vector.shape_cast %9 : vector<1x1x128x16xbf16> to vector<128x16xbf16>
    %cst = arith.constant dense<0.000000e+00> : vector<4x16xf32>
    %11 = tpu.matmul %8, %10, %cst {dimension_numbers = #tpu.dot_dimension_numbers<[1], [0], [0], [1], [0, 0, 1, 1], [], []>} : vector<4x128xbf16>, vector<128x16xbf16>, vector<4x16xf32> -> vector<4x16xf32>
    %12 = vector.broadcast %2 : vector<1x16xf32> to vector<4x16xf32>
    %13 = arith.addf %11, %12 : vector<4x16xf32>
    %cst_9 = arith.constant 0.000000e+00 : f32
    %14 = vector.broadcast %cst_9 : f32 to vector<4x16xf32>
    %15 = arith.cmpf ogt, %13, %14 : vector<4x16xf32>
    %cst_10 = arith.constant 2.000000e-01 : f32
    %16 = vector.broadcast %cst_10 : f32 to vector<4x16xf32>
    %17 = arith.mulf %16, %13 : vector<4x16xf32>
    %18 = arith.select %15, %13, %17 : vector<4x16xi1>, vector<4x16xf32>
    %19 = vector.shape_cast %18 : vector<4x16xf32> to vector<2x2x16xf32>
    %20 = arith.truncf %19 : vector<2x2x16xf32> to vector<2x2x16xbf16>
    %21 = vector.extract_strided_slice %1 {offsets = [0, 1, 0], sizes = [2, 2, 32], strides = [1, 1, 1]} : vector<4x4x32xbf16> to vector<2x2x32xbf16>
    %22 = vector.extract_strided_slice %1 {offsets = [0, 2, 0], sizes = [2, 2, 32], strides = [1, 1, 1]} : vector<4x4x32xbf16> to vector<2x2x32xbf16>
    %23 = vector.extract_strided_slice %1 {offsets = [1, 1, 0], sizes = [2, 2, 32], strides = [1, 1, 1]} : vector<4x4x32xbf16> to vector<2x2x32xbf16>
    %24 = vector.extract_strided_slice %1 {offsets = [1, 2, 0], sizes = [2, 2, 32], strides = [1, 1, 1]} : vector<4x4x32xbf16> to vector<2x2x32xbf16>
    %25 = tpu.concatenate %21, %22, %23, %24 in 2 : vector<2x2x32xbf16>, vector<2x2x32xbf16>, vector<2x2x32xbf16>, vector<2x2x32xbf16> -> vector<2x2x128xbf16>
    %26 = vector.shape_cast %25 : vector<2x2x128xbf16> to vector<4x128xbf16>
    %c0_11 = arith.constant 0 : index
    %c1 = arith.constant 1 : index
    %c0_12 = arith.constant 0 : index
    %c0_13 = arith.constant 0 : index
    %27 = vector.load %arg2[%c0_11, %c1, %c0_12, %c0_13] : memref<2x2x128x16xbf16, #tpu.memory_space<vmem>>, vector<1x1x128x16xbf16>
    %28 = vector.shape_cast %27 : vector<1x1x128x16xbf16> to vector<128x16xbf16>
    %cst_14 = arith.constant dense<0.000000e+00> : vector<4x16xf32>
    %29 = tpu.matmul %26, %28, %cst_14 {dimension_numbers = #tpu.dot_dimension_numbers<[1], [0], [0], [1], [0, 0, 1, 1], [], []>} : vector<4x128xbf16>, vector<128x16xbf16>, vector<4x16xf32> -> vector<4x16xf32>
    %30 = vector.broadcast %2 : vector<1x16xf32> to vector<4x16xf32>
    %31 = arith.addf %29, %30 : vector<4x16xf32>
    %cst_15 = arith.constant 0.000000e+00 : f32
    %32 = vector.broadcast %cst_15 : f32 to vector<4x16xf32>
    %33 = arith.cmpf ogt, %31, %32 : vector<4x16xf32>
    %cst_16 = arith.constant 2.000000e-01 : f32
    %34 = vector.broadcast %cst_16 : f32 to vector<4x16xf32>
    %35 = arith.mulf %34, %31 : vector<4x16xf32>
    %36 = arith.select %33, %31, %35 : vector<4x16xi1>, vector<4x16xf32>
    %37 = vector.shape_cast %36 : vector<4x16xf32> to vector<2x2x16xf32>
    %38 = arith.truncf %37 : vector<2x2x16xf32> to vector<2x2x16xbf16>
    %39 = tpu.concatenate %20, %38 in 2 : vector<2x2x16xbf16>, vector<2x2x16xbf16> -> vector<2x2x32xbf16>
    %c0_17 = arith.constant 0 : index
    %c0_18 = arith.constant 0 : index
    %c0_19 = arith.constant 0 : index
    %c0_20 = arith.constant 0 : index
    %c0_21 = arith.constant 0 : index
    %40 = vector.load %arg4[%c0_17, %c0_18, %c0_19, %c0_20, %c0_21] : memref<1x2x2x2x32xbf16, #tpu.memory_space<vmem>>, vector<1x2x1x2x32xbf16>
    %41 = vector.shape_cast %40 : vector<1x2x1x2x32xbf16> to vector<2x2x32xbf16>
    %42 = vector.shape_cast %39 : vector<2x2x32xbf16> to vector<1x2x1x2x32xbf16>
    tpu.vector_store %arg4[%c0_17, %c0_18, %c0_19, %c0_20, %c0_21], %42 {strides = array<i32>} : memref<1x2x2x2x32xbf16, #tpu.memory_space<vmem>>, vector<1x2x1x2x32xbf16>,
    %43 = vector.extract_strided_slice %1 {offsets = [1, 0, 0], sizes = [2, 2, 32], strides = [1, 1, 1]} : vector<4x4x32xbf16> to vector<2x2x32xbf16>
    %44 = vector.extract_strided_slice %1 {offsets = [1, 1, 0], sizes = [2, 2, 32], strides = [1, 1, 1]} : vector<4x4x32xbf16> to vector<2x2x32xbf16>
    %45 = vector.extract_strided_slice %1 {offsets = [2, 0, 0], sizes = [2, 2, 32], strides = [1, 1, 1]} : vector<4x4x32xbf16> to vector<2x2x32xbf16>
    %46 = vector.extract_strided_slice %1 {offsets = [2, 1, 0], sizes = [2, 2, 32], strides = [1, 1, 1]} : vector<4x4x32xbf16> to vector<2x2x32xbf16>
    %47 = tpu.concatenate %43, %44, %45, %46 in 2 : vector<2x2x32xbf16>, vector<2x2x32xbf16>, vector<2x2x32xbf16>, vector<2x2x32xbf16> -> vector<2x2x128xbf16>
    %48 = vector.shape_cast %47 : vector<2x2x128xbf16> to vector<4x128xbf16>
    %c1_22 = arith.constant 1 : index
    %c0_23 = arith.constant 0 : index
    %c0_24 = arith.constant 0 : index
    %c0_25 = arith.constant 0 : index
    %49 = vector.load %arg2[%c1_22, %c0_23, %c0_24, %c0_25] : memref<2x2x128x16xbf16, #tpu.memory_space<vmem>>, vector<1x1x128x16xbf16>
    %50 = vector.shape_cast %49 : vector<1x1x128x16xbf16> to vector<128x16xbf16>
    %cst_26 = arith.constant dense<0.000000e+00> : vector<4x16xf32>
    %51 = tpu.matmul %48, %50, %cst_26 {dimension_numbers = #tpu.dot_dimension_numbers<[1], [0], [0], [1], [0, 0, 1, 1], [], []>} : vector<4x128xbf16>, vector<128x16xbf16>, vector<4x16xf32> -> vector<4x16xf32>
    %52 = vector.broadcast %2 : vector<1x16xf32> to vector<4x16xf32>
    %53 = arith.addf %51, %52 : vector<4x16xf32>
    %cst_27 = arith.constant 0.000000e+00 : f32
    %54 = vector.broadcast %cst_27 : f32 to vector<4x16xf32>
    %55 = arith.cmpf ogt, %53, %54 : vector<4x16xf32>
    %cst_28 = arith.constant 2.000000e-01 : f32
    %56 = vector.broadcast %cst_28 : f32 to vector<4x16xf32>
    %57 = arith.mulf %56, %53 : vector<4x16xf32>
    %58 = arith.select %55, %53, %57 : vector<4x16xi1>, vector<4x16xf32>
    %59 = vector.shape_cast %58 : vector<4x16xf32> to vector<2x2x16xf32>
    %60 = arith.truncf %59 : vector<2x2x16xf32> to vector<2x2x16xbf16>
    %61 = vector.extract_strided_slice %1 {offsets = [1, 1, 0], sizes = [2, 2, 32], strides = [1, 1, 1]} : vector<4x4x32xbf16> to vector<2x2x32xbf16>
    %62 = vector.extract_strided_slice %1 {offsets = [1, 2, 0], sizes = [2, 2, 32], strides = [1, 1, 1]} : vector<4x4x32xbf16> to vector<2x2x32xbf16>
    %63 = vector.extract_strided_slice %1 {offsets = [2, 1, 0], sizes = [2, 2, 32], strides = [1, 1, 1]} : vector<4x4x32xbf16> to vector<2x2x32xbf16>
    %64 = vector.extract_strided_slice %1 {offsets = [2, 2, 0], sizes = [2, 2, 32], strides = [1, 1, 1]} : vector<4x4x32xbf16> to vector<2x2x32xbf16>
    %65 = tpu.concatenate %61, %62, %63, %64 in 2 : vector<2x2x32xbf16>, vector<2x2x32xbf16>, vector<2x2x32xbf16>, vector<2x2x32xbf16> -> vector<2x2x128xbf16>
    %66 = vector.shape_cast %65 : vector<2x2x128xbf16> to vector<4x128xbf16>
    %c1_29 = arith.constant 1 : index
    %c1_30 = arith.constant 1 : index
    %c0_31 = arith.constant 0 : index
    %c0_32 = arith.constant 0 : index
    %67 = vector.load %arg2[%c1_29, %c1_30, %c0_31, %c0_32] : memref<2x2x128x16xbf16, #tpu.memory_space<vmem>>, vector<1x1x128x16xbf16>
    %68 = vector.shape_cast %67 : vector<1x1x128x16xbf16> to vector<128x16xbf16>
    %cst_33 = arith.constant dense<0.000000e+00> : vector<4x16xf32>
    %69 = tpu.matmul %66, %68, %cst_33 {dimension_numbers = #tpu.dot_dimension_numbers<[1], [0], [0], [1], [0, 0, 1, 1], [], []>} : vector<4x128xbf16>, vector<128x16xbf16>, vector<4x16xf32> -> vector<4x16xf32>
    %70 = vector.broadcast %2 : vector<1x16xf32> to vector<4x16xf32>
    %71 = arith.addf %69, %70 : vector<4x16xf32>
    %cst_34 = arith.constant 0.000000e+00 : f32
    %72 = vector.broadcast %cst_34 : f32 to vector<4x16xf32>
    %73 = arith.cmpf ogt, %71, %72 : vector<4x16xf32>
    %cst_35 = arith.constant 2.000000e-01 : f32
    %74 = vector.broadcast %cst_35 : f32 to vector<4x16xf32>
    %75 = arith.mulf %74, %71 : vector<4x16xf32>
    %76 = arith.select %73, %71, %75 : vector<4x16xi1>, vector<4x16xf32>
    %77 = vector.shape_cast %76 : vector<4x16xf32> to vector<2x2x16xf32>
    %78 = arith.truncf %77 : vector<2x2x16xf32> to vector<2x2x16xbf16>
    %79 = tpu.concatenate %60, %78 in 2 : vector<2x2x16xbf16>, vector<2x2x16xbf16> -> vector<2x2x32xbf16>
    %c0_36 = arith.constant 0 : index
    %c0_37 = arith.constant 0 : index
    %c1_38 = arith.constant 1 : index
    %c0_39 = arith.constant 0 : index
    %c0_40 = arith.constant 0 : index
    %80 = vector.load %arg4[%c0_36, %c0_37, %c1_38, %c0_39, %c0_40] : memref<1x2x2x2x32xbf16, #tpu.memory_space<vmem>>, vector<1x2x1x2x32xbf16>
    %81 = vector.shape_cast %80 : vector<1x2x1x2x32xbf16> to vector<2x2x32xbf16>
    %82 = vector.shape_cast %79 : vector<2x2x32xbf16> to vector<1x2x1x2x32xbf16>
    tpu.vector_store %arg4[%c0_36, %c0_37, %c1_38, %c0_39, %c0_40], %82 {strides = array<i32>} : memref<1x2x2x2x32xbf16, #tpu.memory_space<vmem>>, vector<1x2x1x2x32xbf16>,
    return
  }
  func.func @transform_0(%arg0: i32) -> (i32, i32, i32, i32) {
    %c0_i32 = arith.constant 0 : i32
    %c0_i32_0 = arith.constant 0 : i32
    %c0_i32_1 = arith.constant 0 : i32
    %c0_i32_2 = arith.constant 0 : i32
    return %arg0, %c0_i32, %c0_i32_0, %c0_i32_1 : i32, i32, i32, i32
  }
  func.func @transform_1(%arg0: i32) -> (i32, i32, i32, i32) {
    %c0_i32 = arith.constant 0 : i32
    %c0_i32_0 = arith.constant 0 : i32
    %c0_i32_1 = arith.constant 0 : i32
    %c0_i32_2 = arith.constant 0 : i32
    %c0_i32_3 = arith.constant 0 : i32
    return %c0_i32, %c0_i32_0, %c0_i32_1, %c0_i32_2 : i32, i32, i32, i32
  }
  func.func @transform_2(%arg0: i32) -> (i32, i32) {
    %c0_i32 = arith.constant 0 : i32
    %c0_i32_0 = arith.constant 0 : i32
    %c0_i32_1 = arith.constant 0 : i32
    return %c0_i32, %c0_i32_0 : i32, i32
  }
  func.func @transform_3(%arg0: i32) -> (i32, i32, i32, i32, i32) {
    %c0_i32 = arith.constant 0 : i32
    %c0_i32_0 = arith.constant 0 : i32
    %c0_i32_1 = arith.constant 0 : i32
    %c0_i32_2 = arith.constant 0 : i32
    %c0_i32_3 = arith.constant 0 : i32
    return %arg0, %c0_i32, %c0_i32_0, %c0_i32_1, %c0_i32_2 : i32, i32, i32, i32, i32
  }
}

module attributes {stable_mosaic.version = 11 : i64} {
  func.func @upconv3x3_kernel(%arg0: i32, %arg1: memref<1x6x6x16xbf16, #tpu.memory_space<vmem>>, %arg2: memref<2x2x64x8xbf16, #tpu.memory_space<vmem>>, %arg3: memref<1x8xf32, #tpu.memory_space<vmem>>, %arg4: memref<1x4x2x4x16xbf16, #tpu.memory_space<vmem>>) attributes {dimension_semantics = [#tpu.dimension_semantics<parallel>], iteration_bounds = array<i64: 2>, scalar_prefetch = 0 : i64, scratch_operands = 0 : i64, tpu.core_type = #tpu.core_type<tc>, window_params = [{transform_indices = @transform_0, window_bounds = array<i64: 1, 6, 6, 16>}, {pipeline_mode = #tpu.pipeline_mode<synchronous>, transform_indices = @transform_1, window_bounds = array<i64: 2, 2, 64, 8>}, {pipeline_mode = #tpu.pipeline_mode<synchronous>, transform_indices = @transform_2, window_bounds = array<i64: 1, 8>}, {transform_indices = @transform_3, window_bounds = array<i64: 1, 4, 2, 4, 16>}]} {
    %c0 = arith.constant 0 : index
    %c0_0 = arith.constant 0 : index
    %c0_1 = arith.constant 0 : index
    %c0_2 = arith.constant 0 : index
    %0 = vector.load %arg1[%c0, %c0_0, %c0_1, %c0_2] : memref<1x6x6x16xbf16, #tpu.memory_space<vmem>>, vector<1x6x6x16xbf16>
    %1 = vector.shape_cast %0 : vector<1x6x6x16xbf16> to vector<6x6x16xbf16>
    %c0_3 = arith.constant 0 : index
    %c0_4 = arith.constant 0 : index
    %2 = vector.load %arg3[%c0_3, %c0_4] : memref<1x8xf32, #tpu.memory_space<vmem>>, vector<1x8xf32>
    %3 = vector.extract_strided_slice %1 {offsets = [0, 0, 0], sizes = [4, 4, 16], strides = [1, 1, 1]} : vector<6x6x16xbf16> to vector<4x4x16xbf16>
    %4 = vector.extract_strided_slice %1 {offsets = [0, 1, 0], sizes = [4, 4, 16], strides = [1, 1, 1]} : vector<6x6x16xbf16> to vector<4x4x16xbf16>
    %5 = vector.extract_strided_slice %1 {offsets = [1, 0, 0], sizes = [4, 4, 16], strides = [1, 1, 1]} : vector<6x6x16xbf16> to vector<4x4x16xbf16>
    %6 = vector.extract_strided_slice %1 {offsets = [1, 1, 0], sizes = [4, 4, 16], strides = [1, 1, 1]} : vector<6x6x16xbf16> to vector<4x4x16xbf16>
    %7 = tpu.concatenate %3, %4, %5, %6 in 2 : vector<4x4x16xbf16>, vector<4x4x16xbf16>, vector<4x4x16xbf16>, vector<4x4x16xbf16> -> vector<4x4x64xbf16>
    %8 = vector.shape_cast %7 : vector<4x4x64xbf16> to vector<16x64xbf16>
    %c0_5 = arith.constant 0 : index
    %c0_6 = arith.constant 0 : index
    %c0_7 = arith.constant 0 : index
    %c0_8 = arith.constant 0 : index
    %9 = vector.load %arg2[%c0_5, %c0_6, %c0_7, %c0_8] : memref<2x2x64x8xbf16, #tpu.memory_space<vmem>>, vector<1x1x64x8xbf16>
    %10 = vector.shape_cast %9 : vector<1x1x64x8xbf16> to vector<64x8xbf16>
    %cst = arith.constant dense<0.000000e+00> : vector<16x8xf32>
    %11 = tpu.matmul %8, %10, %cst {dimension_numbers = #tpu.dot_dimension_numbers<[1], [0], [0], [1], [0, 0, 1, 1], [], []>} : vector<16x64xbf16>, vector<64x8xbf16>, vector<16x8xf32> -> vector<16x8xf32>
    %12 = vector.broadcast %2 : vector<1x8xf32> to vector<16x8xf32>
    %13 = arith.addf %11, %12 : vector<16x8xf32>
    %cst_9 = arith.constant 0.000000e+00 : f32
    %14 = vector.broadcast %cst_9 : f32 to vector<16x8xf32>
    %15 = arith.cmpf ogt, %13, %14 : vector<16x8xf32>
    %cst_10 = arith.constant 2.000000e-01 : f32
    %16 = vector.broadcast %cst_10 : f32 to vector<16x8xf32>
    %17 = arith.mulf %16, %13 : vector<16x8xf32>
    %18 = arith.select %15, %13, %17 : vector<16x8xi1>, vector<16x8xf32>
    %19 = vector.shape_cast %18 : vector<16x8xf32> to vector<4x4x8xf32>
    %20 = arith.truncf %19 : vector<4x4x8xf32> to vector<4x4x8xbf16>
    %21 = vector.extract_strided_slice %1 {offsets = [0, 1, 0], sizes = [4, 4, 16], strides = [1, 1, 1]} : vector<6x6x16xbf16> to vector<4x4x16xbf16>
    %22 = vector.extract_strided_slice %1 {offsets = [0, 2, 0], sizes = [4, 4, 16], strides = [1, 1, 1]} : vector<6x6x16xbf16> to vector<4x4x16xbf16>
    %23 = vector.extract_strided_slice %1 {offsets = [1, 1, 0], sizes = [4, 4, 16], strides = [1, 1, 1]} : vector<6x6x16xbf16> to vector<4x4x16xbf16>
    %24 = vector.extract_strided_slice %1 {offsets = [1, 2, 0], sizes = [4, 4, 16], strides = [1, 1, 1]} : vector<6x6x16xbf16> to vector<4x4x16xbf16>
    %25 = tpu.concatenate %21, %22, %23, %24 in 2 : vector<4x4x16xbf16>, vector<4x4x16xbf16>, vector<4x4x16xbf16>, vector<4x4x16xbf16> -> vector<4x4x64xbf16>
    %26 = vector.shape_cast %25 : vector<4x4x64xbf16> to vector<16x64xbf16>
    %c0_11 = arith.constant 0 : index
    %c1 = arith.constant 1 : index
    %c0_12 = arith.constant 0 : index
    %c0_13 = arith.constant 0 : index
    %27 = vector.load %arg2[%c0_11, %c1, %c0_12, %c0_13] : memref<2x2x64x8xbf16, #tpu.memory_space<vmem>>, vector<1x1x64x8xbf16>
    %28 = vector.shape_cast %27 : vector<1x1x64x8xbf16> to vector<64x8xbf16>
    %cst_14 = arith.constant dense<0.000000e+00> : vector<16x8xf32>
    %29 = tpu.matmul %26, %28, %cst_14 {dimension_numbers = #tpu.dot_dimension_numbers<[1], [0], [0], [1], [0, 0, 1, 1], [], []>} : vector<16x64xbf16>, vector<64x8xbf16>, vector<16x8xf32> -> vector<16x8xf32>
    %30 = vector.broadcast %2 : vector<1x8xf32> to vector<16x8xf32>
    %31 = arith.addf %29, %30 : vector<16x8xf32>
    %cst_15 = arith.constant 0.000000e+00 : f32
    %32 = vector.broadcast %cst_15 : f32 to vector<16x8xf32>
    %33 = arith.cmpf ogt, %31, %32 : vector<16x8xf32>
    %cst_16 = arith.constant 2.000000e-01 : f32
    %34 = vector.broadcast %cst_16 : f32 to vector<16x8xf32>
    %35 = arith.mulf %34, %31 : vector<16x8xf32>
    %36 = arith.select %33, %31, %35 : vector<16x8xi1>, vector<16x8xf32>
    %37 = vector.shape_cast %36 : vector<16x8xf32> to vector<4x4x8xf32>
    %38 = arith.truncf %37 : vector<4x4x8xf32> to vector<4x4x8xbf16>
    %39 = tpu.concatenate %20, %38 in 2 : vector<4x4x8xbf16>, vector<4x4x8xbf16> -> vector<4x4x16xbf16>
    %c0_17 = arith.constant 0 : index
    %c0_18 = arith.constant 0 : index
    %c0_19 = arith.constant 0 : index
    %c0_20 = arith.constant 0 : index
    %c0_21 = arith.constant 0 : index
    %40 = vector.load %arg4[%c0_17, %c0_18, %c0_19, %c0_20, %c0_21] : memref<1x4x2x4x16xbf16, #tpu.memory_space<vmem>>, vector<1x4x1x4x16xbf16>
    %41 = vector.shape_cast %40 : vector<1x4x1x4x16xbf16> to vector<4x4x16xbf16>
    %42 = vector.shape_cast %39 : vector<4x4x16xbf16> to vector<1x4x1x4x16xbf16>
    tpu.vector_store %arg4[%c0_17, %c0_18, %c0_19, %c0_20, %c0_21], %42 {strides = array<i32>} : memref<1x4x2x4x16xbf16, #tpu.memory_space<vmem>>, vector<1x4x1x4x16xbf16>,
    %43 = vector.extract_strided_slice %1 {offsets = [1, 0, 0], sizes = [4, 4, 16], strides = [1, 1, 1]} : vector<6x6x16xbf16> to vector<4x4x16xbf16>
    %44 = vector.extract_strided_slice %1 {offsets = [1, 1, 0], sizes = [4, 4, 16], strides = [1, 1, 1]} : vector<6x6x16xbf16> to vector<4x4x16xbf16>
    %45 = vector.extract_strided_slice %1 {offsets = [2, 0, 0], sizes = [4, 4, 16], strides = [1, 1, 1]} : vector<6x6x16xbf16> to vector<4x4x16xbf16>
    %46 = vector.extract_strided_slice %1 {offsets = [2, 1, 0], sizes = [4, 4, 16], strides = [1, 1, 1]} : vector<6x6x16xbf16> to vector<4x4x16xbf16>
    %47 = tpu.concatenate %43, %44, %45, %46 in 2 : vector<4x4x16xbf16>, vector<4x4x16xbf16>, vector<4x4x16xbf16>, vector<4x4x16xbf16> -> vector<4x4x64xbf16>
    %48 = vector.shape_cast %47 : vector<4x4x64xbf16> to vector<16x64xbf16>
    %c1_22 = arith.constant 1 : index
    %c0_23 = arith.constant 0 : index
    %c0_24 = arith.constant 0 : index
    %c0_25 = arith.constant 0 : index
    %49 = vector.load %arg2[%c1_22, %c0_23, %c0_24, %c0_25] : memref<2x2x64x8xbf16, #tpu.memory_space<vmem>>, vector<1x1x64x8xbf16>
    %50 = vector.shape_cast %49 : vector<1x1x64x8xbf16> to vector<64x8xbf16>
    %cst_26 = arith.constant dense<0.000000e+00> : vector<16x8xf32>
    %51 = tpu.matmul %48, %50, %cst_26 {dimension_numbers = #tpu.dot_dimension_numbers<[1], [0], [0], [1], [0, 0, 1, 1], [], []>} : vector<16x64xbf16>, vector<64x8xbf16>, vector<16x8xf32> -> vector<16x8xf32>
    %52 = vector.broadcast %2 : vector<1x8xf32> to vector<16x8xf32>
    %53 = arith.addf %51, %52 : vector<16x8xf32>
    %cst_27 = arith.constant 0.000000e+00 : f32
    %54 = vector.broadcast %cst_27 : f32 to vector<16x8xf32>
    %55 = arith.cmpf ogt, %53, %54 : vector<16x8xf32>
    %cst_28 = arith.constant 2.000000e-01 : f32
    %56 = vector.broadcast %cst_28 : f32 to vector<16x8xf32>
    %57 = arith.mulf %56, %53 : vector<16x8xf32>
    %58 = arith.select %55, %53, %57 : vector<16x8xi1>, vector<16x8xf32>
    %59 = vector.shape_cast %58 : vector<16x8xf32> to vector<4x4x8xf32>
    %60 = arith.truncf %59 : vector<4x4x8xf32> to vector<4x4x8xbf16>
    %61 = vector.extract_strided_slice %1 {offsets = [1, 1, 0], sizes = [4, 4, 16], strides = [1, 1, 1]} : vector<6x6x16xbf16> to vector<4x4x16xbf16>
    %62 = vector.extract_strided_slice %1 {offsets = [1, 2, 0], sizes = [4, 4, 16], strides = [1, 1, 1]} : vector<6x6x16xbf16> to vector<4x4x16xbf16>
    %63 = vector.extract_strided_slice %1 {offsets = [2, 1, 0], sizes = [4, 4, 16], strides = [1, 1, 1]} : vector<6x6x16xbf16> to vector<4x4x16xbf16>
    %64 = vector.extract_strided_slice %1 {offsets = [2, 2, 0], sizes = [4, 4, 16], strides = [1, 1, 1]} : vector<6x6x16xbf16> to vector<4x4x16xbf16>
    %65 = tpu.concatenate %61, %62, %63, %64 in 2 : vector<4x4x16xbf16>, vector<4x4x16xbf16>, vector<4x4x16xbf16>, vector<4x4x16xbf16> -> vector<4x4x64xbf16>
    %66 = vector.shape_cast %65 : vector<4x4x64xbf16> to vector<16x64xbf16>
    %c1_29 = arith.constant 1 : index
    %c1_30 = arith.constant 1 : index
    %c0_31 = arith.constant 0 : index
    %c0_32 = arith.constant 0 : index
    %67 = vector.load %arg2[%c1_29, %c1_30, %c0_31, %c0_32] : memref<2x2x64x8xbf16, #tpu.memory_space<vmem>>, vector<1x1x64x8xbf16>
    %68 = vector.shape_cast %67 : vector<1x1x64x8xbf16> to vector<64x8xbf16>
    %cst_33 = arith.constant dense<0.000000e+00> : vector<16x8xf32>
    %69 = tpu.matmul %66, %68, %cst_33 {dimension_numbers = #tpu.dot_dimension_numbers<[1], [0], [0], [1], [0, 0, 1, 1], [], []>} : vector<16x64xbf16>, vector<64x8xbf16>, vector<16x8xf32> -> vector<16x8xf32>
    %70 = vector.broadcast %2 : vector<1x8xf32> to vector<16x8xf32>
    %71 = arith.addf %69, %70 : vector<16x8xf32>
    %cst_34 = arith.constant 0.000000e+00 : f32
    %72 = vector.broadcast %cst_34 : f32 to vector<16x8xf32>
    %73 = arith.cmpf ogt, %71, %72 : vector<16x8xf32>
    %cst_35 = arith.constant 2.000000e-01 : f32
    %74 = vector.broadcast %cst_35 : f32 to vector<16x8xf32>
    %75 = arith.mulf %74, %71 : vector<16x8xf32>
    %76 = arith.select %73, %71, %75 : vector<16x8xi1>, vector<16x8xf32>
    %77 = vector.shape_cast %76 : vector<16x8xf32> to vector<4x4x8xf32>
    %78 = arith.truncf %77 : vector<4x4x8xf32> to vector<4x4x8xbf16>
    %79 = tpu.concatenate %60, %78 in 2 : vector<4x4x8xbf16>, vector<4x4x8xbf16> -> vector<4x4x16xbf16>
    %c0_36 = arith.constant 0 : index
    %c0_37 = arith.constant 0 : index
    %c1_38 = arith.constant 1 : index
    %c0_39 = arith.constant 0 : index
    %c0_40 = arith.constant 0 : index
    %80 = vector.load %arg4[%c0_36, %c0_37, %c1_38, %c0_39, %c0_40] : memref<1x4x2x4x16xbf16, #tpu.memory_space<vmem>>, vector<1x4x1x4x16xbf16>
    %81 = vector.shape_cast %80 : vector<1x4x1x4x16xbf16> to vector<4x4x16xbf16>
    %82 = vector.shape_cast %79 : vector<4x4x16xbf16> to vector<1x4x1x4x16xbf16>
    tpu.vector_store %arg4[%c0_36, %c0_37, %c1_38, %c0_39, %c0_40], %82 {strides = array<i32>} : memref<1x4x2x4x16xbf16, #tpu.memory_space<vmem>>, vector<1x4x1x4x16xbf16>,
    return
  }
  func.func @transform_0(%arg0: i32) -> (i32, i32, i32, i32) {
    %c0_i32 = arith.constant 0 : i32
    %c0_i32_0 = arith.constant 0 : i32
    %c0_i32_1 = arith.constant 0 : i32
    %c0_i32_2 = arith.constant 0 : i32
    return %arg0, %c0_i32, %c0_i32_0, %c0_i32_1 : i32, i32, i32, i32
  }
  func.func @transform_1(%arg0: i32) -> (i32, i32, i32, i32) {
    %c0_i32 = arith.constant 0 : i32
    %c0_i32_0 = arith.constant 0 : i32
    %c0_i32_1 = arith.constant 0 : i32
    %c0_i32_2 = arith.constant 0 : i32
    %c0_i32_3 = arith.constant 0 : i32
    return %c0_i32, %c0_i32_0, %c0_i32_1, %c0_i32_2 : i32, i32, i32, i32
  }
  func.func @transform_2(%arg0: i32) -> (i32, i32) {
    %c0_i32 = arith.constant 0 : i32
    %c0_i32_0 = arith.constant 0 : i32
    %c0_i32_1 = arith.constant 0 : i32
    return %c0_i32, %c0_i32_0 : i32, i32
  }
  func.func @transform_3(%arg0: i32) -> (i32, i32, i32, i32, i32) {
    %c0_i32 = arith.constant 0 : i32
    %c0_i32_0 = arith.constant 0 : i32
    %c0_i32_1 = arith.constant 0 : i32
    %c0_i32_2 = arith.constant 0 : i32
    %c0_i32_3 = arith.constant 0 : i32
    return %arg0, %c0_i32, %c0_i32_0, %c0_i32_1, %c0_i32_2 : i32, i32, i32, i32, i32
  }
}

module attributes {stable_mosaic.version = 11 : i64} {
  func.func @upconv3x3_kernel(%arg0: i32, %arg1: memref<1x10x10x8xbf16, #tpu.memory_space<vmem>>, %arg2: memref<2x2x32x4xbf16, #tpu.memory_space<vmem>>, %arg3: memref<1x4xf32, #tpu.memory_space<vmem>>, %arg4: memref<1x8x2x8x8xf32, #tpu.memory_space<vmem>>) attributes {dimension_semantics = [#tpu.dimension_semantics<parallel>], iteration_bounds = array<i64: 2>, scalar_prefetch = 0 : i64, scratch_operands = 0 : i64, tpu.core_type = #tpu.core_type<tc>, window_params = [{transform_indices = @transform_0, window_bounds = array<i64: 1, 10, 10, 8>}, {pipeline_mode = #tpu.pipeline_mode<synchronous>, transform_indices = @transform_1, window_bounds = array<i64: 2, 2, 32, 4>}, {pipeline_mode = #tpu.pipeline_mode<synchronous>, transform_indices = @transform_2, window_bounds = array<i64: 1, 4>}, {transform_indices = @transform_3, window_bounds = array<i64: 1, 8, 2, 8, 8>}]} {
    %c0 = arith.constant 0 : index
    %c0_0 = arith.constant 0 : index
    %c0_1 = arith.constant 0 : index
    %c0_2 = arith.constant 0 : index
    %0 = vector.load %arg1[%c0, %c0_0, %c0_1, %c0_2] : memref<1x10x10x8xbf16, #tpu.memory_space<vmem>>, vector<1x10x10x8xbf16>
    %1 = vector.shape_cast %0 : vector<1x10x10x8xbf16> to vector<10x10x8xbf16>
    %c0_3 = arith.constant 0 : index
    %c0_4 = arith.constant 0 : index
    %2 = vector.load %arg3[%c0_3, %c0_4] : memref<1x4xf32, #tpu.memory_space<vmem>>, vector<1x4xf32>
    %3 = vector.extract_strided_slice %1 {offsets = [0, 0, 0], sizes = [8, 8, 8], strides = [1, 1, 1]} : vector<10x10x8xbf16> to vector<8x8x8xbf16>
    %4 = vector.extract_strided_slice %1 {offsets = [0, 1, 0], sizes = [8, 8, 8], strides = [1, 1, 1]} : vector<10x10x8xbf16> to vector<8x8x8xbf16>
    %5 = vector.extract_strided_slice %1 {offsets = [1, 0, 0], sizes = [8, 8, 8], strides = [1, 1, 1]} : vector<10x10x8xbf16> to vector<8x8x8xbf16>
    %6 = vector.extract_strided_slice %1 {offsets = [1, 1, 0], sizes = [8, 8, 8], strides = [1, 1, 1]} : vector<10x10x8xbf16> to vector<8x8x8xbf16>
    %7 = tpu.concatenate %3, %4, %5, %6 in 2 : vector<8x8x8xbf16>, vector<8x8x8xbf16>, vector<8x8x8xbf16>, vector<8x8x8xbf16> -> vector<8x8x32xbf16>
    %8 = vector.shape_cast %7 : vector<8x8x32xbf16> to vector<64x32xbf16>
    %c0_5 = arith.constant 0 : index
    %c0_6 = arith.constant 0 : index
    %c0_7 = arith.constant 0 : index
    %c0_8 = arith.constant 0 : index
    %9 = vector.load %arg2[%c0_5, %c0_6, %c0_7, %c0_8] : memref<2x2x32x4xbf16, #tpu.memory_space<vmem>>, vector<1x1x32x4xbf16>
    %10 = vector.shape_cast %9 : vector<1x1x32x4xbf16> to vector<32x4xbf16>
    %cst = arith.constant dense<0.000000e+00> : vector<64x4xf32>
    %11 = tpu.matmul %8, %10, %cst {dimension_numbers = #tpu.dot_dimension_numbers<[1], [0], [0], [1], [0, 0, 1, 1], [], []>} : vector<64x32xbf16>, vector<32x4xbf16>, vector<64x4xf32> -> vector<64x4xf32>
    %12 = vector.broadcast %2 : vector<1x4xf32> to vector<64x4xf32>
    %13 = arith.addf %11, %12 : vector<64x4xf32>
    %14 = vector.shape_cast %13 : vector<64x4xf32> to vector<8x8x4xf32>
    %15 = vector.extract_strided_slice %1 {offsets = [0, 1, 0], sizes = [8, 8, 8], strides = [1, 1, 1]} : vector<10x10x8xbf16> to vector<8x8x8xbf16>
    %16 = vector.extract_strided_slice %1 {offsets = [0, 2, 0], sizes = [8, 8, 8], strides = [1, 1, 1]} : vector<10x10x8xbf16> to vector<8x8x8xbf16>
    %17 = vector.extract_strided_slice %1 {offsets = [1, 1, 0], sizes = [8, 8, 8], strides = [1, 1, 1]} : vector<10x10x8xbf16> to vector<8x8x8xbf16>
    %18 = vector.extract_strided_slice %1 {offsets = [1, 2, 0], sizes = [8, 8, 8], strides = [1, 1, 1]} : vector<10x10x8xbf16> to vector<8x8x8xbf16>
    %19 = tpu.concatenate %15, %16, %17, %18 in 2 : vector<8x8x8xbf16>, vector<8x8x8xbf16>, vector<8x8x8xbf16>, vector<8x8x8xbf16> -> vector<8x8x32xbf16>
    %20 = vector.shape_cast %19 : vector<8x8x32xbf16> to vector<64x32xbf16>
    %c0_9 = arith.constant 0 : index
    %c1 = arith.constant 1 : index
    %c0_10 = arith.constant 0 : index
    %c0_11 = arith.constant 0 : index
    %21 = vector.load %arg2[%c0_9, %c1, %c0_10, %c0_11] : memref<2x2x32x4xbf16, #tpu.memory_space<vmem>>, vector<1x1x32x4xbf16>
    %22 = vector.shape_cast %21 : vector<1x1x32x4xbf16> to vector<32x4xbf16>
    %cst_12 = arith.constant dense<0.000000e+00> : vector<64x4xf32>
    %23 = tpu.matmul %20, %22, %cst_12 {dimension_numbers = #tpu.dot_dimension_numbers<[1], [0], [0], [1], [0, 0, 1, 1], [], []>} : vector<64x32xbf16>, vector<32x4xbf16>, vector<64x4xf32> -> vector<64x4xf32>
    %24 = vector.broadcast %2 : vector<1x4xf32> to vector<64x4xf32>
    %25 = arith.addf %23, %24 : vector<64x4xf32>
    %26 = vector.shape_cast %25 : vector<64x4xf32> to vector<8x8x4xf32>
    %27 = tpu.concatenate %14, %26 in 2 : vector<8x8x4xf32>, vector<8x8x4xf32> -> vector<8x8x8xf32>
    %c0_13 = arith.constant 0 : index
    %c0_14 = arith.constant 0 : index
    %c0_15 = arith.constant 0 : index
    %c0_16 = arith.constant 0 : index
    %c0_17 = arith.constant 0 : index
    %28 = vector.load %arg4[%c0_13, %c0_14, %c0_15, %c0_16, %c0_17] : memref<1x8x2x8x8xf32, #tpu.memory_space<vmem>>, vector<1x8x1x8x8xf32>
    %29 = vector.shape_cast %28 : vector<1x8x1x8x8xf32> to vector<8x8x8xf32>
    %30 = vector.shape_cast %27 : vector<8x8x8xf32> to vector<1x8x1x8x8xf32>
    tpu.vector_store %arg4[%c0_13, %c0_14, %c0_15, %c0_16, %c0_17], %30 {strides = array<i32>} : memref<1x8x2x8x8xf32, #tpu.memory_space<vmem>>, vector<1x8x1x8x8xf32>,
    %31 = vector.extract_strided_slice %1 {offsets = [1, 0, 0], sizes = [8, 8, 8], strides = [1, 1, 1]} : vector<10x10x8xbf16> to vector<8x8x8xbf16>
    %32 = vector.extract_strided_slice %1 {offsets = [1, 1, 0], sizes = [8, 8, 8], strides = [1, 1, 1]} : vector<10x10x8xbf16> to vector<8x8x8xbf16>
    %33 = vector.extract_strided_slice %1 {offsets = [2, 0, 0], sizes = [8, 8, 8], strides = [1, 1, 1]} : vector<10x10x8xbf16> to vector<8x8x8xbf16>
    %34 = vector.extract_strided_slice %1 {offsets = [2, 1, 0], sizes = [8, 8, 8], strides = [1, 1, 1]} : vector<10x10x8xbf16> to vector<8x8x8xbf16>
    %35 = tpu.concatenate %31, %32, %33, %34 in 2 : vector<8x8x8xbf16>, vector<8x8x8xbf16>, vector<8x8x8xbf16>, vector<8x8x8xbf16> -> vector<8x8x32xbf16>
    %36 = vector.shape_cast %35 : vector<8x8x32xbf16> to vector<64x32xbf16>
    %c1_18 = arith.constant 1 : index
    %c0_19 = arith.constant 0 : index
    %c0_20 = arith.constant 0 : index
    %c0_21 = arith.constant 0 : index
    %37 = vector.load %arg2[%c1_18, %c0_19, %c0_20, %c0_21] : memref<2x2x32x4xbf16, #tpu.memory_space<vmem>>, vector<1x1x32x4xbf16>
    %38 = vector.shape_cast %37 : vector<1x1x32x4xbf16> to vector<32x4xbf16>
    %cst_22 = arith.constant dense<0.000000e+00> : vector<64x4xf32>
    %39 = tpu.matmul %36, %38, %cst_22 {dimension_numbers = #tpu.dot_dimension_numbers<[1], [0], [0], [1], [0, 0, 1, 1], [], []>} : vector<64x32xbf16>, vector<32x4xbf16>, vector<64x4xf32> -> vector<64x4xf32>
    %40 = vector.broadcast %2 : vector<1x4xf32> to vector<64x4xf32>
    %41 = arith.addf %39, %40 : vector<64x4xf32>
    %42 = vector.shape_cast %41 : vector<64x4xf32> to vector<8x8x4xf32>
    %43 = vector.extract_strided_slice %1 {offsets = [1, 1, 0], sizes = [8, 8, 8], strides = [1, 1, 1]} : vector<10x10x8xbf16> to vector<8x8x8xbf16>
    %44 = vector.extract_strided_slice %1 {offsets = [1, 2, 0], sizes = [8, 8, 8], strides = [1, 1, 1]} : vector<10x10x8xbf16> to vector<8x8x8xbf16>
    %45 = vector.extract_strided_slice %1 {offsets = [2, 1, 0], sizes = [8, 8, 8], strides = [1, 1, 1]} : vector<10x10x8xbf16> to vector<8x8x8xbf16>
    %46 = vector.extract_strided_slice %1 {offsets = [2, 2, 0], sizes = [8, 8, 8], strides = [1, 1, 1]} : vector<10x10x8xbf16> to vector<8x8x8xbf16>
    %47 = tpu.concatenate %43, %44, %45, %46 in 2 : vector<8x8x8xbf16>, vector<8x8x8xbf16>, vector<8x8x8xbf16>, vector<8x8x8xbf16> -> vector<8x8x32xbf16>
    %48 = vector.shape_cast %47 : vector<8x8x32xbf16> to vector<64x32xbf16>
    %c1_23 = arith.constant 1 : index
    %c1_24 = arith.constant 1 : index
    %c0_25 = arith.constant 0 : index
    %c0_26 = arith.constant 0 : index
    %49 = vector.load %arg2[%c1_23, %c1_24, %c0_25, %c0_26] : memref<2x2x32x4xbf16, #tpu.memory_space<vmem>>, vector<1x1x32x4xbf16>
    %50 = vector.shape_cast %49 : vector<1x1x32x4xbf16> to vector<32x4xbf16>
    %cst_27 = arith.constant dense<0.000000e+00> : vector<64x4xf32>
    %51 = tpu.matmul %48, %50, %cst_27 {dimension_numbers = #tpu.dot_dimension_numbers<[1], [0], [0], [1], [0, 0, 1, 1], [], []>} : vector<64x32xbf16>, vector<32x4xbf16>, vector<64x4xf32> -> vector<64x4xf32>
    %52 = vector.broadcast %2 : vector<1x4xf32> to vector<64x4xf32>
    %53 = arith.addf %51, %52 : vector<64x4xf32>
    %54 = vector.shape_cast %53 : vector<64x4xf32> to vector<8x8x4xf32>
    %55 = tpu.concatenate %42, %54 in 2 : vector<8x8x4xf32>, vector<8x8x4xf32> -> vector<8x8x8xf32>
    %c0_28 = arith.constant 0 : index
    %c0_29 = arith.constant 0 : index
    %c1_30 = arith.constant 1 : index
    %c0_31 = arith.constant 0 : index
    %c0_32 = arith.constant 0 : index
    %56 = vector.load %arg4[%c0_28, %c0_29, %c1_30, %c0_31, %c0_32] : memref<1x8x2x8x8xf32, #tpu.memory_space<vmem>>, vector<1x8x1x8x8xf32>
    %57 = vector.shape_cast %56 : vector<1x8x1x8x8xf32> to vector<8x8x8xf32>
    %58 = vector.shape_cast %55 : vector<8x8x8xf32> to vector<1x8x1x8x8xf32>
    tpu.vector_store %arg4[%c0_28, %c0_29, %c1_30, %c0_31, %c0_32], %58 {strides = array<i32>} : memref<1x8x2x8x8xf32, #tpu.memory_space<vmem>>, vector<1x8x1x8x8xf32>,
    return
  }
  func.func @transform_0(%arg0: i32) -> (i32, i32, i32, i32) {
    %c0_i32 = arith.constant 0 : i32
    %c0_i32_0 = arith.constant 0 : i32
    %c0_i32_1 = arith.constant 0 : i32
    %c0_i32_2 = arith.constant 0 : i32
    return %arg0, %c0_i32, %c0_i32_0, %c0_i32_1 : i32, i32, i32, i32
  }
  func.func @transform_1(%arg0: i32) -> (i32, i32, i32, i32) {
    %c0_i32 = arith.constant 0 : i32
    %c0_i32_0 = arith.constant 0 : i32
    %c0_i32_1 = arith.constant 0 : i32
    %c0_i32_2 = arith.constant 0 : i32
    %c0_i32_3 = arith.constant 0 : i32
    return %c0_i32, %c0_i32_0, %c0_i32_1, %c0_i32_2 : i32, i32, i32, i32
  }
  func.func @transform_2(%arg0: i32) -> (i32, i32) {
    %c0_i32 = arith.constant 0 : i32
    %c0_i32_0 = arith.constant 0 : i32
    %c0_i32_1 = arith.constant 0 : i32
    return %c0_i32, %c0_i32_0 : i32, i32
  }
  func.func @transform_3(%arg0: i32) -> (i32, i32, i32, i32, i32) {
    %c0_i32 = arith.constant 0 : i32
    %c0_i32_0 = arith.constant 0 : i32
    %c0_i32_1 = arith.constant 0 : i32
    %c0_i32_2 = arith.constant 0 : i32
    %c0_i32_3 = arith.constant 0 : i32
    return %arg0, %c0_i32, %c0_i32_0, %c0_i32_1, %c0_i32_2 : i32, i32, i32, i32, i32
  }
}

</mosaic_0001>

<bundles_post_ra>
// kernel: decoder_forward.5
= control target key start
LH: loop header
LB: loop body
LE: loop exit
PB: predicated region body
PF: predicated region fallthrough
CT: control target
= control target key end

     0   :  { %vm28_vm0 = vcmask 130048   ;;  %vm47_vm1 = vcmask 516096   ;;  %s92_s1 = inlined_call_operand.vmem [shape: bf16[16,64], index: 1, kind: input, shape index: {}]   ;;  %s93_s0 = inlined_call_operand.vmem [shape: bf16[2,16], index: 0, kind: input, shape index: {}]   ;;  %s94_s2 = inlined_call_operand.vmem [shape: f32[1,64], index: 2, kind: input, shape index: {}]   ;;  %s95_s3 = inlined_call_operand.vmem [shape: bf16[2,64], index: 3, kind: output, shape index: {}]  }
   0x1   :  { %v58_v0 = vld [vmem:[%s92_s1] sm:$0xff] }
   0x2   :  { %39 = vmatpush.bf16.msra.mxu0 %v58_v0  ;;  %v15_v1 = vld [vmem:[%s93_s0] sm:$0x1] }
   0x3   :  { %v59_v2 = vld [vmem:[%s94_s2] ss:$0 sm:$0xff] }
   0x5   :  { %57 = vmatmul.msk.bf16.vlgmr.msra.gmra.mxu0 %vm28_vm0, %v15_v1 }
  0x82   :  { %v41_v3 = vpop.f32.mrf.mxu0 }
  0x83   :  { %v42_v4 = vadd.f32 %v59_v2, %v41_v3 }
  0x85   :  { %v45_v5 = vmax.f32 %v42_v4, 0.0 }
  0x87   :  { %v46_v6 = vpack.c.bf16 %v45_v5, %v45_v5 }
  0x89   :  { %48 = vst.msk [vmem:[%s95_s3] sm:$0x1] %vm47_vm1, %v46_v6 }
  0x8a   :  { %v43_v7 = vpop.f32.mrf.mxu0 }

// kernel: decoder_forward.6
= control target key start
LH: loop header
LB: loop body
LE: loop exit
PB: predicated region body
PF: predicated region fallthrough
CT: control target
= control target key end

     0   :  { %s1456_s12 = smov 0   ;;  %s1728_s0 = inlined_call_operand.vmem [shape: bf16[2,3,3,64], index: 0, kind: input, shape index: {}]   ;;  %s1729_s1 = inlined_call_operand.vmem [shape: bf16[2,2,256,32], index: 1, kind: input, shape index: {}]   ;;  %s1730_s2 = inlined_call_operand.vmem [shape: f32[1,32], index: 2, kind: input, shape index: {}]   ;;  %s1731_s3 = inlined_call_operand.vmem [shape: bf16[2,1,2,1,64], index: 3, kind: output, shape index: {}]  }
   0x1 LB: > { %s978_s13 = sadd.s32 4294967295, %s1432_s12   ;;  %p982_p0 = scmp.ge.s32.totalorder %s1432_s12, 1  ;;  %s1432_s12 = sphi %s1456_s12, %s13_s12  }
   0x2   : > { %p137_p1 = scmp.lt.s32.totalorder %s1432_s12, 3 }
   0x4   : > { %p138_p2 = pnand %p982_p0, %p137_p1 }
   0x5   : > { %p160_p3 = scmp.lt.s32.totalorder (!%p138_p2), %s978_s13, 1  ;;  %s1434_s18 = smov (!%p138_p2), 64  }
   0x6   : > { %141 = sbr.rel (%p138_p2) target bundleno = 469 (0x1d5), region = 32  ;;  %s1435_s27 = smov (!%p138_p2), 32  }
   0xb   : > { %s1735_s13 = smov (!%p160_p3, %s978_s13), 1  ;;  %v1364_v12 = vld [vmem:[%s1729_s1 + $0xb8] sm:$0xff]  ;;  %v1363_v15 = vld [vmem:[%s1729_s1 + $0xb0] sm:$0xff]  ;;  %v1362_v17 = vld [vmem:[%s1729_s1 + $0xa8] sm:$0xff]  ;;  %vm187_vm0 = vcmask 523264   ;;  %vm545_vm4 = vcmask 516096  }
   0xc   : > { %s1405_s14 = smul.u32 6, %s1735_s13  ;;  %v1372_v13 = vld [vmem:[%s1729_s1 + $0xf8] sm:$0xff]  ;;  %505 = vmatpush.bf16.msra.mxu2 %v1364_v12  ;;  %v1371_v16 = vld [vmem:[%s1729_s1 + $0xf0] sm:$0xff]  ;;  %v1370_v18 = vld [vmem:[%s1729_s1 + $0xe8] sm:$0xff]  ;;  %s984_s28 = sshll.u32 %s1735_s13, 1  ;;  %vm540_vm6 = vcmask 261120  }
   0xd   : > { %518 = vmatpush.bf16.msra.mxu3 %v1372_v13  ;;  %v1361_v20 = vld [vmem:[%s1729_s1 + $0xa0] sm:$0xff]  ;;  %v1360_v22 = vld [vmem:[%s1729_s1 + $0x98] sm:$0xff]  ;;  %v1359_v25 = vld [vmem:[%s1729_s1 + $0x90] sm:$0xff]  ;;  %vm546_vm5 = vsmask.f32 256 }
   0xe   : > { %s164_s17 = scalar_lea.vmem %s1728_s0, %s1405_s14  ;;  %v1369_v21 = vld [vmem:[%s1729_s1 + $0xe0] sm:$0xff]  ;;  %v1368_v23 = vld [vmem:[%s1729_s1 + $0xd8] sm:$0xff]  ;;  %v1367_v26 = vld [vmem:[%s1729_s1 + $0xd0] sm:$0xff] }
   0xf   : > { %v1470_v0 = vld [vmem:[%s164_s17] sm:$0x3]  ;;  %v1473_v1 = vld [vmem:[%s164_s17 + $0x2] sm:$0x3]  ;;  %v1483_v11 = vld [vmem:[%s164_s17 + $0x4] sm:$0x3] }
  0x10   : > { %174 = vst [vmem:[#allocation1] ss:$4 sm:$0xff] %v1470_v0  ;;  %506 = vmatpush.bf16.msra.mxu2 %v1363_v15  ;;  %v1358_v28 = vld [vmem:[%s1729_s1 + $0x88] sm:$0xff]  ;;  %v1357_v33 = vld [vmem:[%s1729_s1 + $0x80] sm:$0xff]  ;;  %v1396_v35 = vld [vmem:[%s1729_s1 + $0x1b8] sm:$0xff] }
  0x11   : > { %519 = vmatpush.bf16.msra.mxu3 %v1371_v16  ;;  %v1366_v29 = vld [vmem:[%s1729_s1 + $0xc8] sm:$0xff]  ;;  %v1365_v34 = vld [vmem:[%s1729_s1 + $0xc0] sm:$0xff]  ;;  %v1404_v36 = vld [vmem:[%s1729_s1 + $0x1f8] sm:$0xff] }
  0x12   : > { %v1395_v39 = vld [vmem:[%s1729_s1 + $0x1b0] sm:$0xff]  ;;  %v1394_v41 = vld [vmem:[%s1729_s1 + $0x1a8] sm:$0xff]  ;;  %v1393_v44 = vld [vmem:[%s1729_s1 + $0x1a0] sm:$0xff] }
  0x13   : > { %v1403_v40 = vld [vmem:[%s1729_s1 + $0x1f0] sm:$0xff]  ;;  %v1402_v42 = vld [vmem:[%s1729_s1 + $0x1e8] sm:$0xff]  ;;  %v1401_v45 = vld [vmem:[%s1729_s1 + $0x1e0] sm:$0xff] }
  0x14   : > { %507 = vmatpush.bf16.msra.mxu2 %v1362_v17  ;;  %v1392_v46 = vld [vmem:[%s1729_s1 + $0x198] sm:$0xff]  ;;  %v1391_v49 = vld [vmem:[%s1729_s1 + $0x190] sm:$0xff]  ;;  %v1390_v51 = vld [vmem:[%s1729_s1 + $0x188] sm:$0xff] }
  0x15   : > { %520 = vmatpush.bf16.msra.mxu3 %v1370_v18  ;;  %v1400_v47 = vld [vmem:[%s1729_s1 + $0x1d8] sm:$0xff]  ;;  %v1399_v50 = vld [vmem:[%s1729_s1 + $0x1d0] sm:$0xff]  ;;  %v1398_v52 = vld [vmem:[%s1729_s1 + $0x1c8] sm:$0xff] }
  0x16   : > { %v1389_v56 = vld [vmem:[%s1729_s1 + $0x180] sm:$0xff]  ;;  %v1348_v63 = vld [vmem:[%s1729_s1 + $0x38] sm:$0xff]  ;;  %v1343_v13 = vld [vmem:[%s1729_s1 + $0x10] sm:$0xff] }
  0x17   : > { %v1475_v2 = vld.sshfl [vmem:[#allocation1] sm:$0xff pattern:$0x73625140]  ;;  %322 = vmatpush.bf16.msra.mxu0 %v1348_v63  ;;  %v1352_v12 = vld [vmem:[%s1729_s1 + $0x58] sm:$0xff]  ;;  %v1342_v15 = vld [vmem:[%s1729_s1 + $0x8] sm:$0xff] }
  0x18   : > { %181 = vst [vmem:[#allocation1] ss:$4 sm:$0xff] %v1473_v1  ;;  %508 = vmatpush.bf16.msra.mxu2 %v1361_v20  ;;  %v176_v43 = vshrl.u32 %v1475_v2, 16  ;;  %v1397_v57 = vld [vmem:[%s1729_s1 + $0x1c0] sm:$0xff]  ;;  %v1356_v2 = vld [vmem:[%s1729_s1 + $0x78] sm:$0xff]  ;;  %v1350_v16 = vld [vmem:[%s1729_s1 + $0x48] sm:$0xff] }
  0x19   : > { %521 = vmatpush.bf16.msra.mxu3 %v1369_v21  ;;  %335 = vmatpush.bf16.msra.mxu1 %v1356_v2  ;;  %v1341_v18 = vld [vmem:[%s1729_s1] sm:$0xff]  ;;  %v1380_v21 = vld [vmem:[%s1729_s1 + $0x138] sm:$0xff]  ;;  %vm1717_vm7 = vmand %vm545_vm4, %vm546_vm5 }
  0x1a   : > { %178 = vrot.lane.b32.xlu1 %v176_v43, %s1434_s18  ;;  %v1383_v43 = vld [vmem:[%s1729_s1 + $0x150] sm:$0xff] }
  0x1c   : > { %509 = vmatpush.bf16.msra.mxu2 %v1360_v22  ;;  %v1349_v22 = vld [vmem:[%s1729_s1 + $0x40] sm:$0xff] }
  0x1d   : > { %522 = vmatpush.bf16.msra.mxu3 %v1368_v23 }
  0x1f   : > { %v1478_v3 = vld.sshfl [vmem:[#allocation1] sm:$0xff pattern:$0x73625140] }
  0x20   : > { %352 = vst [vmem:[#allocation1] ss:$4 sm:$0xff] %v1470_v0  ;;  %510 = vmatpush.bf16.msra.mxu2 %v1359_v25  ;;  %v183_v48 = vshrl.u32 %v1478_v3, 16  ;;  %v1347_v3 = vld [vmem:[%s1729_s1 + $0x30] sm:$0xff]  ;;  %v1388_v25 = vld [vmem:[%s1729_s1 + $0x178] sm:$0xff] }
  0x21   : > { %523 = vmatpush.bf16.msra.mxu3 %v1367_v26  ;;  %323 = vmatpush.bf16.msra.mxu0 %v1347_v3 }
  0x22   : > { %185 = vrot.lane.b32.xlu1 %v183_v48, %s1434_s18 }
  0x24   : > { %511 = vmatpush.bf16.msra.mxu2 %v1358_v28  ;;  %v1379_v28 = vld [vmem:[%s1729_s1 + $0x130] sm:$0xff] }
  0x25   : > { %524 = vmatpush.bf16.msra.mxu3 %v1366_v29  ;;  %v1387_v29 = vld [vmem:[%s1729_s1 + $0x170] sm:$0xff] }
  0x27   : > { %v353_v4 = vld.sshfl [vmem:[#allocation1] sm:$0xff pattern:$0x73625140] }
  0x28   : > { %359 = vst [vmem:[#allocation1] ss:$4 sm:$0xff] %v1473_v1  ;;  %v354_v5 = vshll.u32 %v353_v4, 16  ;;  %512 = vmatpush.bf16.msra.mxu2 %v1357_v33  ;;  %v1355_v4 = vld [vmem:[%s1729_s1 + $0x70] sm:$0xff]  ;;  %v1386_v33 = vld [vmem:[%s1729_s1 + $0x168] sm:$0xff] }
  0x29   : > { %525 = vmatpush.bf16.msra.mxu3 %v1365_v34  ;;  %336 = vmatpush.bf16.msra.mxu1 %v1355_v4  ;;  %v1375_v34 = vld [vmem:[%s1729_s1 + $0x110] sm:$0xff] }
  0x2a   : > { %v356_v7 = vrot.slane %v354_v5, 1 }
  0x2c   : > { %882 = vmatpush.bf16.msrb.mxu2 %v1396_v35  ;;  %v1385_v35 = vld [vmem:[%s1729_s1 + $0x160] sm:$0xff] }
  0x2d   : > { %895 = vmatpush.bf16.msrb.mxu3 %v1404_v36  ;;  %v1374_v36 = vld [vmem:[%s1729_s1 + $0x108] sm:$0xff] }
  0x2f   : > { %v360_v6 = vld.sshfl [vmem:[#allocation1] sm:$0xff pattern:$0x73625140] }
  0x30   : > { %v361_v8 = vshll.u32 %v360_v6, 16  ;;  %551 = vst [vmem:[#allocation1] ss:$4 sm:$0xff] %v1473_v1  ;;  %883 = vmatpush.bf16.msrb.mxu2 %v1395_v39  ;;  %v1346_v6 = vld [vmem:[%s1729_s1 + $0x28] sm:$0xff] }
  0x31   : > { %896 = vmatpush.bf16.msrb.mxu3 %v1403_v40  ;;  %324 = vmatpush.bf16.msra.mxu0 %v1346_v6 }
  0x32   : > { %v363_v9 = vrot.slane %v361_v8, 1  ;;  %v1345_v8 = vld [vmem:[%s1729_s1 + $0x20] sm:$0xff] }
  0x34   : > { %v1416_v10 = vpack.i.bf16 %v363_v9, %v356_v7  ;;  %884 = vmatpush.bf16.msrb.mxu2 %v1394_v41  ;;  %v1354_v7 = vld [vmem:[%s1729_s1 + $0x68] sm:$0xff]  ;;  %v1353_v9 = vld [vmem:[%s1729_s1 + $0x60] sm:$0xff] }
  0x35   : > { %897 = vmatpush.bf16.msrb.mxu3 %v1402_v42  ;;  %337 = vmatpush.bf16.msra.mxu1 %v1354_v7  ;;  %v1373_v42 = vld [vmem:[%s1729_s1 + $0x100] sm:$0xff] }
  0x36   : > { %1417 = vrot.lane.b32.xlu0 %v1416_v10, %s1434_s18  ;;  %325 = vmatpush.bf16.msra.mxu0 %v1345_v8  ;;  %v1344_v10 = vld [vmem:[%s1729_s1 + $0x18] sm:$0xff] }
  0x37   : > { %v1492_v14 = vld.sshfl [vmem:[#allocation1] sm:$0xff pattern:$0x73625140] }
  0x38   : > { %558 = vst [vmem:[#allocation1] ss:$4 sm:$0xff] %v1483_v11  ;;  %885 = vmatpush.bf16.msrb.mxu2 %v1393_v44  ;;  %v553_v62 = vshrl.u32 %v1492_v14, 16  ;;  %v1351_v14 = vld [vmem:[%s1729_s1 + $0x50] sm:$0xff] }
  0x39   : > { %898 = vmatpush.bf16.msrb.mxu3 %v1401_v45  ;;  %338 = vmatpush.bf16.msra.mxu1 %v1353_v9  ;;  %v1382_v45 = vld [vmem:[%s1729_s1 + $0x148] sm:$0xff] }
  0x3a   : > { %555 = vrot.lane.b32.xlu2 %v553_v62, %s1434_s18  ;;  %326 = vmatpush.bf16.msra.mxu0 %v1344_v10 }
  0x3c   : > { %886 = vmatpush.bf16.msrb.mxu2 %v1392_v46  ;;  %v1381_v46 = vld [vmem:[%s1729_s1 + $0x140] sm:$0xff] }
  0x3d   : > { %899 = vmatpush.bf16.msrb.mxu3 %v1400_v47  ;;  %339 = vmatpush.bf16.msra.mxu1 %v1352_v12 }
  0x3e   : > { %327 = vmatpush.bf16.msra.mxu0 %v1343_v13 }
  0x3f   : > { %v1507_v19 = vld.sshfl [vmem:[#allocation1] sm:$0xff pattern:$0x73625140] }
  0x40   : > { %729 = vst [vmem:[#allocation1] ss:$4 sm:$0xff] %v1473_v1  ;;  %887 = vmatpush.bf16.msrb.mxu2 %v1391_v49  ;;  %v560_v5 = vshrl.u32 %v1507_v19, 16 }
  0x41   : > { %900 = vmatpush.bf16.msrb.mxu3 %v1399_v50  ;;  %340 = vmatpush.bf16.msra.mxu1 %v1351_v14 }
  0x42   : > { %562 = vrot.lane.b32.xlu2 %v560_v5, %s1434_s18  ;;  %328 = vmatpush.bf16.msra.mxu0 %v1342_v15 }
  0x44   : > { %888 = vmatpush.bf16.msrb.mxu2 %v1390_v51 }
  0x45   : > { %901 = vmatpush.bf16.msrb.mxu3 %v1398_v52  ;;  %341 = vmatpush.bf16.msra.mxu1 %v1350_v16 }
  0x46   : > { %329 = vmatpush.bf16.msra.mxu0 %v1341_v18 }
  0x47   : > { %v730_v24 = vld.sshfl [vmem:[#allocation1] sm:$0xff pattern:$0x73625140] }
  0x48   : > { %736 = vst [vmem:[#allocation1] ss:$4 sm:$0xff] %v1483_v11  ;;  %v731_v27 = vshll.u32 %v730_v24, 16  ;;  %889 = vmatpush.bf16.msrb.mxu2 %v1389_v56 }
  0x49   : > { %902 = vmatpush.bf16.msrb.mxu3 %v1397_v57  ;;  %342 = vmatpush.bf16.msra.mxu1 %v1349_v22 }
  0x4a   : > { %v733_v31 = vrot.slane %v731_v27, 1  ;;  %699 = vmatpush.bf16.msrb.mxu0 %v1380_v21 }
  0x4d   : > { %712 = vmatpush.bf16.msrb.mxu1 %v1388_v25 }
  0x4e   : > { %700 = vmatpush.bf16.msrb.mxu0 %v1379_v28 }
  0x4f   : > { %v737_v30 = vld.sshfl [vmem:[#allocation1] sm:$0xff pattern:$0x73625140] }
  0x50   : > { %v738_v32 = vshll.u32 %v737_v30, 16  ;;  %v1378_v30 = vld [vmem:[%s1729_s1 + $0x128] sm:$0xff] }
  0x51   : > { %713 = vmatpush.bf16.msrb.mxu1 %v1387_v29 }
  0x52   : > { %v740_v37 = vrot.slane %v738_v32, 1  ;;  %701 = vmatpush.bf16.msrb.mxu0 %v1378_v30  ;;  %v1376_v32 = vld [vmem:[%s1729_s1 + $0x118] sm:$0xff] }
  0x54   : > { %v1421_v38 = vpack.i.bf16 %v740_v37, %v733_v31  ;;  %v1377_v31 = vld [vmem:[%s1729_s1 + $0x120] sm:$0xff]  ;;  %v1384_v37 = vld [vmem:[%s1729_s1 + $0x158] sm:$0xff] }
  0x55   : > { %714 = vmatpush.bf16.msrb.mxu1 %v1386_v33 }
  0x56   : > { %1422 = vrot.lane.b32.xlu0 %v1421_v38, %s1434_s18  ;;  %702 = vmatpush.bf16.msrb.mxu0 %v1377_v31  ;;  %s168_s18 = scalar_lea.vmem %s1731_s3, %s984_s28 }
  0x59   : > { %715 = vmatpush.bf16.msrb.mxu1 %v1385_v35 }
  0x5a   : > { %703 = vmatpush.bf16.msrb.mxu0 %v1376_v32  ;;  %v1337_v32 = vld [vmem:[%s168_s18 + $0x1] sm:$0x1] }
  0x5d   : > { %716 = vmatpush.bf16.msrb.mxu1 %v1384_v37 }
  0x5e   : > { %704 = vmatpush.bf16.msrb.mxu0 %v1375_v34 }
  0x61   : > { %717 = vmatpush.bf16.msrb.mxu1 %v1383_v43 }
  0x62   : > { %705 = vmatpush.bf16.msrb.mxu0 %v1374_v36 }
  0x65   : > { %718 = vmatpush.bf16.msrb.mxu1 %v1382_v45 }
  0x66   : > { %706 = vmatpush.bf16.msrb.mxu0 %v1373_v42 }
  0x69   : > { %719 = vmatpush.bf16.msrb.mxu1 %v1381_v46 }
  0x8c   : > { %v179_v38 = vpop.permute.xlu1 %178 }
  0x8d   : > { %v189_v39 = vsel %vm187_vm0, %v1470_v0, %v179_v38 }
  0x8e   : > { %330 = vmatmul.bf16.vlgmr.msra.gmra.mxu0 %v189_v39 }
  0x94   : > { %v186_v40 = vpop.permute.xlu1 %185  ;;  %v556_v44 = vpop.permute.xlu2 %555 }
  0x95   : > { %v192_v41 = vsel %vm187_vm0, %v1473_v1, %v186_v40 }
  0x96   : > { %343 = vmatmul.bf16.vlgmr.msra.gmra.mxu1 %v192_v41 }
  0x9c   : > { %v563_v47 = vpop.permute.xlu2 %562 }
  0x9d   : > { %v568_v48 = vsel %vm187_vm0, %v1483_v11, %v563_v47 }
  0xa6   : > { %720 = vmatmul.bf16.vlgmr.msrb.gmra.mxu1 %v568_v48 }
  0xa8   : > { %v1418_v53 = vpop.permute.xlu0 %1417 }
  0xa9   : > { %v1420_v54 = vunpack.i.h.bf16 %v1418_v53  ;;  %v1419_v55 = vunpack.i.l.bf16 %v1418_v53 }
  0xab   : > { %v367_v58 = vsel %vm187_vm0, %v1470_v0, %v1419_v55  ;;  %v369_v59 = vsel %vm187_vm0, %v1473_v1, %v1420_v54  ;;  %v565_v0 = vsel %vm187_vm0, %v1473_v1, %v556_v44 }
  0xac   : > { %v403_v60 = vshrl.u32 %v367_v58, 16  ;;  %v405_v61 = vshrl.u32 %v369_v59, 16  ;;  %707 = vmatmul.bf16.vlgmr.msrb.gmra.mxu0 %v565_v0 }
  0xae   : > { %513 = vmatmul.bf16.vlgmr.msra.gmra.mxu2 %v403_v60  ;;  %526 = vmatmul.bf16.vlgmr.msra.gmra.mxu3 %v405_v61 }
  0xc8   : > { %v1423_v17 = vpop.permute.xlu0 %1422 }
  0xc9   : > { %v1425_v19 = vunpack.i.h.bf16 %v1423_v17  ;;  %v1424_v20 = vunpack.i.l.bf16 %v1423_v17 }
  0xcb   : > { %v744_v23 = vsel %vm187_vm0, %v1473_v1, %v1424_v20  ;;  %v746_v24 = vsel %vm187_vm0, %v1483_v11, %v1425_v19  ;;  %v172_v1 = vld [vmem:[%s1730_s2] sm:$0x1] }
  0xcc   : > { %v780_v26 = vshrl.u32 %v744_v23, 16  ;;  %v782_v27 = vshrl.u32 %v746_v24, 16  ;;  %v548_v23 = vld [vmem:[%s168_s18] sm:$0x1] }
  0xce   : > { %890 = vmatmul.bf16.vlgmr.msrb.gmra.mxu2 %v780_v26  ;;  %903 = vmatmul.bf16.vlgmr.msrb.gmra.mxu3 %v782_v27 }
 0x10b   : > { %v331_v8 = vpop.f32.mrf.mxu0 }
 0x10c   : > { %v332_v14 = vadd.f32 %v331_v8, %v172_v1 }
 0x113   : > { %v333_v9 = vpop.f32.mrf.mxu0  ;;  %v344_v10 = vpop.f32.mrf.mxu1 }
 0x114   : > { %v345_v17 = vadd.f32 %v344_v10, %v332_v14 }
 0x116   : > { %v349_v18 = vmul.f32 0.2, %v345_v17  ;;  %vm348_vm3 = vcmp.gt.f32.partialorder %v345_v17, 0.0 }
 0x118   : > { %v350_v20 = vsel %vm348_vm3, %v345_v17, %v349_v18 }
 0x119   : > { %v351_v21 = vpack.c.bf16 %v350_v20, %v350_v20 }
 0x11b   : > { %v346_v12 = vpop.f32.mrf.mxu1 }
 0x123   : > { %v721_v16 = vpop.f32.mrf.mxu1 }
 0x129   : > { %v708_v13 = vpop.f32.mrf.mxu0 }
 0x12a   : > { %v709_v27 = vadd.f32 %v708_v13, %v172_v1 }
 0x12b   : > { %v723_v19 = vpop.f32.mrf.mxu1 }
 0x12c   : > { %v722_v28 = vadd.f32 %v721_v16, %v709_v27 }
 0x12e   : > { %v726_v29 = vmul.f32 0.2, %v722_v28  ;;  %vm725_vm8 = vcmp.gt.f32.partialorder %v722_v28, 0.0 }
 0x130   : > { %v727_v30 = vsel %vm725_vm8, %v722_v28, %v726_v29 }
 0x131   : > { %v514_v49 = vpop.f32.mrf.mxu2  ;;  %v527_v50 = vpop.f32.mrf.mxu3  ;;  %v728_v31 = vpack.c.bf16 %v727_v30, %v727_v30 }
 0x132   : > { %v515_v51 = vadd.f32 %v514_v49, %v172_v1  ;;  %v710_v15 = vpop.f32.mrf.mxu0 }
 0x134   : > { %v528_v52 = vadd.f32 %v527_v50, %v515_v51 }
 0x136   : > { %vm531_vm1 = vcmp.gt.f32.partialorder %v528_v52, 0.0  ;;  %v532_v53 = vmul.f32 0.2, %v528_v52 }
 0x138   : > { %v533_v54 = vsel %vm531_vm1, %v528_v52, %v532_v53 }
 0x139   : > { %v516_v55 = vpop.f32.mrf.mxu2  ;;  %v529_v56 = vpop.f32.mrf.mxu3  ;;  %v534_v57 = vpack.c.bf16 %v533_v54, %v533_v54 }
 0x13b   : > { %v536_v58 = vunpack.c.l.b16 %v534_v57 }
 0x13d   : > { %v537_v59 = vpack.c.b16 %v536_v58, %v536_v58 }
 0x13f   : > { %538 = vrot.lane.b32.xlu0 %v537_v59, %s1435_s27 }
 0x151   : > { %v891_v11 = vpop.f32.mrf.mxu2  ;;  %v904_v60 = vpop.f32.mrf.mxu3 }
 0x152   : > { %v892_v61 = vadd.f32 %v891_v11, %v172_v1 }
 0x154   : > { %v905_v62 = vadd.f32 %v904_v60, %v892_v61 }
 0x156   : > { %vm908_vm2 = vcmp.gt.f32.partialorder %v905_v62, 0.0  ;;  %v909_v63 = vmul.f32 0.2, %v905_v62 }
 0x158   : > { %v910_v2 = vsel %vm908_vm2, %v905_v62, %v909_v63 }
 0x159   : > { %v893_v3 = vpop.f32.mrf.mxu2  ;;  %v906_v4 = vpop.f32.mrf.mxu3  ;;  %v911_v5 = vpack.c.bf16 %v910_v2, %v910_v2 }
 0x15b   : > { %v913_v6 = vunpack.c.l.b16 %v911_v5 }
 0x15d   : > { %v914_v7 = vpack.c.b16 %v913_v6, %v913_v6 }
 0x15f   : > { %915 = vrot.lane.b32.xlu1 %v914_v7, %s1435_s27 }
 0x1b1   : > { %v539_v24 = vpop.permute.xlu0 %538 }
 0x1b2   : > { %v543_v25 = vsel %vm540_vm6, %v351_v21, %v539_v24 }
 0x1b3   : > { %v549_v26 = vsel %vm1717_vm7, %v543_v25, %v548_v23 }
 0x1b4   : > { %550 = vst [vmem:[%s168_s18] sm:$0x1] %v549_v26 }
 0x1d1   : > { %v916_v33 = vpop.permute.xlu1 %915 }
 0x1d2   : > { %v919_v34 = vsel %vm540_vm6, %v728_v31, %v916_v33 }
 0x1d3   : > { %v923_v35 = vsel %vm1717_vm7, %v919_v34, %v1337_v32 }
 0x1d4   : > { %1338 = vst [vmem:[%s168_s18 + $0x1] sm:$0x1] %v923_v35 }
 0x1d5 PF: > { %s13_s12 = sadd.s32 1, %s1432_s12  }
 0x1d6   : > { %p10_p4 = scmp.ge.s32.totalorder %s13_s12, 4  }
 0x1d8   :  { %12 = sbr.rel (!%p10_p4) target bundleno = 1 (0x1), region = 66 }

// kernel: decoder_forward.7
= control target key start
LH: loop header
LB: loop body
LE: loop exit
PB: predicated region body
PF: predicated region fallthrough
CT: control target
= control target key end

     0   :  { %s1232_s12 = smov 0   ;;  %s1485_s0 = inlined_call_operand.vmem [shape: bf16[2,4,4,32], index: 0, kind: input, shape index: {}]   ;;  %s1486_s1 = inlined_call_operand.vmem [shape: bf16[2,2,128,16], index: 1, kind: input, shape index: {}]   ;;  %s1487_s2 = inlined_call_operand.vmem [shape: f32[1,16], index: 2, kind: input, shape index: {}]   ;;  %s1488_s3 = inlined_call_operand.vmem [shape: bf16[2,2,2,2,32], index: 3, kind: output, shape index: {}]  }
   0x1 LB: > { %s962_s13 = sadd.s32 4294967295, %s1206_s12   ;;  %p966_p0 = scmp.ge.s32.totalorder %s1206_s12, 1  ;;  %s1206_s12 = sphi %s1232_s12, %s13_s12  }
   0x2   : > { %p137_p1 = scmp.lt.s32.totalorder %s1206_s12, 3 }
   0x4   : > { %p138_p2 = pnand %p966_p0, %p137_p1 }
   0x5   : > { %p160_p3 = scmp.lt.s32.totalorder (!%p138_p2), %s962_s13, 1  ;;  %s1208_s24 = smov (!%p138_p2), 32  }
   0x6   : > { %141 = sbr.rel (%p138_p2) target bundleno = 898 (0x382), region = 32  ;;  %s1209_s25 = smov (!%p138_p2), 64  }
   0x7   : > { %s1210_s26 = smov (!%p138_p2), 96  }
   0xb   : > { %s1492_s13 = smov (!%p160_p3, %s962_s13), 1  ;;  %v1162_v2 = vld [vmem:[%s1486_s1 + $0x38] sm:$0xff]  ;;  %v1161_v7 = vld [vmem:[%s1486_s1 + $0x30] sm:$0xff]  ;;  %v1160_v12 = vld [vmem:[%s1486_s1 + $0x28] sm:$0xff]  ;;  %vm230_vm0 = vcmask 261120   ;;  %vm235_vm1 = vcmask 523264  }
   0xc   : > { %s1154_s14 = sshll.u32 %s1492_s13, 3  ;;  %317 = vmatpush.bf16.msra.mxu0 %v1162_v2  ;;  %v1159_v28 = vld [vmem:[%s1486_s1 + $0x20] sm:$0xff]  ;;  %v1158_v29 = vld [vmem:[%s1486_s1 + $0x18] sm:$0xff]  ;;  %v1157_v30 = vld [vmem:[%s1486_s1 + $0x10] sm:$0xff]  ;;  %vm240_vm2 = vcmask 785408   ;;  %s969_s16 = sshll.u32 %s1492_s13, 2 }
   0xd   : > { %s1246_s17 = scalar_lea.vmem %s1485_s0, %s1154_s14  ;;  %v1156_v31 = vld [vmem:[%s1486_s1 + $0x8] sm:$0xff]  ;;  %v1155_v32 = vld [vmem:[%s1486_s1] sm:$0xff]  ;;  %vm407_vm3 = vsmask.f32 256  ;;  %vm408_vm4 = vsmask.f32 1284  ;;  %s1460_s20 = scalar_lea.vmem %s1488_s3, %s969_s16 }
   0xe   : > { %v1249_v0 = vld [vmem:[%s1246_s17] sm:$0x3]  ;;  %v1252_v1 = vld [vmem:[%s1246_s17 + $0x2] sm:$0x3]  ;;  %v1260_v4 = vld [vmem:[%s1246_s17 + $0x4] sm:$0x3] }
   0xf   : > { %175 = vst [vmem:[#allocation1] ss:$4 sm:$0xff] %v1249_v0  ;;  %vm409_vm5 = vmor %vm407_vm3, %vm408_vm4  ;;  %vm410_vm6 = vsmask.f32 2312  ;;  %vm412_vm8 = vsmask.f32 3340 }
  0x10   : > { %179 = vst [vmem:[#allocation1 + $0x20] ss:$4 sm:$0xff] %v1252_v1  ;;  %318 = vmatpush.bf16.msra.mxu0 %v1161_v7  ;;  %v1170_v7 = vld [vmem:[%s1486_s1 + $0x78] sm:$0xff]  ;;  %vm411_vm7 = vmor %vm409_vm5, %vm410_vm6  ;;  %vm414_vm10 = vsmask.f32 4368 }
  0x11   : > { %510 = vmatpush.bf16.msra.mxu1 %v1170_v7  ;;  %vm413_vm9 = vmor %vm411_vm7, %vm412_vm8  ;;  %vm416_vm12 = vsmask.f32 5396  ;;  %vm418_vm14 = vsmask.f32 6424  ;;  %vm420_vm3 = vsmask.f32 7452 }
  0x12   : > { %vm415_vm11 = vmor %vm413_vm9, %vm414_vm10  ;;  %v1171_v7 = vld [vmem:[%s1486_s1 + $0x80] sm:$0xff]  ;;  %vm541_vm7 = vcmask 130048   ;;  %vm550_vm8 = vcmask 253952  }
  0x13   : > { %vm417_vm13 = vmor %vm415_vm11, %vm416_vm12 }
  0x14   : > { %319 = vmatpush.bf16.msra.mxu0 %v1160_v12  ;;  %v1165_v12 = vld [vmem:[%s1486_s1 + $0x50] sm:$0xff]  ;;  %vm419_vm15 = vmor %vm417_vm13, %vm418_vm14 }
  0x15   : > { %vm1343_vm4 = vmor %vm419_vm15, %vm420_vm3 }
  0x16   : > { %v176_v3 = vld.sshfl [vmem:[#allocation1] sm:$0xff pattern:$0x73625140] }
  0x17   : > { %v181_v5 = vshrl.u32 %v176_v3, 16  ;;  %v183_v6 = vshll.u32 %v176_v3, 16  ;;  %197 = vst [vmem:[#allocation1] ss:$4 sm:$0xff] %v1252_v1 }
  0x18   : > { %v180_v8 = vld.sshfl [vmem:[#allocation1 + $0x20] sm:$0xff pattern:$0x73625140]  ;;  %320 = vmatpush.bf16.msra.mxu0 %v1159_v28 }
  0x19   : > { %v185_v9 = vrot.slane %v183_v6, 1  ;;  %v189_v10 = vshll.u32 %v180_v8, 16  ;;  %202 = vst [vmem:[#allocation1 + $0x20] ss:$4 sm:$0xff] %v1260_v4  ;;  %v187_v13 = vshrl.u32 %v180_v8, 16  ;;  %v1169_v8 = vld [vmem:[%s1486_s1 + $0x70] sm:$0xff] }
  0x1a   : > { %511 = vmatpush.bf16.msra.mxu1 %v1169_v8 }
  0x1b   : > { %v186_v11 = vor.u32 %v185_v9, %v181_v5  ;;  %v191_v14 = vrot.slane %v189_v10, 1  ;;  %v1168_v9 = vld [vmem:[%s1486_s1 + $0x68] sm:$0xff]  ;;  %v1167_v10 = vld [vmem:[%s1486_s1 + $0x60] sm:$0xff] }
  0x1c   : > { %321 = vmatpush.bf16.msra.mxu0 %v1158_v29 }
  0x1d   : > { %193 = vrot.lane.b32.xlu0 %v186_v11, %s1208_s24  ;;  %v192_v17 = vor.u32 %v191_v14, %v187_v13  ;;  %v1166_v11 = vld [vmem:[%s1486_s1 + $0x58] sm:$0xff]  ;;  %v1164_v13 = vld [vmem:[%s1486_s1 + $0x48] sm:$0xff]  ;;  %v1163_v14 = vld [vmem:[%s1486_s1 + $0x40] sm:$0xff] }
  0x1e   : > { %v198_v15 = vld.sshfl [vmem:[#allocation1] sm:$0xff pattern:$0x73625140]  ;;  %512 = vmatpush.bf16.msra.mxu1 %v1168_v9 }
  0x1f   : > { %205 = vrot.lane.b32.xlu1 %v198_v15, %s1209_s25  ;;  %209 = vst [vmem:[#allocation1] ss:$4 sm:$0xff] %v1252_v1 }
  0x20   : > { %v203_v16 = vld.sshfl [vmem:[#allocation1 + $0x20] sm:$0xff pattern:$0x73625140]  ;;  %322 = vmatpush.bf16.msra.mxu0 %v1157_v30 }
  0x21   : > { %212 = vst [vmem:[#allocation1 + $0x20] ss:$4 sm:$0xff] %v1260_v4 }
  0x22   : > { %513 = vmatpush.bf16.msra.mxu1 %v1167_v10 }
  0x24   : > { %323 = vmatpush.bf16.msra.mxu0 %v1156_v31 }
  0x25   : > { %195 = vrot.lane.b32.xlu0 %v192_v17, %s1208_s24 }
  0x26   : > { %v210_v18 = vld.sshfl [vmem:[#allocation1] sm:$0xff pattern:$0x73625140]  ;;  %514 = vmatpush.bf16.msra.mxu1 %v1166_v11 }
  0x27   : > { %207 = vrot.lane.b32.xlu1 %v203_v16, %s1209_s25  ;;  %v214_v19 = vshrl.u32 %v210_v18, 16  ;;  %v216_v20 = vshll.u32 %v210_v18, 16 }
  0x28   : > { %v213_v21 = vld.sshfl [vmem:[#allocation1 + $0x20] sm:$0xff pattern:$0x73625140]  ;;  %324 = vmatpush.bf16.msra.mxu0 %v1155_v32 }
  0x29   : > { %v218_v22 = vrot.slane %v216_v20, 1  ;;  %v222_v23 = vshll.u32 %v213_v21, 16  ;;  %v220_v25 = vshrl.u32 %v213_v21, 16 }
  0x2a   : > { %515 = vmatpush.bf16.msra.mxu1 %v1165_v12 }
  0x2b   : > { %v219_v24 = vor.u32 %v218_v22, %v214_v19  ;;  %v224_v26 = vrot.slane %v222_v23, 1 }
  0x2d   : > { %226 = vrot.lane.b32.xlu2 %v219_v24, %s1210_s26  ;;  %v225_v27 = vor.u32 %v224_v26, %v220_v25 }
  0x2e   : > { %516 = vmatpush.bf16.msra.mxu1 %v1164_v13 }
  0x32   : > { %517 = vmatpush.bf16.msra.mxu1 %v1163_v14 }
  0x35   : > { %228 = vrot.lane.b32.xlu2 %v225_v27, %s1210_s26 }
  0x87   : > { %v227_v33 = vpop.permute.xlu2 %226 }
  0x8f   : > { %v194_v34 = vpop.permute.xlu0 %193  ;;  %v229_v41 = vpop.permute.xlu2 %228 }
  0x90   : > { %v232_v35 = vsel %vm230_vm0, %v1249_v0, %v194_v34 }
  0x91   : > { %v206_v36 = vpop.permute.xlu1 %205 }
  0x92   : > { %v237_v37 = vsel %vm235_vm1, %v232_v35, %v206_v36 }
  0x93   : > { %v242_v38 = vsel %vm240_vm2, %v237_v37, %v227_v33 }
  0x94   : > { %264 = vst [vmem:[#allocation1] ss:$9 sm:$0xff] %v242_v38 }
  0x95   : > { %341 = vst [vmem:[#allocation1 + $0x20] ss:$4 sm:$0xff] %v1252_v1 }
  0x97   : > { %v196_v39 = vpop.permute.xlu0 %195 }
  0x98   : > { %v234_v40 = vsel %vm230_vm0, %v1252_v1, %v196_v39 }
  0x99   : > { %v208_v42 = vpop.permute.xlu1 %207 }
  0x9a   : > { %v239_v43 = vsel %vm235_vm1, %v234_v40, %v208_v42 }
  0x9b   : > { %v244_v44 = vsel %vm240_vm2, %v239_v43, %v229_v41 }
  0x9c   : > { %266 = vst [vmem:[#allocation1 + $0x1] ss:$9 sm:$0xff] %v244_v44 }
  0xa3   : > { %v267_v45 = vld [vmem:[#allocation1] sm:$0xff] }
  0xa4   : > { %v342_v46 = vld.sshfl [vmem:[#allocation1 + $0x20] sm:$0xff pattern:$0x73625140]  ;;  %338 = vst [vmem:[#allocation1] ss:$4 sm:$0xff] %v1249_v0  ;;  %325 = vmatmul.bf16.vlgmr.msra.gmra.mxu0 %v267_v45 }
  0xa5   : > { %v351_v47 = vshll.u32 %v342_v46, 16  ;;  %363 = vst [vmem:[#allocation1 + $0x20] ss:$4 sm:$0xff] %v1260_v4  ;;  %v349_v48 = vshrl.u32 %v342_v46, 16 }
  0xa7   : > { %v353_v49 = vrot.slane %v351_v47, 1 }
  0xa9   : > { %v354_v50 = vor.u32 %v353_v49, %v349_v48 }
  0xab   : > { %357 = vrot.lane.b32.xlu1 %v354_v50, %s1208_s24  ;;  %v339_v51 = vld.sshfl [vmem:[#allocation1] sm:$0xff pattern:$0x73625140] }
  0xac   : > { %359 = vst [vmem:[#allocation1] ss:$4 sm:$0xff] %v1252_v1  ;;  %v345_v52 = vshll.u32 %v339_v51, 16  ;;  %v364_v53 = vld.sshfl [vmem:[#allocation1 + $0x20] sm:$0xff pattern:$0x73625140] }
  0xad   : > { %v343_v54 = vshrl.u32 %v339_v51, 16  ;;  %373 = vst [vmem:[#allocation1 + $0x20] ss:$4 sm:$0xff] %v1260_v4 }
  0xae   : > { %v347_v55 = vrot.slane %v345_v52, 1 }
  0xb0   : > { %v348_v56 = vor.u32 %v347_v55, %v343_v54 }
  0xb2   : > { %355 = vrot.lane.b32.xlu0 %v348_v56, %s1208_s24 }
  0xb3   : > { %v360_v57 = vld.sshfl [vmem:[#allocation1] sm:$0xff pattern:$0x73625140] }
  0xb4   : > { %366 = vrot.lane.b32.xlu2 %v360_v57, %s1209_s25  ;;  %370 = vst [vmem:[#allocation1] ss:$4 sm:$0xff] %v1252_v1  ;;  %v374_v58 = vld.sshfl [vmem:[#allocation1 + $0x20] sm:$0xff pattern:$0x73625140] }
  0xb5   : > { %v383_v59 = vshll.u32 %v374_v58, 16  ;;  %v381_v60 = vshrl.u32 %v374_v58, 16 }
  0xb7   : > { %v385_v61 = vrot.slane %v383_v59, 1 }
  0xb9   : > { %v386_v62 = vor.u32 %v385_v61, %v381_v60  ;;  %v1178_v61 = vld [vmem:[%s1486_s1 + $0xb8] sm:$0xff] }
  0xba   : > { %368 = vrot.lane.b32.xlu0 %v364_v53, %s1209_s25  ;;  %689 = vmatpush.bf16.msra.mxu2 %v1178_v61  ;;  %v1182_v61 = vld [vmem:[%s1486_s1 + $0xd8] sm:$0xff] }
  0xbb   : > { %v371_v63 = vld.sshfl [vmem:[#allocation1] sm:$0xff pattern:$0x73625140] }
  0xbc   : > { %389 = vrot.lane.b32.xlu2 %v386_v62, %s1210_s26  ;;  %v377_v2 = vshll.u32 %v371_v63, 16  ;;  %v375_v3 = vshrl.u32 %v371_v63, 16  ;;  %v1177_v62 = vld [vmem:[%s1486_s1 + $0xb0] sm:$0xff]  ;;  %v1176_v63 = vld [vmem:[%s1486_s1 + $0xa8] sm:$0xff] }
  0xbe   : > { %v379_v5 = vrot.slane %v377_v2, 1  ;;  %690 = vmatpush.bf16.msra.mxu2 %v1177_v62  ;;  %v1175_v2 = vld [vmem:[%s1486_s1 + $0xa0] sm:$0xff]  ;;  %v1181_v62 = vld [vmem:[%s1486_s1 + $0xd0] sm:$0xff] }
  0xc0   : > { %v380_v6 = vor.u32 %v379_v5, %v375_v3  ;;  %v1174_v3 = vld [vmem:[%s1486_s1 + $0x98] sm:$0xff]  ;;  %v1173_v5 = vld [vmem:[%s1486_s1 + $0x90] sm:$0xff] }
  0xc2   : > { %387 = vrot.lane.b32.xlu1 %v380_v6, %s1210_s26  ;;  %691 = vmatpush.bf16.msra.mxu2 %v1176_v63  ;;  %v1172_v6 = vld [vmem:[%s1486_s1 + $0x88] sm:$0xff] }
  0xc3   : > { %v1180_v63 = vld [vmem:[%s1486_s1 + $0xc8] sm:$0xff] }
  0xc6   : > { %692 = vmatpush.bf16.msra.mxu2 %v1175_v2  ;;  %v1179_v2 = vld [vmem:[%s1486_s1 + $0xc0] sm:$0xff] }
  0xca   : > { %693 = vmatpush.bf16.msra.mxu2 %v1174_v3 }
  0xce   : > { %694 = vmatpush.bf16.msra.mxu2 %v1173_v5 }
  0xd2   : > { %695 = vmatpush.bf16.msra.mxu2 %v1172_v6 }
  0xd6   : > { %696 = vmatpush.bf16.msra.mxu2 %v1171_v7 }
 0x10e   : > { %v367_v16 = vpop.permute.xlu2 %366 }
 0x116   : > { %v390_v22 = vpop.permute.xlu2 %389 }
 0x11d   : > { %v358_v18 = vpop.permute.xlu1 %357 }
 0x11e   : > { %v394_v20 = vsel %vm230_vm0, %v1252_v1, %v358_v18 }
 0x121   : > { %v1337_v15 = vpop.f32.mrf.mxu0 }
 0x124   : > { %v356_v17 = vpop.permute.xlu0 %355 }
 0x125   : > { %v392_v27 = vsel %vm230_vm0, %v1249_v0, %v356_v17  ;;  %v1357_v0 = vld [vmem:[%s1246_s17 + $0x6] sm:$0x3] }
 0x126   : > { %v396_v32 = vsel %vm235_vm1, %v392_v27, %v367_v16 }
 0x129   : > { %v328_v19 = vpop.f32.mrf.mxu0 }
 0x12c   : > { %v369_v21 = vpop.permute.xlu0 %368 }
 0x12d   : > { %v398_v23 = vsel %vm235_vm1, %v394_v20, %v369_v21 }
 0x12e   : > { %v402_v24 = vsel %vm240_vm2, %v398_v23, %v390_v22 }
 0x12f   : > { %v406_v25 = vrot.slane %v402_v24, 1  ;;  %v430_v28 = vshrl.u32 %v402_v24, 16 }
 0x131   : > { %v435_v29 = vshll.u32 %v406_v25, 16 }
 0x133   : > { %v437_v30 = vsel %vm1343_vm4, %v430_v28, %v435_v29 }
 0x134   : > { %459 = vst [vmem:[#allocation1 + $0x1] ss:$9 sm:$0xff] %v437_v30  ;;  %v388_v31 = vpop.permute.xlu1 %387  ;;  %v1408_v30 = vld [vmem:[%s1487_s2] ss:$0 sm:$0xff] }
 0x135   : > { %v400_v33 = vsel %vm240_vm2, %v396_v32, %v388_v31  ;;  %v327_v7 = vadd.f32 %v1408_v30, %v1337_v15 }
 0x136   : > { %v405_v34 = vrot.slane %v400_v33, 1  ;;  %v422_v35 = vshrl.u32 %v400_v33, 16 }
 0x137   : > { %vm330_vm6 = vcmp.gt.f32.partialorder %v327_v7, 0.0 }
 0x138   : > { %v427_v36 = vshll.u32 %v405_v34, 16 }
 0x13a   : > { %v429_v37 = vsel %vm1343_vm4, %v422_v35, %v427_v36 }
 0x13b   : > { %456 = vst [vmem:[#allocation1] ss:$9 sm:$0xff] %v429_v37 }
 0x13c   : > { %556 = vst [vmem:[#allocation1 + $0x20] ss:$4 sm:$0xff] %v1260_v4 }
 0x142   : > { %v460_v38 = vld [vmem:[#allocation1] sm:$0xff] }
 0x143   : > { %518 = vmatmul.bf16.vlgmr.msra.gmra.mxu1 %v460_v38  ;;  %553 = vst [vmem:[#allocation1] ss:$4 sm:$0xff] %v1252_v1  ;;  %v557_v39 = vld.sshfl [vmem:[#allocation1 + $0x20] sm:$0xff pattern:$0x73625140] }
 0x144   : > { %v566_v40 = vshll.u32 %v557_v39, 16  ;;  %579 = vst [vmem:[#allocation1 + $0x20] ss:$4 sm:$0xff] %v1357_v0  ;;  %v564_v41 = vshrl.u32 %v557_v39, 16 }
 0x146   : > { %v568_v42 = vrot.slane %v566_v40, 1 }
 0x148   : > { %v569_v43 = vor.u32 %v568_v42, %v564_v41 }
 0x14a   : > { %572 = vrot.lane.b32.xlu1 %v569_v43, %s1208_s24  ;;  %v554_v44 = vld.sshfl [vmem:[#allocation1] sm:$0xff pattern:$0x73625140] }
 0x14b   : > { %v560_v45 = vshll.u32 %v554_v44, 16  ;;  %574 = vst [vmem:[#allocation1] ss:$4 sm:$0xff] %v1260_v4  ;;  %v580_v46 = vld.sshfl [vmem:[#allocation1 + $0x20] sm:$0xff pattern:$0x73625140] }
 0x14c   : > { %v558_v47 = vshrl.u32 %v554_v44, 16  ;;  %589 = vst [vmem:[#allocation1 + $0x20] ss:$4 sm:$0xff] %v1357_v0 }
 0x14d   : > { %v562_v48 = vrot.slane %v560_v45, 1 }
 0x14f   : > { %v563_v49 = vor.u32 %v562_v48, %v558_v47 }
 0x151   : > { %570 = vrot.lane.b32.xlu0 %v563_v49, %s1208_s24 }
 0x152   : > { %v575_v50 = vld.sshfl [vmem:[#allocation1] sm:$0xff pattern:$0x73625140] }
 0x153   : > { %582 = vrot.lane.b32.xlu2 %v575_v50, %s1209_s25  ;;  %586 = vst [vmem:[#allocation1] ss:$4 sm:$0xff] %v1260_v4  ;;  %v590_v51 = vld.sshfl [vmem:[#allocation1 + $0x20] sm:$0xff pattern:$0x73625140] }
 0x154   : > { %v599_v52 = vshll.u32 %v590_v51, 16  ;;  %v597_v53 = vshrl.u32 %v590_v51, 16 }
 0x156   : > { %v601_v54 = vrot.slane %v599_v52, 1 }
 0x158   : > { %v602_v55 = vor.u32 %v601_v54, %v597_v53 }
 0x159   : > { %584 = vrot.lane.b32.xlu0 %v580_v46, %s1209_s25 }
 0x15a   : > { %v587_v56 = vld.sshfl [vmem:[#allocation1] sm:$0xff pattern:$0x73625140] }
 0x15b   : > { %605 = vrot.lane.b32.xlu2 %v602_v55, %s1210_s26  ;;  %v593_v57 = vshll.u32 %v587_v56, 16  ;;  %v591_v58 = vshrl.u32 %v587_v56, 16 }
 0x15d   : > { %v595_v59 = vrot.slane %v593_v57, 1  ;;  %v1186_v57 = vld [vmem:[%s1486_s1 + $0xf8] sm:$0xff] }
 0x15e   : > { %867 = vmatpush.bf16.msra.mxu3 %v1186_v57 }
 0x15f   : > { %v596_v60 = vor.u32 %v595_v59, %v591_v58  ;;  %v1185_v58 = vld [vmem:[%s1486_s1 + $0xf0] sm:$0xff]  ;;  %v1184_v59 = vld [vmem:[%s1486_s1 + $0xe8] sm:$0xff] }
 0x161   : > { %603 = vrot.lane.b32.xlu1 %v596_v60, %s1210_s26  ;;  %v1183_v60 = vld [vmem:[%s1486_s1 + $0xe0] sm:$0xff] }
 0x162   : > { %868 = vmatpush.bf16.msra.mxu3 %v1185_v58 }
 0x166   : > { %869 = vmatpush.bf16.msra.mxu3 %v1184_v59 }
 0x16a   : > { %870 = vmatpush.bf16.msra.mxu3 %v1183_v60 }
 0x16e   : > { %871 = vmatpush.bf16.msra.mxu3 %v1182_v61 }
 0x172   : > { %872 = vmatpush.bf16.msra.mxu3 %v1181_v62 }
 0x176   : > { %873 = vmatpush.bf16.msra.mxu3 %v1180_v63 }
 0x17a   : > { %874 = vmatpush.bf16.msra.mxu3 %v1179_v2 }
 0x1ad   : > { %v583_v9 = vpop.permute.xlu2 %582 }
 0x1b5   : > { %v606_v16 = vpop.permute.xlu2 %605 }
 0x1bc   : > { %v573_v11 = vpop.permute.xlu1 %572 }
 0x1bd   : > { %v610_v13 = vsel %vm230_vm0, %v1260_v4, %v573_v11 }
 0x1c0   : > { %v519_v8 = vpop.f32.mrf.mxu1 }
 0x1c1   : > { %v520_v33 = vadd.f32 %v1408_v30, %v519_v8 }
 0x1c3   : > { %v571_v10 = vpop.permute.xlu0 %570  ;;  %v524_v38 = vmul.f32 0.2, %v520_v33  ;;  %vm523_vm5 = vcmp.gt.f32.partialorder %v520_v33, 0.0 }
 0x1c4   : > { %v608_v19 = vsel %vm230_vm0, %v1252_v1, %v571_v10 }
 0x1c5   : > { %v612_v21 = vsel %vm235_vm1, %v608_v19, %v583_v9  ;;  %v525_v40 = vsel %vm523_vm5, %v520_v33, %v524_v38  ;;  %v331_v9 = vmul.f32 0.2, %v327_v7 }
 0x1c6   : > { %v529_v45 = vpack.c.bf16 %v525_v40, %v525_v40  ;;  %v527_v49 = vrot.slane %v525_v40, 2 }
 0x1c8   : > { %v521_v12 = vpop.f32.mrf.mxu1  ;;  %v533_v48 = vunpack.c.l.b16 %v529_v45  ;;  %v530_v54 = vpack.c.bf16 %v527_v49, %v527_v49 }
 0x1ca   : > { %v535_v53 = vpack.c.b16 %v533_v48, %v533_v48  ;;  %v534_v55 = vunpack.c.l.b16 %v530_v54 }
 0x1cb   : > { %v585_v14 = vpop.permute.xlu0 %584 }
 0x1cc   : > { %v614_v17 = vsel %vm235_vm1, %v610_v13, %v585_v14  ;;  %v536_v56 = vpack.c.b16 %v534_v55, %v534_v55 }
 0x1cd   : > { %v618_v18 = vsel %vm240_vm2, %v614_v17, %v606_v16 }
 0x1ce   : > { %638 = vst [vmem:[#allocation1 + $0x1] ss:$9 sm:$0xff] %v618_v18  ;;  %v332_v18 = vsel %vm330_vm6, %v327_v7, %v331_v9 }
 0x1d3   : > { %v604_v20 = vpop.permute.xlu1 %603 }
 0x1d4   : > { %v616_v22 = vsel %vm240_vm2, %v612_v21, %v604_v20  ;;  %v336_v21 = vpack.c.bf16 %v332_v18, %v332_v18 }
 0x1d5   : > { %636 = vst [vmem:[#allocation1] ss:$9 sm:$0xff] %v616_v22 }
 0x1d6   : > { %713 = vst [vmem:[#allocation1 + $0x20] ss:$4 sm:$0xff] %v1260_v4 }
 0x1dc   : > { %v639_v23 = vld [vmem:[#allocation1] sm:$0xff] }
 0x1dd   : > { %697 = vmatmul.bf16.vlgmr.msra.gmra.mxu2 %v639_v23  ;;  %710 = vst [vmem:[#allocation1] ss:$4 sm:$0xff] %v1252_v1  ;;  %v714_v24 = vld.sshfl [vmem:[#allocation1 + $0x20] sm:$0xff pattern:$0x73625140] }
 0x1de   : > { %v723_v25 = vshll.u32 %v714_v24, 16  ;;  %735 = vst [vmem:[#allocation1 + $0x20] ss:$4 sm:$0xff] %v1357_v0  ;;  %v721_v27 = vshrl.u32 %v714_v24, 16 }
 0x1e0   : > { %v725_v28 = vrot.slane %v723_v25, 1 }
 0x1e2   : > { %v726_v29 = vor.u32 %v725_v28, %v721_v27  ;;  %v334_v28 = vrot.slane %v332_v18, 2 }
 0x1e4   : > { %729 = vrot.lane.b32.xlu1 %v726_v29, %s1208_s24  ;;  %v711_v31 = vld.sshfl [vmem:[#allocation1] sm:$0xff pattern:$0x73625140]  ;;  %v337_v33 = vpack.c.bf16 %v334_v28, %v334_v28 }
 0x1e5   : > { %v717_v32 = vshll.u32 %v711_v31, 16  ;;  %731 = vst [vmem:[#allocation1] ss:$4 sm:$0xff] %v1260_v4  ;;  %v736_v34 = vld.sshfl [vmem:[#allocation1 + $0x20] sm:$0xff pattern:$0x73625140] }
 0x1e6   : > { %v715_v35 = vshrl.u32 %v711_v31, 16  ;;  %745 = vst [vmem:[#allocation1 + $0x20] ss:$4 sm:$0xff] %v1357_v0 }
 0x1e7   : > { %v719_v36 = vrot.slane %v717_v32, 1 }
 0x1e9   : > { %v720_v37 = vor.u32 %v719_v36, %v715_v35 }
 0x1eb   : > { %727 = vrot.lane.b32.xlu0 %v720_v37, %s1208_s24  ;;  %s1211_s24 = smov 16  }
 0x1ec   : > { %v732_v39 = vld.sshfl [vmem:[#allocation1] sm:$0xff pattern:$0x73625140] }
 0x1ed   : > { %738 = vrot.lane.b32.xlu2 %v732_v39, %s1209_s25  ;;  %742 = vst [vmem:[#allocation1] ss:$4 sm:$0xff] %v1260_v4  ;;  %v746_v41 = vld.sshfl [vmem:[#allocation1 + $0x20] sm:$0xff pattern:$0x73625140] }
 0x1ee   : > { %v755_v42 = vshll.u32 %v746_v41, 16  ;;  %v753_v43 = vshrl.u32 %v746_v41, 16 }
 0x1f0   : > { %v757_v44 = vrot.slane %v755_v42, 1 }
 0x1f2   : > { %v758_v46 = vor.u32 %v757_v44, %v753_v43 }
 0x1f3   : > { %740 = vrot.lane.b32.xlu0 %v736_v34, %s1209_s25 }
 0x1f4   : > { %v743_v0 = vld.sshfl [vmem:[#allocation1] sm:$0xff pattern:$0x73625140] }
 0x1f5   : > { %761 = vrot.lane.b32.xlu2 %v758_v46, %s1210_s26  ;;  %v749_v47 = vshll.u32 %v743_v0, 16  ;;  %v747_v50 = vshrl.u32 %v743_v0, 16 }
 0x1f7   : > { %v751_v51 = vrot.slane %v749_v47, 1 }
 0x1f9   : > { %v752_v52 = vor.u32 %v751_v51, %v747_v50 }
 0x1fb   : > { %759 = vrot.lane.b32.xlu1 %v752_v52, %s1210_s26  ;;  %537 = vrot.lane.b32.xlu0 %v535_v53, %s1211_s24 }
 0x203   : > { %539 = vrot.lane.b32.xlu1 %v536_v56, %s1211_s24 }
 0x247   : > { %v739_v3 = vpop.permute.xlu2 %738 }
 0x24f   : > { %v762_v12 = vpop.permute.xlu2 %761 }
 0x256   : > { %v730_v8 = vpop.permute.xlu1 %729 }
 0x257   : > { %v766_v10 = vsel %vm230_vm0, %v1260_v4, %v730_v8 }
 0x25d   : > { %v728_v5 = vpop.permute.xlu0 %727 }
 0x25e   : > { %v764_v19 = vsel %vm230_vm0, %v1252_v1, %v728_v5 }
 0x25f   : > { %v768_v23 = vsel %vm235_vm1, %v764_v19, %v739_v3 }
 0x260   : > { %v698_v6 = vpop.f32.mrf.mxu2 }
 0x261   : > { %v699_v47 = vadd.f32 %v1408_v30, %v698_v6 }
 0x263   : > { %v703_v48 = vmul.f32 0.2, %v699_v47 }
 0x265   : > { %v741_v11 = vpop.permute.xlu0 %740 }
 0x266   : > { %v770_v13 = vsel %vm235_vm1, %v766_v10, %v741_v11  ;;  %vm702_vm1 = vcmp.gt.f32.partialorder %v699_v47, 0.0 }
 0x267   : > { %v774_v14 = vsel %vm240_vm2, %v770_v13, %v762_v12  ;;  %v704_v49 = vsel %vm702_vm1, %v699_v47, %v703_v48 }
 0x268   : > { %v778_v16 = vrot.slane %v774_v14, 1  ;;  %v700_v17 = vpop.f32.mrf.mxu2  ;;  %v787_v15 = vshrl.u32 %v774_v14, 16  ;;  %v708_v50 = vpack.c.bf16 %v704_v49, %v704_v49  ;;  %v706_v53 = vrot.slane %v704_v49, 2 }
 0x26a   : > { %v792_v20 = vshll.u32 %v778_v16, 16  ;;  %v709_v54 = vpack.c.bf16 %v706_v53, %v706_v53 }
 0x26c   : > { %v794_v4 = vsel %vm1343_vm4, %v787_v15, %v792_v20 }
 0x26d   : > { %816 = vst [vmem:[#allocation1 + $0x1] ss:$9 sm:$0xff] %v794_v4  ;;  %v760_v22 = vpop.permute.xlu1 %759  ;;  %v538_v1 = vpop.permute.xlu0 %537 }
 0x26e   : > { %v772_v24 = vsel %vm240_vm2, %v768_v23, %v760_v22  ;;  %v544_v25 = vsel %vm541_vm7, %v336_v21, %v538_v1 }
 0x26f   : > { %v777_v27 = vrot.slane %v772_v24, 1  ;;  %551 = vst.msk [vmem:[%s1460_s20] sm:$0x1] %vm550_vm8, %v544_v25  ;;  %v779_v29 = vshrl.u32 %v772_v24, 16 }
 0x271   : > { %v784_v31 = vshll.u32 %v777_v27, 16 }
 0x273   : > { %v786_v32 = vsel %vm1343_vm4, %v779_v29, %v784_v31 }
 0x274   : > { %813 = vst [vmem:[#allocation1] ss:$9 sm:$0xff] %v786_v32 }
 0x275   : > { %v540_v34 = vpop.permute.xlu1 %539 }
 0x276   : > { %v548_v35 = vsel %vm541_vm7, %v337_v33, %v540_v34 }
 0x277   : > { %552 = vst.msk [vmem:[%s1460_s20 + $0x2] sm:$0x1] %vm550_vm8, %v548_v35 }
 0x27b   : > { %v817_v36 = vld [vmem:[#allocation1] sm:$0xff] }
 0x27c   : > { %875 = vmatmul.bf16.vlgmr.msra.gmra.mxu3 %v817_v36 }
 0x2ff   : > { %v876_v37 = vpop.f32.mrf.mxu3 }
 0x300   : > { %v877_v38 = vadd.f32 %v1408_v30, %v876_v37 }
 0x302   : > { %vm880_vm0 = vcmp.gt.f32.partialorder %v877_v38, 0.0  ;;  %v881_v39 = vmul.f32 0.2, %v877_v38 }
 0x304   : > { %v882_v40 = vsel %vm880_vm0, %v877_v38, %v881_v39 }
 0x305   : > { %v886_v41 = vpack.c.bf16 %v882_v40, %v882_v40  ;;  %v884_v42 = vrot.slane %v882_v40, 2 }
 0x307   : > { %v878_v26 = vpop.f32.mrf.mxu3  ;;  %v890_v43 = vunpack.c.l.b16 %v886_v41  ;;  %v887_v44 = vpack.c.bf16 %v884_v42, %v884_v42 }
 0x309   : > { %v892_v45 = vpack.c.b16 %v890_v43, %v890_v43  ;;  %v891_v46 = vunpack.c.l.b16 %v887_v44 }
 0x30b   : > { %894 = vrot.lane.b32.xlu2 %v892_v45, %s1211_s24  ;;  %v893_v0 = vpack.c.b16 %v891_v46, %v891_v46 }
 0x30d   : > { %896 = vrot.lane.b32.xlu0 %v893_v0, %s1211_s24 }
 0x365   : > { %v895_v51 = vpop.permute.xlu2 %894 }
 0x366   : > { %v900_v52 = vsel %vm541_vm7, %v708_v50, %v895_v51 }
 0x367   : > { %1150 = vst.msk [vmem:[%s1460_s20 + $0x1] sm:$0x1] %vm550_vm8, %v900_v52 }
 0x37f   : > { %v897_v55 = vpop.permute.xlu0 %896 }
 0x380   : > { %v904_v56 = vsel %vm541_vm7, %v709_v54, %v897_v55 }
 0x381   : > { %1151 = vst.msk [vmem:[%s1460_s20 + $0x3] sm:$0x1] %vm550_vm8, %v904_v56 }
 0x382 PF: > { %s13_s12 = sadd.s32 1, %s1206_s12  }
 0x383   : > { %p10_p4 = scmp.ge.s32.totalorder %s13_s12, 4  }
 0x385   :  { %12 = sbr.rel (!%p10_p4) target bundleno = 1 (0x1), region = 82 }

// kernel: decoder_forward.8
= control target key start
LH: loop header
LB: loop body
LE: loop exit
PB: predicated region body
PF: predicated region fallthrough
CT: control target
= control target key end

     0   :  { %s996_s12 = smov 0   ;;  %s1193_s0 = inlined_call_operand.vmem [shape: bf16[2,6,6,16], index: 0, kind: input, shape index: {}]   ;;  %s1194_s1 = inlined_call_operand.vmem [shape: bf16[2,2,64,8], index: 1, kind: input, shape index: {}]   ;;  %s1195_s2 = inlined_call_operand.vmem [shape: f32[1,8], index: 2, kind: input, shape index: {}]   ;;  %s1196_s3 = inlined_call_operand.vmem [shape: bf16[2,4,2,4,16], index: 3, kind: output, shape index: {}]  }
   0x1 LB: > { %s827_s13 = sadd.s32 4294967295, %s970_s12   ;;  %p831_p0 = scmp.ge.s32.totalorder %s970_s12, 1  ;;  %s970_s12 = sphi %s996_s12, %s13_s12  }
   0x2   : > { %p137_p1 = scmp.lt.s32.totalorder %s970_s12, 3 }
   0x4   : > { %p138_p2 = pnand %p831_p0, %p137_p1 }
   0x5   : > { %p161_p3 = scmp.lt.s32.totalorder (!%p138_p2), %s827_s13, 1  ;;  %s972_s18 = smov (!%p138_p2), 32  }
   0x6   : > { %141 = sbr.rel (%p138_p2) target bundleno = 472 (0x1d8), region = 32  ;;  %s973_s19 = smov (!%p138_p2), 16  }
   0x7   : > { %s974_s20 = smov (!%p138_p2), 48   ;;  %s975_s30 = smov (!%p138_p2), 8  }
   0xb   : > { %s1202_s13 = smov (!%p161_p3, %s827_s13), 1  ;;  %v937_v43 = vld [vmem:[%s1194_s1 + $0x18] sm:$0xff]  ;;  %v936_v44 = vld [vmem:[%s1194_s1 + $0x10] sm:$0xff]  ;;  %v935_v46 = vld [vmem:[%s1194_s1 + $0x8] sm:$0xff]  ;;  %vm253_vm0 = vcmask 130048   ;;  %vm266_vm1 = vcmask 261120  }
   0xc   : > { %s950_s14 = smul.u32 24, %s1202_s13  ;;  %334 = vmatpush.bf16.msra.mxu0 %v937_v43  ;;  %v941_v47 = vld [vmem:[%s1194_s1 + $0x38] sm:$0xff]  ;;  %v934_v50 = vld [vmem:[%s1194_s1] sm:$0xff]  ;;  %v940_v51 = vld [vmem:[%s1194_s1 + $0x30] sm:$0xff]  ;;  %vm275_vm2 = vcmask 392192   ;;  %vm327_vm10 = vcmask 523264  }
   0xd   : > { %478 = vmatpush.bf16.msra.mxu1 %v941_v47  ;;  %v939_v53 = vld [vmem:[%s1194_s1 + $0x28] sm:$0xff]  ;;  %v945_v54 = vld [vmem:[%s1194_s1 + $0x58] sm:$0xff]  ;;  %v938_v60 = vld [vmem:[%s1194_s1 + $0x20] sm:$0xff]  ;;  %vm368_vm3 = vsmask.f32 1280  ;;  %s933_s4 = sshll.u32 %s1202_s13, 4 }
   0xe   : > { %s1010_s17 = scalar_lea.vmem %s1193_s0, %s950_s14  ;;  %616 = vmatpush.bf16.msra.mxu2 %v945_v54  ;;  %v944_v61 = vld [vmem:[%s1194_s1 + $0x50] sm:$0xff]  ;;  %vm369_vm4 = vsmask.f32 3336  ;;  %vm371_vm5 = vsmask.f32 5392  ;;  %s1161_s7 = scalar_lea.vmem %s1196_s3, %s933_s4 }
   0xf   : > { %v1013_v0 = vld [vmem:[%s1010_s17 + $0x10] sm:$0x7]  ;;  %v1016_v1 = vld [vmem:[%s1010_s17 + $0xc] sm:$0x7]  ;;  %v1019_v2 = vld [vmem:[%s1010_s17 + $0x8] sm:$0x7] }
  0x10   : > { %v228_v3 = vunpack.c.l.b16 %v1013_v0  ;;  %v186_v4 = vunpack.c.l.b16 %v1016_v1  ;;  %v185_v5 = vunpack.c.l.b16 %v1019_v2  ;;  %v1025_v6 = vld [vmem:[%s1010_s17] sm:$0x7]  ;;  %v1028_v7 = vld [vmem:[%s1010_s17 + $0x4] sm:$0x7]  ;;  %v177_v31 = vld [vmem:[%s1010_s17 + $0x14] sm:$0x7]  ;;  %335 = vmatpush.bf16.msra.mxu0 %v936_v44 }
  0x11   : > { %v183_v8 = vunpack.c.l.b16 %v1025_v6  ;;  %v184_v9 = vunpack.c.l.b16 %v1028_v7  ;;  %v549_v33 = vunpack.c.l.b16 %v177_v31  ;;  %479 = vmatpush.bf16.msra.mxu1 %v940_v51  ;;  %vm373_vm6 = vsmask.f32 7448  ;;  %vm1099_vm7 = vmor %vm368_vm3, %vm369_vm4  ;;  %v946_v44 = vld [vmem:[%s1194_s1 + $0x60] sm:$0xff] }
  0x12   : > { %v229_v10 = vpack.c.b16 %v228_v3, %v228_v3  ;;  %v190_v11 = vpack.c.b16 %v186_v4, %v186_v4  ;;  %v189_v12 = vpack.c.b16 %v185_v5, %v185_v5  ;;  %617 = vmatpush.bf16.msra.mxu2 %v944_v61  ;;  %vm372_vm8 = vmor %vm1099_vm7, %vm371_vm5 }
  0x13   : > { %v187_v13 = vpack.c.b16 %v183_v8, %v183_v8  ;;  %v188_v14 = vpack.c.b16 %v184_v9, %v184_v9  ;;  %v550_v36 = vpack.c.b16 %v549_v33, %v549_v33  ;;  %v949_v8 = vld [vmem:[%s1194_s1 + $0x78] sm:$0xff]  ;;  %vm1116_vm9 = vmor %vm372_vm8, %vm373_vm6 }
  0x14   : > { %236 = vrot.lane.b32.xlu1 %v229_v10, %s972_s18  ;;  %234 = vrot.lane.b32.xlu0 %v190_v11, %s972_s18  ;;  %v206_v15 = vshrl.u32 %v189_v12, 16  ;;  %v208_v16 = vshll.u32 %v189_v12, 16  ;;  %v215_v22 = vshll.u32 %v190_v11, 16  ;;  %v213_v25 = vshrl.u32 %v190_v11, 16  ;;  %v948_v11 = vld [vmem:[%s1194_s1 + $0x70] sm:$0xff] }
  0x15   : > { %v192_v17 = vshrl.u32 %v187_v13, 16  ;;  %v194_v18 = vshll.u32 %v187_v13, 16  ;;  %230 = vrot.lane.b32.xlu2 %v188_v14, %s972_s18  ;;  %v201_v23 = vshll.u32 %v188_v14, 16  ;;  %v199_v27 = vshrl.u32 %v188_v14, 16  ;;  %336 = vmatpush.bf16.msra.mxu0 %v935_v46  ;;  %v942_v13 = vld [vmem:[%s1194_s1 + $0x40] sm:$0xff] }
  0x16   : > { %v210_v19 = vrot.slane %v208_v16, 1  ;;  %v217_v26 = vrot.slane %v215_v22, 1  ;;  %v241_v32 = vshll.u32 %v229_v10, 16  ;;  %v239_v34 = vshrl.u32 %v229_v10, 16  ;;  %480 = vmatpush.bf16.msra.mxu1 %v939_v53  ;;  %705 = vmatpush.bf16.msra.mxu3 %v949_v8 }
  0x17   : > { %v196_v20 = vrot.slane %v194_v18, 1  ;;  %v203_v28 = vrot.slane %v201_v23, 1  ;;  %v556_v37 = vshll.u32 %v550_v36, 16  ;;  %v554_v39 = vshrl.u32 %v550_v36, 16 }
  0x18   : > { %v211_v21 = vor.u32 %v210_v19, %v206_v15  ;;  %v218_v29 = vor.u32 %v217_v26, %v213_v25  ;;  %v243_v35 = vrot.slane %v241_v32, 1 }
  0x19   : > { %v197_v24 = vor.u32 %v196_v20, %v192_v17  ;;  %v204_v30 = vor.u32 %v203_v28, %v199_v27  ;;  %v558_v40 = vrot.slane %v556_v37, 1  ;;  %337 = vmatpush.bf16.msra.mxu0 %v934_v50 }
  0x1a   : > { %v244_v38 = vor.u32 %v243_v35, %v239_v34  ;;  %481 = vmatpush.bf16.msra.mxu1 %v938_v60  ;;  %706 = vmatpush.bf16.msra.mxu3 %v948_v11  ;;  %v947_v35 = vld [vmem:[%s1194_s1 + $0x68] sm:$0xff] }
  0x1b   : > { %v559_v41 = vor.u32 %v558_v40, %v554_v39 }
  0x1c   : > { %223 = vrot.lane.b32.xlu1 %v211_v21, %s973_s19  ;;  %219 = vrot.lane.b32.xlu0 %v197_v24, %s973_s19 }
  0x1d   : > { %232 = vrot.lane.b32.xlu2 %v189_v12, %s972_s18 }
  0x1e   : > { %707 = vmatpush.bf16.msra.mxu3 %v947_v35 }
  0x22   : > { %708 = vmatpush.bf16.msra.mxu3 %v946_v44 }
  0x24   : > { %225 = vrot.lane.b32.xlu1 %v218_v29, %s973_s19  ;;  %221 = vrot.lane.b32.xlu0 %v204_v30, %s973_s19 }
  0x25   : > { %245 = vrot.lane.b32.xlu2 %v204_v30, %s974_s20 }
  0x2c   : > { %249 = vrot.lane.b32.xlu1 %v218_v29, %s974_s20  ;;  %247 = vrot.lane.b32.xlu0 %v211_v21, %s974_s20 }
  0x2d   : > { %251 = vrot.lane.b32.xlu2 %v244_v38, %s974_s20 }
  0x34   : > { %546 = vrot.lane.b32.xlu0 %v244_v38, %s973_s19  ;;  %551 = vrot.lane.b32.xlu1 %v550_v36, %s972_s18 }
  0x35   : > { %560 = vrot.lane.b32.xlu2 %v559_v41, %s974_s20 }
  0x6f   : > { %v231_v42 = vpop.permute.xlu2 %230 }
  0x77   : > { %v233_v45 = vpop.permute.xlu2 %232 }
  0x7f   : > { %v246_v52 = vpop.permute.xlu2 %245 }
  0x86   : > { %v237_v48 = vpop.permute.xlu1 %236  ;;  %v235_v49 = vpop.permute.xlu0 %234 }
  0x87   : > { %v252_v62 = vpop.permute.xlu2 %251 }
  0x8e   : > { %v224_v55 = vpop.permute.xlu1 %223  ;;  %v220_v56 = vpop.permute.xlu0 %219 }
  0x8f   : > { %v256_v57 = vsel %vm253_vm0, %v1025_v6, %v220_v56  ;;  %v943_v6 = vld [vmem:[%s1194_s1 + $0x48] sm:$0xff] }
  0x90   : > { %v268_v58 = vsel %vm266_vm1, %v256_v57, %v231_v42  ;;  %618 = vmatpush.bf16.msra.mxu2 %v943_v6 }
  0x91   : > { %v277_v59 = vsel %vm275_vm2, %v268_v58, %v246_v52 }
  0x92   : > { %295 = vst [vmem:[#allocation1] ss:$4 sm:$0xff] %v277_v59  ;;  %v375_v63 = vshrl.u32 %v277_v59, 16  ;;  %v378_v3 = vshll.u32 %v277_v59, 16  ;;  %v364_v19 = vrot.slane %v277_v59, 2 }
  0x94   : > { %v377_v14 = vrot.slane %v375_v63, 6  ;;  %v380_v15 = vrot.slane %v378_v3, 7  ;;  %619 = vmatpush.bf16.msra.mxu2 %v942_v13  ;;  %v384_v36 = vshll.u32 %v364_v19, 16 }
  0x96   : > { %v226_v4 = vpop.permute.xlu1 %225  ;;  %v222_v5 = vpop.permute.xlu0 %221  ;;  %v381_v20 = vor.u32 %v380_v15, %v377_v14  ;;  %v386_v50 = vrot.slane %v384_v36, 7 }
  0x97   : > { %v265_v9 = vsel %vm253_vm0, %v1016_v1, %v226_v4  ;;  %v262_v1 = vsel %vm253_vm0, %v1019_v2, %v224_v55  ;;  %v259_v16 = vsel %vm253_vm0, %v1028_v7, %v222_v5  ;;  %v561_v5 = vpop.permute.xlu2 %560 }
  0x98   : > { %v274_v10 = vsel %vm266_vm1, %v265_v9, %v237_v48  ;;  %v272_v21 = vsel %vm266_vm1, %v262_v1, %v235_v49  ;;  %v270_v2 = vsel %vm266_vm1, %v259_v16, %v233_v45  ;;  %v382_v45 = vrot.slane %v381_v20, 2 }
  0x99   : > { %v1085_v12 = vsel %vm275_vm2, %v274_v10, %v252_v62 }
  0x9a   : > { %301 = vst [vmem:[#allocation1 + $0x3] ss:$4 sm:$0xff] %v1085_v12  ;;  %v414_v17 = vshrl.u32 %v1085_v12, 16  ;;  %v417_v18 = vshll.u32 %v1085_v12, 16  ;;  %v367_v28 = vrot.slane %v1085_v12, 2  ;;  %v387_v57 = vsel %vm1116_vm9, %v382_v45, %v386_v50 }
  0x9c   : > { %v416_v24 = vrot.slane %v414_v17, 6  ;;  %v419_v25 = vrot.slane %v417_v18, 7  ;;  %v423_v48 = vshll.u32 %v367_v28, 16 }
  0x9e   : > { %v250_v22 = vpop.permute.xlu1 %249  ;;  %v248_v23 = vpop.permute.xlu0 %247  ;;  %v420_v40 = vor.u32 %v419_v25, %v416_v24  ;;  %v425_v62 = vrot.slane %v423_v48, 7 }
  0x9f   : > { %v281_v26 = vsel %vm275_vm2, %v272_v21, %v250_v22  ;;  %v279_v27 = vsel %vm275_vm2, %v270_v2, %v248_v23 }
  0xa0   : > { %299 = vst [vmem:[#allocation1 + $0x2] ss:$4 sm:$0xff] %v281_v26  ;;  %v366_v29 = vrot.slane %v281_v26, 2  ;;  %v401_v30 = vshrl.u32 %v281_v26, 16  ;;  %v404_v31 = vshll.u32 %v281_v26, 16  ;;  %v365_v32 = vrot.slane %v279_v27, 2 }
  0xa1   : > { %297 = vst [vmem:[#allocation1 + $0x1] ss:$4 sm:$0xff] %v279_v27  ;;  %v388_v33 = vshrl.u32 %v279_v27, 16  ;;  %v391_v34 = vshll.u32 %v279_v27, 16  ;;  %v421_v54 = vrot.slane %v420_v40, 2 }
  0xa2   : > { %v403_v37 = vrot.slane %v401_v30, 6  ;;  %v406_v38 = vrot.slane %v404_v31, 7  ;;  %v410_v39 = vshll.u32 %v366_v29, 16  ;;  %v397_v43 = vshll.u32 %v365_v32, 16 }
  0xa3   : > { %v390_v41 = vrot.slane %v388_v33, 6  ;;  %v393_v42 = vrot.slane %v391_v34, 7  ;;  %v426_v3 = vsel %vm1116_vm9, %v421_v54, %v425_v62 }
  0xa4   : > { %v407_v46 = vor.u32 %v406_v38, %v403_v37  ;;  %v412_v52 = vrot.slane %v410_v39, 7  ;;  %v399_v56 = vrot.slane %v397_v43, 7 }
  0xa5   : > { %v394_v49 = vor.u32 %v393_v42, %v390_v41 }
  0xa6   : > { %v408_v51 = vrot.slane %v407_v46, 2  ;;  %v547_v53 = vpop.permute.xlu0 %546  ;;  %v552_v61 = vpop.permute.xlu1 %551 }
  0xa7   : > { %v395_v55 = vrot.slane %v394_v49, 2  ;;  %v564_v60 = vsel %vm253_vm0, %v1013_v0, %v547_v53  ;;  %vm524_vm0 = vcmask 64512  }
  0xa8   : > { %v413_v58 = vsel %vm1116_vm9, %v408_v51, %v412_v52  ;;  %v302_v59 = vld.sshfl [vmem:[#allocation1] sm:$0xff pattern:$0x73625140]  ;;  %v566_v4 = vsel %vm266_vm1, %v564_v60, %v552_v61  ;;  %vm541_vm1 = vcmask 123904  }
  0xa9   : > { %v400_v63 = vsel %vm1116_vm9, %v395_v55, %v399_v56  ;;  %437 = vst [vmem:[#allocation1] ss:$4 sm:$0xff] %v387_v57  ;;  %851 = vmatmul.msk.bf16.vlgmr.msra.gmra.mxu0 %vm327_vm10, %v302_v59  ;;  %v568_v6 = vsel %vm275_vm2, %v566_v4, %v561_v5 }
  0xaa   : > { %440 = vst [vmem:[#allocation1 + $0x1] ss:$4 sm:$0xff] %v400_v63  ;;  %v644_v0 = vshrl.u32 %v568_v6, 16  ;;  %v647_v8 = vshll.u32 %v568_v6, 16  ;;  %v643_v10 = vrot.slane %v568_v6, 2 }
  0xab   : > { %443 = vst [vmem:[#allocation1 + $0x2] ss:$4 sm:$0xff] %v413_v58 }
  0xac   : > { %446 = vst [vmem:[#allocation1 + $0x3] ss:$4 sm:$0xff] %v426_v3  ;;  %v646_v11 = vrot.slane %v644_v0, 6  ;;  %v649_v13 = vrot.slane %v647_v8, 7  ;;  %v653_v15 = vshll.u32 %v643_v10, 16 }
  0xae   : > { %v650_v14 = vor.u32 %v649_v13, %v646_v11  ;;  %v655_v16 = vrot.slane %v653_v15, 7 }
  0xb0   : > { %v651_v1 = vrot.slane %v650_v14, 2 }
  0xb2   : > { %v656_v18 = vsel %vm1116_vm9, %v651_v1, %v655_v16 }
  0xb3   : > { %v447_v9 = vld.sshfl [vmem:[#allocation1] sm:$0xff pattern:$0x73625140] }
  0xb4   : > { %578 = vst [vmem:[#allocation1] ss:$4 sm:$0xff] %v279_v27  ;;  %876 = vmatmul.msk.bf16.vlgmr.msra.gmra.mxu1 %vm327_vm10, %v447_v9 }
  0xb5   : > { %580 = vst [vmem:[#allocation1 + $0x1] ss:$4 sm:$0xff] %v281_v26 }
  0xb6   : > { %582 = vst [vmem:[#allocation1 + $0x2] ss:$4 sm:$0xff] %v1085_v12  ;;  %v1142_v12 = vld [vmem:[%s1195_s2] ss:$0 sm:$0xff] }
  0xb7   : > { %584 = vst [vmem:[#allocation1 + $0x3] ss:$4 sm:$0xff] %v568_v6 }
  0xbe   : > { %v585_v17 = vld.sshfl [vmem:[#allocation1] sm:$0xff pattern:$0x73625140] }
  0xbf   : > { %901 = vmatmul.msk.bf16.vlgmr.msra.gmra.mxu2 %vm327_vm10, %v585_v17  ;;  %666 = vst [vmem:[#allocation1] ss:$4 sm:$0xff] %v400_v63 }
  0xc0   : > { %668 = vst [vmem:[#allocation1 + $0x1] ss:$4 sm:$0xff] %v413_v58 }
  0xc1   : > { %670 = vst [vmem:[#allocation1 + $0x2] ss:$4 sm:$0xff] %v426_v3 }
  0xc2   : > { %673 = vst [vmem:[#allocation1 + $0x3] ss:$4 sm:$0xff] %v656_v18 }
  0xc9   : > { %v674_v19 = vld.sshfl [vmem:[#allocation1] sm:$0xff pattern:$0x73625140] }
  0xca   : > { %926 = vmatmul.msk.bf16.vlgmr.msra.gmra.mxu3 %vm327_vm10, %v674_v19 }
 0x126   : > { %v339_v62 = vpop.f32.mrf.mxu0 }
 0x127   : > { %v340_v9 = vadd.f32 %v1142_v12, %v339_v62 }
 0x129   : > { %v346_v11 = vmul.f32 0.2, %v340_v9  ;;  %vm344_vm2 = vcmp.gt.f32.partialorder %v340_v9, 0.0 }
 0x12b   : > { %v348_v14 = vsel %vm344_vm2, %v340_v9, %v346_v11 }
 0x12c   : > { %v352_v1 = vrot.slane %v348_v14, 4  ;;  %v356_v17 = vpack.c.bf16 %v348_v14, %v348_v14 }
 0x12e   : > { %v341_v63 = vpop.f32.mrf.mxu0 }
 0x12f   : > { %v342_v3 = vadd.f32 %v1142_v12, %v341_v63 }
 0x131   : > { %v483_v20 = vpop.f32.mrf.mxu1  ;;  %v347_v4 = vmul.f32 0.2, %v342_v3  ;;  %vm345_vm15 = vcmp.gt.f32.partialorder %v342_v3, 0.0 }
 0x132   : > { %v484_v21 = vadd.f32 %v1142_v12, %v483_v20 }
 0x133   : > { %v349_v5 = vsel %vm345_vm15, %v342_v3, %v347_v4 }
 0x134   : > { %vm488_vm11 = vcmp.gt.f32.partialorder %v484_v21, 0.0  ;;  %v490_v22 = vmul.f32 0.2, %v484_v21  ;;  %v358_v6 = vpack.c.bf16 %v349_v5, %v349_v5 }
 0x136   : > { %v492_v2 = vsel %vm488_vm11, %v484_v21, %v490_v22  ;;  %v357_v21 = vpack.c.bf16 %v352_v1, %v352_v1 }
 0x137   : > { %v500_v23 = vpack.c.bf16 %v492_v2, %v492_v2  ;;  %v496_v7 = vrot.slane %v492_v2, 4 }
 0x139   : > { %v485_v24 = vpop.f32.mrf.mxu1  ;;  %v508_v25 = vunpack.c.l.b16 %v500_v23  ;;  %v501_v26 = vpack.c.bf16 %v496_v7, %v496_v7  ;;  %v353_v23 = vrot.slane %v349_v5, 4 }
 0x13a   : > { %v486_v27 = vadd.f32 %v1142_v12, %v485_v24 }
 0x13b   : > { %v512_v28 = vpack.c.b16 %v508_v25, %v508_v25  ;;  %v509_v29 = vunpack.c.l.b16 %v501_v26  ;;  %v359_v26 = vpack.c.bf16 %v353_v23, %v353_v23 }
 0x13c   : > { %vm489_vm12 = vcmp.gt.f32.partialorder %v486_v27, 0.0  ;;  %v491_v30 = vmul.f32 0.2, %v486_v27 }
 0x13d   : > { %516 = vrot.lane.b32.xlu0 %v512_v28, %s975_s30  ;;  %v513_v31 = vpack.c.b16 %v509_v29, %v509_v29 }
 0x13e   : > { %v493_v32 = vsel %vm489_vm12, %v486_v27, %v491_v30 }
 0x13f   : > { %518 = vrot.lane.b32.xlu1 %v513_v31, %s975_s30  ;;  %v502_v33 = vpack.c.bf16 %v493_v32, %v493_v32  ;;  %v497_v34 = vrot.slane %v493_v32, 4 }
 0x141   : > { %v510_v35 = vunpack.c.l.b16 %v502_v33  ;;  %v503_v36 = vpack.c.bf16 %v497_v34, %v497_v34 }
 0x142   : > { %v621_v10 = vpop.f32.mrf.mxu2 }
 0x143   : > { %v514_v37 = vpack.c.b16 %v510_v35, %v510_v35  ;;  %v511_v38 = vunpack.c.l.b16 %v503_v36  ;;  %v622_v13 = vadd.f32 %v1142_v12, %v621_v10 }
 0x145   : > { %520 = vrot.lane.b32.xlu2 %v514_v37, %s975_s30  ;;  %v515_v39 = vpack.c.b16 %v511_v38, %v511_v38  ;;  %v628_v15 = vmul.f32 0.2, %v622_v13  ;;  %vm626_vm3 = vcmp.gt.f32.partialorder %v622_v13, 0.0 }
 0x147   : > { %522 = vrot.lane.b32.xlu0 %v515_v39, %s975_s30  ;;  %v630_v16 = vsel %vm626_vm3, %v622_v13, %v628_v15 }
 0x148   : > { %v634_v19 = vrot.slane %v630_v16, 4  ;;  %v638_v32 = vpack.c.bf16 %v630_v16, %v630_v16 }
 0x14a   : > { %v639_v7 = vpack.c.bf16 %v634_v19, %v634_v19  ;;  %v623_v29 = vpop.f32.mrf.mxu2 }
 0x14b   : > { %v624_v30 = vadd.f32 %v1142_v12, %v623_v29 }
 0x14d   : > { %v710_v40 = vpop.f32.mrf.mxu3  ;;  %v629_v31 = vmul.f32 0.2, %v624_v30  ;;  %vm627_vm4 = vcmp.gt.f32.partialorder %v624_v30, 0.0 }
 0x14e   : > { %v711_v41 = vadd.f32 %v1142_v12, %v710_v40 }
 0x14f   : > { %v631_v35 = vsel %vm627_vm4, %v624_v30, %v629_v31 }
 0x150   : > { %vm715_vm13 = vcmp.gt.f32.partialorder %v711_v41, 0.0  ;;  %v717_v42 = vmul.f32 0.2, %v711_v41  ;;  %v635_v36 = vrot.slane %v631_v35, 4  ;;  %v640_v37 = vpack.c.bf16 %v631_v35, %v631_v35 }
 0x152   : > { %v719_v43 = vsel %vm715_vm13, %v711_v41, %v717_v42  ;;  %v641_v40 = vpack.c.bf16 %v635_v36, %v635_v36 }
 0x153   : > { %v727_v44 = vpack.c.bf16 %v719_v43, %v719_v43  ;;  %v723_v45 = vrot.slane %v719_v43, 4 }
 0x155   : > { %v712_v46 = vpop.f32.mrf.mxu3  ;;  %v735_v47 = vunpack.c.l.b16 %v727_v44  ;;  %v728_v48 = vpack.c.bf16 %v723_v45, %v723_v45 }
 0x156   : > { %v713_v49 = vadd.f32 %v1142_v12, %v712_v46 }
 0x157   : > { %v739_v50 = vpack.c.b16 %v735_v47, %v735_v47  ;;  %v736_v51 = vunpack.c.l.b16 %v728_v48 }
 0x158   : > { %vm716_vm14 = vcmp.gt.f32.partialorder %v713_v49, 0.0  ;;  %v718_v52 = vmul.f32 0.2, %v713_v49 }
 0x159   : > { %743 = vrot.lane.b32.xlu1 %v739_v50, %s975_s30  ;;  %v740_v53 = vpack.c.b16 %v736_v51, %v736_v51 }
 0x15a   : > { %v720_v54 = vsel %vm716_vm14, %v713_v49, %v718_v52 }
 0x15b   : > { %745 = vrot.lane.b32.xlu2 %v740_v53, %s975_s30  ;;  %v729_v55 = vpack.c.bf16 %v720_v54, %v720_v54  ;;  %v724_v56 = vrot.slane %v720_v54, 4 }
 0x15d   : > { %v737_v57 = vunpack.c.l.b16 %v729_v55  ;;  %v730_v58 = vpack.c.bf16 %v724_v56, %v724_v56 }
 0x15f   : > { %v741_v59 = vpack.c.b16 %v737_v57, %v737_v57  ;;  %v738_v60 = vunpack.c.l.b16 %v730_v58 }
 0x161   : > { %747 = vrot.lane.b32.xlu0 %v741_v59, %s975_s30  ;;  %v742_v61 = vpack.c.b16 %v738_v60, %v738_v60 }
 0x163   : > { %749 = vrot.lane.b32.xlu1 %v742_v61, %s975_s30 }
 0x19f   : > { %v521_v0 = vpop.permute.xlu2 %520 }
 0x1a0   : > { %v535_v8 = vsel %vm524_vm0, %v358_v6, %v521_v0 }
 0x1a1   : > { %544 = vst.msk [vmem:[%s1161_s7 + $0x8] sm:$0x3] %vm541_vm1, %v535_v8 }
 0x1af   : > { %v517_v18 = vpop.permute.xlu0 %516 }
 0x1b0   : > { %v527_v20 = vsel %vm524_vm0, %v356_v17, %v517_v18 }
 0x1b1   : > { %542 = vst.msk [vmem:[%s1161_s7] sm:$0x3] %vm541_vm1, %v527_v20  ;;  %v519_v22 = vpop.permute.xlu1 %518 }
 0x1b2   : > { %v531_v2 = vsel %vm524_vm0, %v357_v21, %v519_v22 }
 0x1b3   : > { %543 = vst.msk [vmem:[%s1161_s7 + $0x4] sm:$0x3] %vm541_vm1, %v531_v2 }
 0x1b5   : > { %v746_v24 = vpop.permute.xlu2 %745 }
 0x1b6   : > { %v757_v25 = vsel %vm524_vm0, %v639_v7, %v746_v24 }
 0x1b7   : > { %928 = vst.msk [vmem:[%s1161_s7 + $0x6] sm:$0x3] %vm541_vm1, %v757_v25 }
 0x1b9   : > { %v523_v27 = vpop.permute.xlu0 %522 }
 0x1ba   : > { %v539_v28 = vsel %vm524_vm0, %v359_v26, %v523_v27 }
 0x1bb   : > { %545 = vst.msk [vmem:[%s1161_s7 + $0xc] sm:$0x3] %vm541_vm1, %v539_v28 }
 0x1cb   : > { %v744_v33 = vpop.permute.xlu1 %743 }
 0x1cc   : > { %v753_v34 = vsel %vm524_vm0, %v638_v32, %v744_v33 }
 0x1cd   : > { %927 = vst.msk [vmem:[%s1161_s7 + $0x2] sm:$0x3] %vm541_vm1, %v753_v34 }
 0x1d3   : > { %v748_v38 = vpop.permute.xlu0 %747 }
 0x1d4   : > { %v761_v39 = vsel %vm524_vm0, %v640_v37, %v748_v38 }
 0x1d5   : > { %929 = vst.msk [vmem:[%s1161_s7 + $0xa] sm:$0x3] %vm541_vm1, %v761_v39  ;;  %v750_v41 = vpop.permute.xlu1 %749 }
 0x1d6   : > { %v765_v12 = vsel %vm524_vm0, %v641_v40, %v750_v41 }
 0x1d7   : > { %930 = vst.msk [vmem:[%s1161_s7 + $0xe] sm:$0x3] %vm541_vm1, %v765_v12 }
 0x1d8 PF: > { %s13_s12 = sadd.s32 1, %s970_s12  }
 0x1d9   : > { %p10_p4 = scmp.ge.s32.totalorder %s13_s12, 4  }
 0x1db   :  { %12 = sbr.rel (!%p10_p4) target bundleno = 1 (0x1), region = 78 }

// kernel: decoder_forward.9
= control target key start
LH: loop header
LB: loop body
LE: loop exit
PB: predicated region body
PF: predicated region fallthrough
CT: control target
= control target key end

     0   :  { %s1239_s12 = smov 0   ;;  %s1725_s0 = inlined_call_operand.vmem [shape: bf16[2,10,10,8], index: 0, kind: input, shape index: {}]   ;;  %s1726_s1 = inlined_call_operand.vmem [shape: bf16[2,2,32,4], index: 1, kind: input, shape index: {}]   ;;  %s1727_s2 = inlined_call_operand.vmem [shape: f32[1,4], index: 2, kind: input, shape index: {}]   ;;  %s1728_s3 = inlined_call_operand.vmem [shape: f32[2,8,2,8,8], index: 3, kind: output, shape index: {}]  }
   0x1 LB: > { %s1101_s13 = sadd.s32 4294967295, %s1213_s12   ;;  %p1105_p0 = scmp.ge.s32.totalorder %s1213_s12, 1  ;;  %s1213_s12 = sphi %s1239_s12, %s13_s12  }
   0x2   : > { %p137_p1 = scmp.lt.s32.totalorder %s1213_s12, 3 }
   0x4   : > { %p138_p2 = pnand %p1105_p0, %p137_p1 }
   0x5   : > { %p161_p3 = scmp.lt.s32.totalorder (!%p138_p2), %s1101_s13, 1  ;;  %s1215_s18 = smov (!%p138_p2), 16  }
   0x6   : > { %141 = sbr.rel (%p138_p2) target bundleno = 484 (0x1e4), region = 32  ;;  %s1216_s19 = smov (!%p138_p2), 8  }
   0x7   : > { %s1217_s20 = smov (!%p138_p2), 24  }
   0xb   : > { %s1732_s13 = smov (!%p161_p3, %s1101_s13), 1  ;;  %vm382_vm0 = vcmask 130048   ;;  %vm357_vm1 = vcmask 64512   ;;  %vm399_vm2 = vcmask 195584   ;;  %vm585_vm3 = vsmask.f32 3328 }
   0xc   : > { %s1193_s14 = smul.u32 80, %s1732_s13  ;;  %vm586_vm4 = vsmask.f32 7440  ;;  %vm455_vm6 = vcmask 261120   ;;  %s1183_s15 = sshll.u32 %s1732_s13, 7  ;;  %vm802_vm7 = vcmask 31744  }
   0xd   : > { %vm1455_vm5 = vmor %vm585_vm3, %vm586_vm4 }
   0xe   : > { %s1253_s17 = scalar_lea.vmem %s1725_s0, %s1193_s14  ;;  %s1218_s14 = smov 4  }
   0xf   : > { %v1256_v0 = vld [vmem:[%s1253_s17 + $0x10] sm:$0xf]  ;;  %v177_v1 = vld [vmem:[%s1253_s17 + $0x14] sm:$0x1]  ;;  %v1111_v2 = vld [vmem:[%s1253_s17] sm:$0xf] }
  0x10   : > { %v1261_v3 = vunpack.c.l.b16 %v1256_v0  ;;  %v214_v4 = vunpack.c.l.b16 %v177_v1  ;;  %v1184_v5 = vld [vmem:[%s1253_s17] sm:$0x10]  ;;  %v1265_v6 = vld [vmem:[%s1253_s17 + $0x18] sm:$0xf]  ;;  %v179_v7 = vld [vmem:[%s1253_s17 + $0x1c] sm:$0x1] }
  0x11   : > { %v1268_v8 = vor.u32 %v1184_v5, %v1111_v2  ;;  %v1271_v9 = vunpack.c.l.b16 %v1265_v6  ;;  %v216_v10 = vunpack.c.l.b16 %v179_v7  ;;  %v1274_v11 = vld [vmem:[%s1253_s17 + $0x8] sm:$0xf]  ;;  %v175_v12 = vld [vmem:[%s1253_s17 + $0xc] sm:$0x1]  ;;  %v1296_v23 = vld [vmem:[%s1253_s17 + $0x20] sm:$0xf] }
  0x12   : > { %v1278_v13 = vpack.c.b16 %v214_v4, %v1261_v3  ;;  %v1281_v14 = vunpack.c.l.b16 %v1274_v11  ;;  %v212_v15 = vunpack.c.l.b16 %v175_v12  ;;  %v181_v24 = vld [vmem:[%s1253_s17 + $0x24] sm:$0x1]  ;;  %v1302_v30 = vunpack.c.l.b16 %v1296_v23  ;;  %v1317_v40 = vld [vmem:[%s1253_s17 + $0x28] sm:$0xf]  ;;  %v183_v41 = vld [vmem:[%s1253_s17 + $0x2c] sm:$0x1] }
  0x13   : > { %v234_v16 = vshrl.u32 %v1268_v8, 16  ;;  %v236_v17 = vshll.u32 %v1268_v8, 16  ;;  %v1286_v18 = vpack.c.b16 %v216_v10, %v1271_v9  ;;  %v218_v31 = vunpack.c.l.b16 %v181_v24  ;;  %v1324_v44 = vld [vmem:[%s1253_s17 + $0x30] sm:$0xf]  ;;  %v185_v45 = vld [vmem:[%s1253_s17 + $0x34] sm:$0x1] }
  0x14   : > { %499 = vrot.lane.b32.xlu1 %v1278_v13, %s1215_s18  ;;  %v248_v19 = vshrl.u32 %v1278_v13, 16  ;;  %v250_v20 = vshll.u32 %v1278_v13, 16  ;;  %v1293_v21 = vpack.c.b16 %v212_v15, %v1281_v14  ;;  %v1328_v46 = vunpack.c.l.b16 %v1317_v40  ;;  %v1349_v57 = vld [vmem:[%s1253_s17 + $0x38] sm:$0xf]  ;;  %v187_v58 = vld [vmem:[%s1253_s17 + $0x3c] sm:$0x1] }
  0x15   : > { %v238_v22 = vrot.slane %v236_v17, 1  ;;  %v257_v27 = vshll.u32 %v1286_v18, 16  ;;  %v255_v34 = vshrl.u32 %v1286_v18, 16  ;;  %v1311_v36 = vpack.c.b16 %v218_v31, %v1302_v30  ;;  %v1355_v61 = vld [vmem:[%s1253_s17 + $0x40] sm:$0xf] }
  0x16   : > { %v252_v25 = vrot.slane %v250_v20, 1  ;;  %v243_v26 = vshll.u32 %v1293_v21, 16  ;;  %v241_v32 = vshrl.u32 %v1293_v21, 16  ;;  %v220_v47 = vunpack.c.l.b16 %v183_v41  ;;  %v189_v62 = vld [vmem:[%s1253_s17 + $0x44] sm:$0x1] }
  0x17   : > { %v239_v28 = vor.u32 %v238_v22, %v234_v16  ;;  %v259_v35 = vrot.slane %v257_v27, 1  ;;  %v264_v39 = vshll.u32 %v1311_v36, 16  ;;  %v262_v42 = vshrl.u32 %v1311_v36, 16  ;;  %v190_v20 = vld [vmem:[%s1253_s17 + $0x48] sm:$0xf] }
  0x18   : > { %v253_v29 = vor.u32 %v252_v25, %v248_v19  ;;  %v245_v33 = vrot.slane %v243_v26, 1  ;;  %v1331_v49 = vunpack.c.l.b16 %v1324_v44  ;;  %v222_v50 = vunpack.c.l.b16 %v185_v45  ;;  %v191_v22 = vld [vmem:[%s1253_s17 + $0x4c] sm:$0x1] }
  0x19   : > { %289 = vrot.lane.b32.xlu0 %v239_v28, %s1216_s19  ;;  %v260_v38 = vor.u32 %v259_v35, %v255_v34  ;;  %v266_v43 = vrot.slane %v264_v39, 1  ;;  %v1336_v51 = vpack.c.b16 %v220_v47, %v1328_v46  ;;  %v223_v1 = vunpack.c.l.b16 %v1349_v57 }
  0x1a   : > { %343 = vrot.lane.b32.xlu2 %v253_v29, %s1217_s20  ;;  %v246_v37 = vor.u32 %v245_v33, %v241_v32  ;;  %v1340_v52 = vpack.c.b16 %v222_v50, %v1331_v49  ;;  %v224_v2 = vunpack.c.l.b16 %v187_v58  ;;  %v306_v5 = vunpack.c.l.b16 %v1355_v61  ;;  %v1192_v50 = vld [vmem:[%s1726_s1 + $0x38] sm:$0xff] }
  0x1b   : > { %v267_v48 = vor.u32 %v266_v43, %v262_v42  ;;  %v271_v53 = vshll.u32 %v1336_v51, 16  ;;  %v269_v55 = vshrl.u32 %v1336_v51, 16  ;;  %v332_v7 = vunpack.c.l.b16 %v189_v62  ;;  %974 = vmatpush.bf16.msra.mxu3 %v1192_v50 }
  0x1c   : > { %501 = vrot.lane.b32.xlu1 %v1286_v18, %s1215_s18  ;;  %v278_v54 = vshll.u32 %v1340_v52, 16  ;;  %v276_v59 = vshrl.u32 %v1340_v52, 16  ;;  %v1363_v10 = vpack.c.b16 %v224_v2, %v223_v1  ;;  %v822_v27 = vunpack.c.l.b16 %v190_v20 }
  0x1d   : > { %v273_v56 = vrot.slane %v271_v53, 1  ;;  %v1366_v12 = vpack.c.b16 %v332_v7, %v306_v5  ;;  %v827_v28 = vunpack.c.l.b16 %v191_v22  ;;  %v307_v39 = vpack.c.b16 %v1281_v14, %v1281_v14 }
  0x1e   : > { %v280_v60 = vrot.slane %v278_v54, 1  ;;  %v285_v15 = vshll.u32 %v1363_v10, 16  ;;  %v283_v17 = vshrl.u32 %v1363_v10, 16  ;;  %v311_v41 = vpack.c.b16 %v1328_v46, %v1328_v46 }
  0x1f   : > { %v274_v63 = vor.u32 %v273_v56, %v269_v55  ;;  %v337_v16 = vshll.u32 %v1366_v12, 16  ;;  %v335_v24 = vshrl.u32 %v1366_v12, 16  ;;  %v828_v31 = vpack.c.b16 %v827_v28, %v822_v27  ;;  %v1191_v55 = vld [vmem:[%s1726_s1 + $0x30] sm:$0xff] }
  0x20   : > { %v281_v4 = vor.u32 %v280_v60, %v276_v59  ;;  %v287_v19 = vrot.slane %v285_v15, 1  ;;  %v312_v42 = vpack.c.b16 %v1331_v49, %v1331_v49  ;;  %v314_v43 = vpack.c.b16 %v306_v5, %v306_v5  ;;  %v1187_v49 = vld [vmem:[%s1726_s1 + $0x10] sm:$0xff]  ;;  %975 = vmatpush.bf16.msra.mxu3 %v1191_v55 }
  0x21   : > { %291 = vrot.lane.b32.xlu0 %v246_v37, %s1216_s19  ;;  %v339_v25 = vrot.slane %v337_v16, 1  ;;  %v832_v32 = vshll.u32 %v828_v31, 16  ;;  %v830_v33 = vshrl.u32 %v828_v31, 16  ;;  %v823_v14 = vpack.c.b16 %v822_v27, %v822_v27 }
  0x22   : > { %345 = vrot.lane.b32.xlu2 %v260_v38, %s1217_s20  ;;  %v288_v26 = vor.u32 %v287_v19, %v283_v17 }
  0x23   : > { %v834_v34 = vrot.slane %v832_v32, 1 }
  0x24   : > { %497 = vrot.lane.b32.xlu1 %v1293_v21, %s1215_s18 }
  0x25   : > { %v835_v35 = vor.u32 %v834_v34, %v830_v33 }
  0x29   : > { %293 = vrot.lane.b32.xlu0 %v253_v29, %s1216_s19  ;;  %v340_v29 = vor.u32 %v339_v25, %v335_v24 }
  0x2a   : > { %341 = vrot.lane.b32.xlu2 %v246_v37, %s1217_s20  ;;  %v309_v37 = vpack.c.b16 %v1271_v9, %v1271_v9  ;;  %v310_v9 = vpack.c.b16 %v1302_v30, %v1302_v30  ;;  %v1188_v30 = vld [vmem:[%s1726_s1 + $0x18] sm:$0xff] }
  0x2b   : > { %747 = vmatpush.bf16.msra.mxu1 %v1188_v30 }
  0x2c   : > { %297 = vrot.lane.b32.xlu1 %v267_v48, %s1216_s19 }
  0x2f   : > { %748 = vmatpush.bf16.msra.mxu1 %v1187_v49 }
  0x31   : > { %295 = vrot.lane.b32.xlu0 %v260_v38, %s1216_s19  ;;  %v308_v38 = vpack.c.b16 %v1261_v3, %v1261_v3  ;;  %v313_v3 = vpack.c.b16 %v223_v1, %v223_v1 }
  0x32   : > { %503 = vrot.lane.b32.xlu2 %v1311_v36, %s1215_s18 }
  0x34   : > { %347 = vrot.lane.b32.xlu1 %v267_v48, %s1217_s20 }
  0x39   : > { %505 = vrot.lane.b32.xlu0 %v1336_v51, %s1215_s18 }
  0x3a   : > { %349 = vrot.lane.b32.xlu2 %v274_v63, %s1217_s20 }
  0x3c   : > { %301 = vrot.lane.b32.xlu1 %v281_v4, %s1216_s19 }
  0x41   : > { %299 = vrot.lane.b32.xlu0 %v274_v63, %s1216_s19 }
  0x42   : > { %507 = vrot.lane.b32.xlu2 %v1340_v52, %s1215_s18 }
  0x44   : > { %351 = vrot.lane.b32.xlu1 %v281_v4, %s1217_s20 }
  0x49   : > { %509 = vrot.lane.b32.xlu0 %v1363_v10, %s1215_s18 }
  0x4a   : > { %353 = vrot.lane.b32.xlu2 %v288_v26, %s1217_s20 }
  0x4c   : > { %819 = vrot.lane.b32.xlu1 %v340_v29, %s1216_s19 }
  0x51   : > { %303 = vrot.lane.b32.xlu0 %v288_v26, %s1216_s19 }
  0x52   : > { %511 = vrot.lane.b32.xlu2 %v1366_v12, %s1215_s18 }
  0x54   : > { %355 = vrot.lane.b32.xlu1 %v340_v29, %s1217_s20 }
  0x59   : > { %909 = vrot.lane.b32.xlu0 %v828_v31, %s1215_s18 }
  0x5a   : > { %836 = vrot.lane.b32.xlu2 %v835_v35, %s1217_s20 }
  0x5c   : > { %319 = vrot.lane.b32.xlu1 %v309_v37, %s1215_s18 }
  0x61   : > { %317 = vrot.lane.b32.xlu0 %v308_v38, %s1215_s18 }
  0x62   : > { %315 = vrot.lane.b32.xlu2 %v307_v39, %s1215_s18 }
  0x64   : > { %323 = vrot.lane.b32.xlu1 %v311_v41, %s1215_s18 }
  0x69   : > { %321 = vrot.lane.b32.xlu0 %v310_v9, %s1215_s18 }
  0x6a   : > { %325 = vrot.lane.b32.xlu2 %v312_v42, %s1215_s18 }
  0x6c   : > { %329 = vrot.lane.b32.xlu1 %v314_v43, %s1215_s18 }
  0x71   : > { %327 = vrot.lane.b32.xlu0 %v313_v3, %s1215_s18 }
  0x72   : > { %824 = vrot.lane.b32.xlu2 %v823_v14, %s1215_s18  ;;  %s1657_s18 = scalar_lea.vmem %s1728_s3, %s1183_s15 }
  0x74   : > { %v1409_v45 = vpop.permute.xlu2 %343 }
  0x7c   : > { %v1411_v46 = vpop.permute.xlu2 %345 }
  0x84   : > { %v1416_v48 = vpop.permute.xlu2 %341 }
  0x86   : > { %v500_v47 = vpop.permute.xlu1 %499 }
  0x8b   : > { %v1424_v53 = vpop.permute.xlu0 %289 }
  0x8c   : > { %v504_v56 = vpop.permute.xlu2 %503  ;;  %v513_v62 = vsel %vm357_vm1, %v1268_v8, %v1424_v53 }
  0x8e   : > { %v502_v54 = vpop.permute.xlu1 %501 }
  0x93   : > { %v1429_v58 = vpop.permute.xlu0 %291 }
  0x94   : > { %v514_v59 = vsel %vm357_vm1, %v1293_v21, %v1429_v58  ;;  %v1443_v22 = vpop.permute.xlu2 %349 }
  0x95   : > { %v524_v60 = vsel %vm382_vm0, %v514_v59, %v500_v47 }
  0x96   : > { %v538_v63 = vsel %vm399_vm2, %v524_v60, %v1409_v45  ;;  %v498_v1 = vpop.permute.xlu1 %497 }
  0x97   : > { %v555_v2 = vunpack.c.l.b16 %v538_v63  ;;  %v556_v4 = vunpack.c.h.b16 %v538_v63  ;;  %v522_v5 = vsel %vm382_vm0, %v513_v62, %v498_v1 }
  0x98   : > { %v537_v7 = vsel %vm399_vm2, %v522_v5, %v1416_v48 }
  0x99   : > { %v571_v15 = vpack.c.b16 %v555_v2, %v555_v2  ;;  %v553_v16 = vunpack.c.l.b16 %v537_v7  ;;  %v554_v21 = vunpack.c.h.b16 %v537_v7  ;;  %v572_v17 = vpack.c.b16 %v556_v4, %v556_v4 }
  0x9b   : > { %v603_v19 = vshrl.u32 %v571_v15, 16  ;;  %v606_v20 = vshll.u32 %v571_v15, 16  ;;  %v569_v8 = vpack.c.b16 %v553_v16, %v553_v16  ;;  %v1445_v24 = vpop.permute.xlu0 %293  ;;  %v570_v28 = vpack.c.b16 %v554_v21, %v554_v21 }
  0x9c   : > { %v515_v25 = vsel %vm357_vm1, %v1278_v13, %v1445_v24  ;;  %v612_v34 = vshll.u32 %v572_v17, 16  ;;  %v508_v60 = vpop.permute.xlu2 %507 }
  0x9d   : > { %v605_v26 = vrot.slane %v603_v19, 4  ;;  %v608_v27 = vrot.slane %v606_v20, 5  ;;  %v589_v29 = vshrl.u32 %v569_v8, 16  ;;  %v592_v31 = vshll.u32 %v569_v8, 16 }
  0x9e   : > { %v526_v32 = vsel %vm382_vm0, %v515_v25, %v502_v54  ;;  %v1451_v33 = vpop.permute.xlu1 %297  ;;  %v598_v13 = vshll.u32 %v570_v28, 16  ;;  %v614_v14 = vrot.slane %v612_v34, 5 }
  0x9f   : > { %v591_v35 = vrot.slane %v589_v29, 4  ;;  %v539_v37 = vsel %vm399_vm2, %v526_v32, %v1411_v46  ;;  %v594_v38 = vrot.slane %v592_v31, 5  ;;  %v609_v9 = vor.u32 %v608_v27, %v605_v26 }
  0xa0   : > { %v557_v39 = vunpack.c.l.b16 %v539_v37  ;;  %v558_v41 = vunpack.c.h.b16 %v539_v37  ;;  %v600_v59 = vrot.slane %v598_v13, 5 }
  0xa1   : > { %v595_v42 = vor.u32 %v594_v38, %v591_v35  ;;  %v610_v49 = vrot.slane %v609_v9, 4 }
  0xa2   : > { %v573_v43 = vpack.c.b16 %v557_v39, %v557_v39  ;;  %v574_v30 = vpack.c.b16 %v558_v41, %v558_v41 }
  0xa3   : > { %v1459_v47 = vpop.permute.xlu0 %295  ;;  %v596_v50 = vrot.slane %v595_v42, 4  ;;  %v615_v63 = vsel %vm1455_vm5, %v610_v49, %v614_v14 }
  0xa4   : > { %v617_v54 = vshrl.u32 %v573_v43, 16  ;;  %v620_v55 = vshll.u32 %v573_v43, 16  ;;  %v516_v62 = vsel %vm357_vm1, %v1286_v18, %v1459_v47  ;;  %v626_v7 = vshll.u32 %v574_v30, 16 }
  0xa5   : > { %v528_v5 = vsel %vm382_vm0, %v516_v62, %v504_v56  ;;  %v601_v16 = vsel %vm1455_vm5, %v596_v50, %v600_v59  ;;  %v706_v21 = vunpack.c.l.b16 %v615_v63  ;;  %v517_v56 = vsel %vm357_vm1, %v1311_v36, %v1451_v33  ;;  %v1484_v36 = vpop.permute.xlu2 %353 }
  0xa6   : > { %v619_v1 = vrot.slane %v617_v54, 4  ;;  %v622_v2 = vrot.slane %v620_v55, 5  ;;  %v1466_v4 = vpop.permute.xlu1 %347  ;;  %v705_v18 = vunpack.c.l.b16 %v601_v16  ;;  %v628_v27 = vrot.slane %v626_v7, 5  ;;  %v1190_v16 = vld [vmem:[%s1726_s1 + $0x28] sm:$0xff] }
  0xa7   : > { %v540_v15 = vsel %vm399_vm2, %v528_v5, %v1466_v4  ;;  %886 = vmatpush.bf16.msra.mxu2 %v1190_v16 }
  0xa8   : > { %v559_v17 = vunpack.c.l.b16 %v540_v15  ;;  %v560_v19 = vunpack.c.h.b16 %v540_v15  ;;  %v623_v20 = vor.u32 %v622_v2, %v619_v1  ;;  %v713_v25 = vpack.c.b16 %v706_v21, %v705_v18  ;;  %v1186_v15 = vld [vmem:[%s1726_s1 + $0x8] sm:$0xff] }
  0xa9   : > { %474 = vmatpush.bf16.msra.mxu0 %v1186_v15 }
  0xaa   : > { %v575_v8 = vpack.c.b16 %v559_v17, %v559_v17  ;;  %v624_v26 = vrot.slane %v623_v20, 4  ;;  %v576_v28 = vpack.c.b16 %v560_v19, %v560_v19  ;;  %1137 = vmatmul.msk.bf16.vlgmr.msra.gmra.mxu1 %vm455_vm6, %v713_v25 }
  0xab   : > { %v506_v29 = vpop.permute.xlu0 %505 }
  0xac   : > { %v631_v31 = vshrl.u32 %v575_v8, 16  ;;  %v634_v32 = vshll.u32 %v575_v8, 16  ;;  %v530_v34 = vsel %vm382_vm0, %v517_v56, %v506_v29  ;;  %v629_v37 = vsel %vm1455_vm5, %v624_v26, %v628_v27 }
  0xad   : > { %v541_v35 = vsel %vm399_vm2, %v530_v34, %v1443_v22  ;;  %v640_v9 = vshll.u32 %v576_v28, 16  ;;  %v707_v43 = vunpack.c.l.b16 %v629_v37  ;;  %v1189_v28 = vld [vmem:[%s1726_s1 + $0x20] sm:$0xff]  ;;  %v512_v29 = vpop.permute.xlu2 %511 }
  0xae   : > { %v633_v38 = vrot.slane %v631_v31, 4  ;;  %v636_v39 = vrot.slane %v634_v32, 5  ;;  %v561_v41 = vunpack.c.l.b16 %v541_v35  ;;  %v1482_v13 = vpop.permute.xlu1 %301  ;;  %v562_v42 = vunpack.c.h.b16 %v541_v35  ;;  %887 = vmatpush.bf16.msra.mxu2 %v1189_v28 }
  0xaf   : > { %v940_v50 = vpack.c.b16 %v707_v43, %v706_v21  ;;  %v642_v62 = vrot.slane %v640_v9, 5  ;;  %v519_v34 = vsel %vm357_vm1, %v1340_v52, %v1482_v13 }
  0xb0   : > { %v637_v14 = vor.u32 %v636_v39, %v633_v38  ;;  %v577_v30 = vpack.c.b16 %v561_v41, %v561_v41  ;;  %v578_v49 = vpack.c.b16 %v562_v42, %v562_v42 }
  0xb1   : > { %1169 = vmatmul.msk.bf16.vlgmr.msra.gmra.mxu3 %vm455_vm6, %v940_v50 }
  0xb2   : > { %v638_v54 = vrot.slane %v637_v14, 4  ;;  %v645_v55 = vshrl.u32 %v577_v30, 16  ;;  %v648_v59 = vshll.u32 %v577_v30, 16  ;;  %v654_v63 = vshll.u32 %v578_v49, 16 }
  0xb3   : > { %v1487_v1 = vpop.permute.xlu0 %299 }
  0xb4   : > { %v647_v2 = vrot.slane %v645_v55, 4  ;;  %v650_v5 = vrot.slane %v648_v59, 5  ;;  %v518_v7 = vsel %vm357_vm1, %v1336_v51, %v1487_v1  ;;  %v643_v17 = vsel %vm1455_vm5, %v638_v54, %v642_v62 }
  0xb5   : > { %v532_v21 = vsel %vm382_vm0, %v518_v7, %v508_v60  ;;  %v708_v20 = vunpack.c.l.b16 %v643_v17  ;;  %v656_v51 = vrot.slane %v654_v63, 5  ;;  %v1185_v60 = vld [vmem:[%s1726_s1] sm:$0xff]  ;;  %v1522_v7 = vpop.permute.xlu2 %836 }
  0xb6   : > { %v651_v19 = vor.u32 %v650_v5, %v647_v2  ;;  %v1501_v18 = vpop.permute.xlu1 %351  ;;  %475 = vmatpush.bf16.msra.mxu0 %v1185_v60 }
  0xb7   : > { %v542_v8 = vsel %vm399_vm2, %v532_v21, %v1501_v18  ;;  %v714_v56 = vpack.c.b16 %v708_v20, %v707_v43 }
  0xb8   : > { %v652_v25 = vrot.slane %v651_v19, 4  ;;  %v563_v26 = vunpack.c.l.b16 %v542_v8  ;;  %v564_v27 = vunpack.c.h.b16 %v542_v8 }
  0xba   : > { %v579_v31 = vpack.c.b16 %v563_v26, %v563_v26  ;;  %v657_v32 = vsel %vm1455_vm5, %v652_v25, %v656_v51  ;;  %v580_v35 = vpack.c.b16 %v564_v27, %v564_v27  ;;  %1138 = vmatmul.msk.bf16.gmra.mxu1 %vm455_vm6, %v714_v56 }
  0xbb   : > { %v510_v37 = vpop.permute.xlu0 %509  ;;  %v709_v38 = vunpack.c.l.b16 %v657_v32 }
  0xbc   : > { %v659_v39 = vshrl.u32 %v579_v31, 16  ;;  %v662_v41 = vshll.u32 %v579_v31, 16  ;;  %v534_v9 = vsel %vm382_vm0, %v519_v34, %v510_v37  ;;  %v668_v50 = vshll.u32 %v580_v35, 16 }
  0xbd   : > { %v543_v42 = vsel %vm399_vm2, %v534_v9, %v1484_v36  ;;  %v941_v52 = vpack.c.b16 %v709_v38, %v708_v20  ;;  %v172_v9 = vld [vmem:[%s1253_s17] sm:$0xf] }
  0xbe   : > { %v661_v43 = vrot.slane %v659_v39, 4  ;;  %v664_v14 = vrot.slane %v662_v41, 5  ;;  %v565_v30 = vunpack.c.l.b16 %v543_v42  ;;  %v1520_v49 = vpop.permute.xlu1 %819  ;;  %v566_v54 = vunpack.c.h.b16 %v543_v42 }
  0xbf   : > { %v670_v15 = vrot.slane %v668_v50, 5  ;;  %v911_v37 = vsel %vm357_vm1, %v1366_v12, %v1520_v49  ;;  %v360_v12 = vsel %vm357_vm1, %v172_v9, %v1424_v53  ;;  %v363_v53 = vsel %vm357_vm1, %v1274_v11, %v1429_v58 }
  0xc0   : > { %v665_v55 = vor.u32 %v664_v14, %v661_v43  ;;  %v581_v59 = vpack.c.b16 %v565_v30, %v565_v30  ;;  %v582_v62 = vpack.c.b16 %v566_v54, %v566_v54  ;;  %v316_v30 = vpop.permute.xlu2 %315 }
  0xc1   : > { %1170 = vmatmul.msk.bf16.gmra.mxu3 %vm455_vm6, %v941_v52 }
  0xc2   : > { %v666_v63 = vrot.slane %v665_v55, 4  ;;  %v673_v2 = vshrl.u32 %v581_v59, 16  ;;  %v676_v5 = vshll.u32 %v581_v59, 16  ;;  %v682_v16 = vshll.u32 %v582_v62, 16 }
  0xc3   : > { %v1525_v21 = vpop.permute.xlu0 %303  ;;  %v366_v62 = vsel %vm357_vm1, %v1256_v0, %v1445_v24 }
  0xc4   : > { %v675_v17 = vrot.slane %v673_v2, 4  ;;  %v678_v19 = vrot.slane %v676_v5, 5  ;;  %v520_v20 = vsel %vm357_vm1, %v1363_v10, %v1525_v21  ;;  %v671_v8 = vsel %vm1455_vm5, %v666_v63, %v670_v15 }
  0xc5   : > { %v536_v51 = vsel %vm382_vm0, %v520_v20, %v512_v29  ;;  %v710_v27 = vunpack.c.l.b16 %v671_v8  ;;  %v684_v56 = vrot.slane %v682_v16, 5  ;;  %v384_v5 = vsel %vm382_vm0, %v360_v12, %v316_v30 }
  0xc6   : > { %v679_v25 = vor.u32 %v678_v19, %v675_v17  ;;  %v1533_v26 = vpop.permute.xlu1 %355  ;;  %v401_v0 = vsel %vm399_vm2, %v384_v5, %v1416_v48 }
  0xc7   : > { %v544_v60 = vsel %vm399_vm2, %v536_v51, %v1533_v26  ;;  %v715_v34 = vpack.c.b16 %v710_v27, %v709_v38 }
  0xc8   : > { %v680_v28 = vrot.slane %v679_v25, 4  ;;  %v567_v31 = vunpack.c.l.b16 %v544_v60  ;;  %v568_v32 = vunpack.c.h.b16 %v544_v60  ;;  %v326_v12 = vpop.permute.xlu2 %325 }
  0xca   : > { %v583_v35 = vpack.c.b16 %v567_v31, %v567_v31  ;;  %v584_v10 = vpack.c.b16 %v568_v32, %v568_v32  ;;  %v685_v29 = vsel %vm1455_vm5, %v680_v28, %v684_v56  ;;  %1139 = vmatmul.msk.bf16.gmra.mxu1 %vm455_vm6, %v715_v34  ;;  %v431_v34 = vunpack.c.l.b16 %v401_v0 }
  0xcb   : > { %v910_v39 = vpop.permute.xlu0 %909  ;;  %v711_v41 = vunpack.c.l.b16 %v685_v29 }
  0xcc   : > { %v687_v42 = vshrl.u32 %v583_v35, 16  ;;  %v690_v43 = vshll.u32 %v583_v35, 16  ;;  %v913_v14 = vsel %vm382_vm0, %v911_v37, %v910_v39  ;;  %v696_v52 = vshll.u32 %v584_v10, 16 }
  0xcd   : > { %v914_v38 = vsel %vm399_vm2, %v913_v14, %v1522_v7  ;;  %v942_v2 = vpack.c.b16 %v711_v41, %v710_v27 }
  0xce   : > { %v689_v50 = vrot.slane %v687_v42, 4  ;;  %v692_v54 = vrot.slane %v690_v43, 5  ;;  %v916_v55 = vunpack.c.l.b16 %v914_v38  ;;  %v320_v59 = vpop.permute.xlu1 %319  ;;  %v917_v63 = vunpack.c.h.b16 %v914_v38 }
  0xcf   : > { %v388_v17 = vsel %vm382_vm0, %v366_v62, %v320_v59  ;;  %v698_v51 = vrot.slane %v696_v52, 5 }
  0xd0   : > { %v693_v15 = vor.u32 %v692_v54, %v689_v50  ;;  %v918_v16 = vpack.c.b16 %v916_v55, %v916_v55  ;;  %v919_v19 = vpack.c.b16 %v917_v63, %v917_v63  ;;  %v405_v27 = vsel %vm399_vm2, %v388_v17, %v1411_v46 }
  0xd1   : > { %1171 = vmatmul.msk.bf16.gmra.mxu3 %vm455_vm6, %v942_v2  ;;  %v433_v35 = vunpack.c.l.b16 %v405_v27 }
  0xd2   : > { %v694_v20 = vrot.slane %v693_v15, 4  ;;  %v921_v8 = vshrl.u32 %v918_v16, 16  ;;  %v924_v25 = vshll.u32 %v918_v16, 16  ;;  %v930_v24 = vshll.u32 %v919_v19, 16 }
  0xd3   : > { %v318_v56 = vpop.permute.xlu0 %317 }
  0xd4   : > { %v923_v60 = vrot.slane %v921_v8, 4  ;;  %v926_v28 = vrot.slane %v924_v25, 5  ;;  %v386_v31 = vsel %vm382_vm0, %v363_v53, %v318_v56  ;;  %v699_v32 = vsel %vm1455_vm5, %v694_v20, %v698_v51 }
  0xd5   : > { %v403_v11 = vsel %vm399_vm2, %v386_v31, %v1409_v45  ;;  %v712_v58 = vunpack.c.l.b16 %v699_v32  ;;  %v932_v29 = vrot.slane %v930_v24, 5  ;;  %v369_v45 = vsel %vm357_vm1, %v1265_v6, %v1459_v47 }
  0xd6   : > { %v927_v48 = vor.u32 %v926_v28, %v923_v60  ;;  %v432_v10 = vunpack.c.l.b16 %v403_v11  ;;  %v324_v30 = vpop.permute.xlu1 %323 }
  0xd7   : > { %v716_v9 = vpack.c.b16 %v712_v58, %v711_v41  ;;  %v372_v41 = vsel %vm357_vm1, %v1296_v23, %v1451_v33  ;;  %v378_v33 = vsel %vm357_vm1, %v1324_v44, %v1482_v13  ;;  %v825_v13 = vpop.permute.xlu2 %824 }
  0xd8   : > { %v928_v46 = vrot.slane %v927_v48, 4  ;;  %v439_v37 = vpack.c.b16 %v432_v10, %v431_v34  ;;  %v852_v39 = vpack.c.b16 %v433_v35, %v432_v10  ;;  %v392_v54 = vsel %vm382_vm0, %v372_v41, %v324_v30 }
  0xd9   : > { %v409_v52 = vsel %vm399_vm2, %v392_v54, %v1443_v22  ;;  %v375_v22 = vsel %vm357_vm1, %v1317_v40, %v1487_v1  ;;  %v381_v40 = vsel %vm357_vm1, %v1349_v57, %v1525_v21  ;;  %v1618_v57 = vld [vmem:[%s1727_s2] ss:$0 sm:$0xff] }
  0xda   : > { %1121 = vmatmul.msk.bf16.vlgmr.msra.gmra.mxu0 %vm455_vm6, %v439_v37  ;;  %1153 = vmatmul.msk.bf16.vlgmr.msra.gmra.mxu2 %vm455_vm6, %v852_v39  ;;  %v933_v42 = vsel %vm1455_vm5, %v928_v46, %v932_v29  ;;  %v435_v6 = vunpack.c.l.b16 %v409_v52  ;;  %v394_v62 = vsel %vm382_vm0, %v375_v22, %v326_v12 }
  0xdb   : > { %v322_v43 = vpop.permute.xlu0 %321  ;;  %v939_v14 = vunpack.c.l.b16 %v933_v42  ;;  %1140 = vmatmul.msk.bf16.gmra.mxu1 %vm455_vm6, %v716_v9  ;;  %v411_v2 = vsel %vm399_vm2, %v394_v62, %v1501_v18 }
  0xdc   : > { %v390_v38 = vsel %vm382_vm0, %v369_v45, %v322_v43  ;;  %v436_v15 = vunpack.c.l.b16 %v411_v2 }
  0xdd   : > { %v943_v50 = vpack.c.b16 %v939_v14, %v712_v58  ;;  %v407_v3 = vsel %vm399_vm2, %v390_v38, %v1466_v4 }
  0xde   : > { %v434_v55 = vunpack.c.l.b16 %v407_v3  ;;  %v441_v16 = vpack.c.b16 %v436_v15, %v435_v6  ;;  %v330_v44 = vpop.permute.xlu1 %329 }
  0xdf   : > { %v398_v1 = vsel %vm382_vm0, %v381_v40, %v330_v44 }
  0xe0   : > { %v440_v47 = vpack.c.b16 %v434_v55, %v433_v35  ;;  %v853_v59 = vpack.c.b16 %v435_v6, %v434_v55  ;;  %v415_v19 = vsel %vm399_vm2, %v398_v1, %v1533_v26 }
  0xe1   : > { %1172 = vmatmul.msk.bf16.gmra.mxu3 %vm455_vm6, %v943_v50  ;;  %v438_v51 = vunpack.c.l.b16 %v415_v19 }
  0xe3   : > { %v328_v23 = vpop.permute.xlu0 %327 }
  0xe4   : > { %v396_v4 = vsel %vm382_vm0, %v378_v33, %v328_v23 }
  0xe5   : > { %v413_v63 = vsel %vm399_vm2, %v396_v4, %v1484_v36  ;;  %v840_v36 = vsel %vm357_vm1, %v1355_v61, %v1520_v49 }
  0xe6   : > { %v437_v5 = vunpack.c.l.b16 %v413_v63  ;;  %v842_v18 = vsel %vm382_vm0, %v840_v36, %v825_v13 }
  0xe7   : > { %v844_v20 = vsel %vm399_vm2, %v842_v18, %v1522_v7 }
  0xe8   : > { %v854_v17 = vpack.c.b16 %v437_v5, %v436_v15  ;;  %v851_v8 = vunpack.c.l.b16 %v844_v20  ;;  %v442_v25 = vpack.c.b16 %v438_v51, %v437_v5 }
  0xea   : > { %1122 = vmatmul.msk.bf16.gmra.mxu0 %vm455_vm6, %v440_v47  ;;  %1154 = vmatmul.msk.bf16.gmra.mxu2 %vm455_vm6, %v853_v59  ;;  %v855_v53 = vpack.c.b16 %v851_v8, %v438_v51 }
  0xfa   : > { %1123 = vmatmul.msk.bf16.gmra.mxu0 %vm455_vm6, %v441_v16  ;;  %1155 = vmatmul.msk.bf16.gmra.mxu2 %vm455_vm6, %v854_v17 }
 0x10a   : > { %1124 = vmatmul.msk.bf16.gmra.mxu0 %vm455_vm6, %v442_v25  ;;  %1156 = vmatmul.msk.bf16.gmra.mxu2 %vm455_vm6, %v855_v53 }
 0x127   : > { %v750_v61 = vpop.f32.mrf.mxu1 }
 0x128   : > { %v751_v49 = vadd.f32 %v1618_v57, %v750_v61 }
 0x12a   : > { %778 = vrot.lane.b32.xlu0 %v751_v49, %s1218_s14 }
 0x12f   : > { %v752_v7 = vpop.f32.mrf.mxu1 }
 0x130   : > { %v753_v21 = vadd.f32 %v1618_v57, %v752_v7 }
 0x132   : > { %780 = vrot.lane.b32.xlu1 %v753_v21, %s1218_s14 }
 0x134   : > { %v977_v26 = vpop.f32.mrf.mxu3 }
 0x135   : > { %v978_v0 = vadd.f32 %v1618_v57, %v977_v26 }
 0x137   : > { %1005 = vrot.lane.b32.xlu2 %v978_v0, %s1218_s14  ;;  %v755_v24 = vpop.f32.mrf.mxu1 }
 0x138   : > { %v756_v56 = vadd.f32 %v1618_v57, %v755_v24 }
 0x13c   : > { %v979_v27 = vpop.f32.mrf.mxu3 }
 0x13d   : > { %v980_v60 = vadd.f32 %v1618_v57, %v979_v27 }
 0x13f   : > { %1007 = vrot.lane.b32.xlu0 %v980_v60, %s1218_s14  ;;  %782 = vrot.lane.b32.xlu2 %v756_v56, %s1218_s14  ;;  %v757_v28 = vpop.f32.mrf.mxu1 }
 0x140   : > { %v758_v32 = vadd.f32 %v1618_v57, %v757_v28 }
 0x144   : > { %v982_v31 = vpop.f32.mrf.mxu3 }
 0x145   : > { %v983_v11 = vadd.f32 %v1618_v57, %v982_v31 }
 0x147   : > { %784 = vrot.lane.b32.xlu0 %v758_v32, %s1218_s14  ;;  %1009 = vrot.lane.b32.xlu1 %v983_v11, %s1218_s14  ;;  %v760_v58 = vpop.f32.mrf.mxu1 }
 0x148   : > { %v761_v48 = vadd.f32 %v1618_v57, %v760_v58 }
 0x14c   : > { %v984_v34 = vpop.f32.mrf.mxu3 }
 0x14d   : > { %v985_v35 = vadd.f32 %v1618_v57, %v984_v34 }
 0x14f   : > { %1011 = vrot.lane.b32.xlu2 %v985_v35, %s1218_s14  ;;  %786 = vrot.lane.b32.xlu1 %v761_v48, %s1218_s14  ;;  %v762_v10 = vpop.f32.mrf.mxu1 }
 0x150   : > { %v763_v46 = vadd.f32 %v1618_v57, %v762_v10 }
 0x154   : > { %v987_v29 = vpop.f32.mrf.mxu3 }
 0x155   : > { %v988_v37 = vadd.f32 %v1618_v57, %v987_v29 }
 0x157   : > { %788 = vrot.lane.b32.xlu2 %v763_v46, %s1218_s14  ;;  %1013 = vrot.lane.b32.xlu0 %v988_v37, %s1218_s14  ;;  %v477_v54 = vpop.f32.mrf.mxu0 }
 0x158   : > { %v765_v39 = vpop.f32.mrf.mxu1  ;;  %v478_v63 = vadd.f32 %v1618_v57, %v477_v54 }
 0x159   : > { %v766_v42 = vadd.f32 %v1618_v57, %v765_v39 }
 0x15c   : > { %v989_v9 = vpop.f32.mrf.mxu3 }
 0x15d   : > { %v990_v38 = vadd.f32 %v1618_v57, %v989_v9  ;;  %v889_v3 = vpop.f32.mrf.mxu2 }
 0x15e   : > { %v890_v47 = vadd.f32 %v1618_v57, %v889_v3 }
 0x15f   : > { %790 = vrot.lane.b32.xlu0 %v766_v42, %s1218_s14  ;;  %v479_v52 = vpop.f32.mrf.mxu0 }
 0x160   : > { %v767_v43 = vpop.f32.mrf.mxu1  ;;  %v480_v16 = vadd.f32 %v1618_v57, %v479_v52 }
 0x161   : > { %v768_v14 = vadd.f32 %v1618_v57, %v767_v43 }
 0x163   : > { %792 = vrot.lane.b32.xlu1 %v768_v14, %s1218_s14 }
 0x164   : > { %v992_v45 = vpop.f32.mrf.mxu3 }
 0x165   : > { %v993_v30 = vadd.f32 %v1618_v57, %v992_v45  ;;  %v891_v55 = vpop.f32.mrf.mxu2 }
 0x166   : > { %v892_v20 = vadd.f32 %v1618_v57, %v891_v55 }
 0x167   : > { %1017 = vrot.lane.b32.xlu2 %v993_v30, %s1218_s14  ;;  %v482_v6 = vpop.f32.mrf.mxu0 }
 0x168   : > { %v483_v12 = vadd.f32 %v1618_v57, %v482_v6 }
 0x16b   : > { %1015 = vrot.lane.b32.xlu1 %v990_v38, %s1218_s14 }
 0x16c   : > { %v994_v41 = vpop.f32.mrf.mxu3 }
 0x16d   : > { %v995_v50 = vadd.f32 %v1618_v57, %v994_v41  ;;  %v894_v33 = vpop.f32.mrf.mxu2 }
 0x16e   : > { %v895_v7 = vadd.f32 %v1618_v57, %v894_v33 }
 0x16f   : > { %1019 = vrot.lane.b32.xlu0 %v995_v50, %s1218_s14  ;;  %v484_v4 = vpop.f32.mrf.mxu0 }
 0x170   : > { %v485_v21 = vadd.f32 %v1618_v57, %v484_v4 }
 0x175   : > { %v896_v15 = vpop.f32.mrf.mxu2 }
 0x176   : > { %v897_v13 = vadd.f32 %v1618_v57, %v896_v15 }
 0x177   : > { %v487_v17 = vpop.f32.mrf.mxu0 }
 0x178   : > { %v488_v60 = vadd.f32 %v1618_v57, %v487_v17 }
 0x17d   : > { %v899_v1 = vpop.f32.mrf.mxu2 }
 0x17e   : > { %v900_v48 = vadd.f32 %v1618_v57, %v899_v1 }
 0x17f   : > { %v489_v19 = vpop.f32.mrf.mxu0 }
 0x180   : > { %v490_v51 = vadd.f32 %v1618_v57, %v489_v19 }
 0x185   : > { %v901_v49 = vpop.f32.mrf.mxu2 }
 0x186   : > { %v902_v14 = vadd.f32 %v1618_v57, %v901_v49 }
 0x187   : > { %v492_v34 = vpop.f32.mrf.mxu0 }
 0x188   : > { %v493_v29 = vadd.f32 %v1618_v57, %v492_v34 }
 0x18d   : > { %v904_v56 = vpop.f32.mrf.mxu2 }
 0x18e   : > { %v905_v28 = vadd.f32 %v1618_v57, %v904_v56 }
 0x18f   : > { %v494_v46 = vpop.f32.mrf.mxu0 }
 0x190   : > { %v495_v9 = vadd.f32 %v1618_v57, %v494_v46 }
 0x191   : > { %v1006_v59 = vpop.permute.xlu2 %1005 }
 0x192   : > { %v1029_v23 = vsel %vm802_vm7, %v890_v47, %v1006_v59 }
 0x193   : > { %1173 = vst.msk [vmem:[%s1657_s18 + $0x8] sm:$0xff] %vm357_vm1, %v1029_v23 }
 0x195   : > { %v906_v30 = vpop.f32.mrf.mxu2 }
 0x196   : > { %v907_v41 = vadd.f32 %v1618_v57, %v906_v30 }
 0x199   : > { %v783_v22 = vpop.permute.xlu2 %782 }
 0x19a   : > { %v805_v62 = vsel %vm802_vm7, %v483_v12, %v783_v22 }
 0x19b   : > { %813 = vst.msk [vmem:[%s1657_s18 + $0x20] sm:$0xff] %vm357_vm1, %v805_v62 }
 0x19c   : > { %v779_v2 = vpop.permute.xlu0 %778 }
 0x19d   : > { %v803_v5 = vsel %vm802_vm7, %v478_v63, %v779_v2 }
 0x19e   : > { %811 = vst.msk [vmem:[%s1657_s18] sm:$0xff] %vm357_vm1, %v803_v5 }
 0x1a4   : > { %v781_v44 = vpop.permute.xlu1 %780 }
 0x1a5   : > { %v804_v40 = vsel %vm802_vm7, %v480_v16, %v781_v44 }
 0x1a6   : > { %812 = vst.msk [vmem:[%s1657_s18 + $0x10] sm:$0xff] %vm357_vm1, %v804_v40 }
 0x1a9   : > { %v1012_v36 = vpop.permute.xlu2 %1011 }
 0x1aa   : > { %v1032_v18 = vsel %vm802_vm7, %v897_v13, %v1012_v36 }
 0x1ab   : > { %1176 = vst.msk [vmem:[%s1657_s18 + $0x38] sm:$0xff] %vm357_vm1, %v1032_v18 }
 0x1b1   : > { %v789_v8 = vpop.permute.xlu2 %788  ;;  %v1008_v25 = vpop.permute.xlu0 %1007 }
 0x1b2   : > { %v808_v53 = vsel %vm802_vm7, %v490_v51, %v789_v8  ;;  %v1030_v61 = vsel %vm802_vm7, %v892_v20, %v1008_v25 }
 0x1b3   : > { %816 = vst.msk [vmem:[%s1657_s18 + $0x50] sm:$0xff] %vm357_vm1, %v808_v53 }
 0x1b4   : > { %1174 = vst.msk [vmem:[%s1657_s18 + $0x18] sm:$0xff] %vm357_vm1, %v1030_v61 }
 0x1b9   : > { %v1010_v26 = vpop.permute.xlu1 %1009  ;;  %v785_v0 = vpop.permute.xlu0 %784 }
 0x1ba   : > { %v1031_v24 = vsel %vm802_vm7, %v895_v7, %v1010_v26  ;;  %v806_v27 = vsel %vm802_vm7, %v485_v21, %v785_v0 }
 0x1bb   : > { %1175 = vst.msk [vmem:[%s1657_s18 + $0x28] sm:$0xff] %vm357_vm1, %v1031_v24 }
 0x1bc   : > { %814 = vst.msk [vmem:[%s1657_s18 + $0x30] sm:$0xff] %vm357_vm1, %v806_v27 }
 0x1c1   : > { %v787_v31 = vpop.permute.xlu1 %786  ;;  %v1018_v32 = vpop.permute.xlu2 %1017 }
 0x1c2   : > { %v807_v11 = vsel %vm802_vm7, %v488_v60, %v787_v31  ;;  %v1035_v58 = vsel %vm802_vm7, %v905_v28, %v1018_v32 }
 0x1c3   : > { %815 = vst.msk [vmem:[%s1657_s18 + $0x40] sm:$0xff] %vm357_vm1, %v807_v11 }
 0x1c4   : > { %1179 = vst.msk [vmem:[%s1657_s18 + $0x68] sm:$0xff] %vm357_vm1, %v1035_v58 }
 0x1c9   : > { %v1014_v35 = vpop.permute.xlu0 %1013 }
 0x1ca   : > { %v1033_v10 = vsel %vm802_vm7, %v900_v48, %v1014_v35 }
 0x1cb   : > { %1177 = vst.msk [vmem:[%s1657_s18 + $0x48] sm:$0xff] %vm357_vm1, %v1033_v10 }
 0x1d1   : > { %v791_v37 = vpop.permute.xlu0 %790 }
 0x1d2   : > { %v809_v39 = vsel %vm802_vm7, %v493_v29, %v791_v37 }
 0x1d3   : > { %817 = vst.msk [vmem:[%s1657_s18 + $0x60] sm:$0xff] %vm357_vm1, %v809_v39 }
 0x1d5   : > { %v793_v42 = vpop.permute.xlu1 %792 }
 0x1d6   : > { %v810_v43 = vsel %vm802_vm7, %v495_v9, %v793_v42 }
 0x1d7   : > { %818 = vst.msk [vmem:[%s1657_s18 + $0x70] sm:$0xff] %vm357_vm1, %v810_v43 }
 0x1dd   : > { %v1016_v45 = vpop.permute.xlu1 %1015 }
 0x1de   : > { %v1034_v38 = vsel %vm802_vm7, %v902_v14, %v1016_v45 }
 0x1df   : > { %1178 = vst.msk [vmem:[%s1657_s18 + $0x58] sm:$0xff] %vm357_vm1, %v1034_v38 }
 0x1e1   : > { %v1020_v50 = vpop.permute.xlu0 %1019 }
 0x1e2   : > { %v1036_v54 = vsel %vm802_vm7, %v907_v41, %v1020_v50 }
 0x1e3   : > { %1180 = vst.msk [vmem:[%s1657_s18 + $0x78] sm:$0xff] %vm357_vm1, %v1036_v54 }
 0x1e4 PF: > { %s13_s12 = sadd.s32 1, %s1213_s12  }
 0x1e5   : > { %p10_p4 = scmp.ge.s32.totalorder %s13_s12, 4  }
 0x1e7   :  { %12 = sbr.rel (!%p10_p4) target bundleno = 1 (0x1), region = 66 }

</bundles_post_ra>
